<compile_context>
chip_gen: v6e
topology: v6e:2x2x1
jax: 0.10.0
libtpu: 0.0.40
codegen_flags: <defaults>
</compile_context>

<pallas_src>
import math
from functools import partial

import jax
import jax.numpy as jnp
import numpy as np
from jax import lax
from jax.experimental import pallas as pl
from jax.experimental.pallas import tpu as pltpu


def _atm_body(x_ref, off_ref, mask_ref, w_ref, b_ref, out_ref, *, src_chunk):
    # x_ref:    [1, C, N]   full source sequence for this batch element
    # off_ref:  [1, C, Nt]  offsets for this sequence tile
    # mask_ref: [1, 1, Nt]  or None (channel-independent padding mask)
    # w_ref:    [O, C]; b_ref: [O, 1]; out_ref: [1, O, Nt]
    C, N = x_ref.shape[1], x_ref.shape[2]
    Nt = out_ref.shape[2]

    t = pl.program_id(1)
    # absolute sampling position p[c, n] for the Nt columns of this tile
    col = lax.broadcasted_iota(jnp.int32, (C, Nt), 1) + t * Nt
    p = col.astype(jnp.float32) + off_ref[0].astype(jnp.float32)          # [C, Nt]
    p3 = p[:, :, None]                                                    # [C, Nt, 1]

    # Gather + linear interpolation as a single fused "hat" weighting:
    #   w(m) = max(0, 1 - |m - p|)
    # which is exactly deform_conv2d's bilinear sampling with zero padding outside
    # [0, N).  The source axis lives on lanes and is chunked (Mc) so the live
    # intermediate is [C, Nt, Mc]; the reduction over it is a lane-axis sum (XLU).
    sampled = jnp.zeros((C, Nt), jnp.float32)
    for m0 in range(0, N, src_chunk):
        mc = min(src_chunk, N - m0)
        xs = x_ref[0, :, m0:m0 + mc].astype(jnp.float32)                  # [C, Mc]
        m_idx = (lax.broadcasted_iota(jnp.int32, (1, 1, mc), 2) + m0).astype(jnp.float32)
        hat = jnp.maximum(1.0 - jnp.abs(m_idx - p3), 0.0)                 # [C, Nt, Mc]
        sampled = sampled + jnp.sum(hat * xs[:, None, :], axis=-1)        # lane reduce

    # channel mixing: one 2-D MXU matmul; mask is channel-independent so it can be
    # applied to the [O, Nt] result (bias added after, matching deform_conv2d).
    out = jnp.dot(w_ref[...].astype(jnp.float32), sampled,
                  preferred_element_type=jnp.float32)                     # [O, Nt]
    if mask_ref is not None:
        out = out * mask_ref[0].astype(jnp.float32)                       # [1, Nt] bcast
    out = out + b_ref[...]
    out_ref[0] = out.astype(out_ref.dtype)


def _make_kernel(has_mask, src_chunk):
    if has_mask:
        def kernel(x_ref, off_ref, mask_ref, w_ref, b_ref, out_ref):
            _atm_body(x_ref, off_ref, mask_ref, w_ref, b_ref, out_ref,
                      src_chunk=src_chunk)
    else:
        def kernel(x_ref, off_ref, w_ref, b_ref, out_ref):
            _atm_body(x_ref, off_ref, None, w_ref, b_ref, out_ref,
                      src_chunk=src_chunk)
    return kernel


def _pick_tile(n, cap):
    """Largest divisor of n that is a multiple of 128 and <= cap, else n itself."""
    best = None
    d = 128
    while d <= min(n, cap):
        if n % d == 0:
            best = d
        d += 128
    return best if best is not None else n


def atm_op(x, offset, weight, bias=None, attn_mask=None, *,
           seq_tile=512, src_chunk=512):
    """x, offset: [B, C, N]; weight: [O, C]; bias: [O] or None; attn_mask: [B, N] or None."""
    B, C, N = x.shape
    O = weight.shape[0]
    Nt = _pick_tile(N, seq_tile)    # lane-dense output tile (multiple of 128 when possible)
    Mc = _pick_tile(N, src_chunk)   # source-axis chunk -> bounded [C, Nt, Mc] intermediate

    if bias is None:
        bias = jnp.zeros((O,), jnp.float32)
    bias2d = bias.reshape(O, 1).astype(jnp.float32)

    has_mask = attn_mask is not None
    inputs = [x, offset]
    in_specs = [
        pl.BlockSpec((1, C, N), lambda b, t: (b, 0, 0)),     # x: full sequence per batch
        pl.BlockSpec((1, C, Nt), lambda b, t: (b, 0, t)),    # offsets for this tile
    ]
    if has_mask:
        # carried at [B, 1, N] — never materialised at [B, C, N] in HBM
        mask = attn_mask.astype(jnp.int32).astype(x.dtype).reshape(B, 1, N)
        inputs.append(mask)
        in_specs.append(pl.BlockSpec((1, 1, Nt), lambda b, t: (b, 0, t)))
    inputs += [weight, bias2d]
    in_specs += [
        pl.BlockSpec((O, C), lambda b, t: (0, 0)),           # weight (replicated)
        pl.BlockSpec((O, 1), lambda b, t: (0, 0)),           # bias   (replicated)
    ]

    kernel = _make_kernel(has_mask, Mc)
    return pl.pallas_call(
        kernel,
        out_shape=jax.ShapeDtypeStruct((B, O, N), x.dtype),
        grid=(B, N // Nt),
        in_specs=in_specs,
        out_specs=pl.BlockSpec((1, O, Nt), lambda b, t: (b, 0, t)),
        compiler_params=pltpu.CompilerParams(
            dimension_semantics=("parallel", "parallel"),
            vmem_limit_bytes=48 * 1024 * 1024,   # stays under v7x's 64 MiB physical VMEM
        ),
    )(*inputs)


def atm_ref(x, offset, weight, bias, attn_mask=None):
    """Pure-JAX reference of the same deform_conv2d-based forward."""
    B, C, N = x.shape
    n = jnp.arange(N, dtype=jnp.float32)[None, None, :]
    p = n + offset.astype(jnp.float32)
    p_floor = jnp.floor(p)
    lh = p - p_floor
    hh = 1.0 - lh
    hl = p_floor.astype(jnp.int32)

    def gather(idx):
        valid = (idx >= 0) & (idx <= N - 1)
        g = jnp.take_along_axis(x.astype(jnp.float32), jnp.clip(idx, 0, N - 1), axis=-1)
        return jnp.where(valid, g, 0.0)

    sampled = hh * gather(hl) + lh * gather(hl + 1)
    if attn_mask is not None:
        sampled = sampled * attn_mask.astype(jnp.float32)[:, None, :]
    out = jnp.einsum("oc,bcn->bon", weight.astype(jnp.float32), sampled,
                     precision=jax.lax.Precision.HIGHEST)
    if bias is not None:
        out = out + bias.astype(jnp.float32)[None, :, None]
    return out.astype(x.dtype)


if __name__ == "__main__":
    B, C, O, N = 2, 8, 8, 256

    key = jax.random.PRNGKey(0)
    k_w, k_b, k_x, k_off, k_m = jax.random.split(key, 5)

    # Deterministic init matching nn.init.kaiming_uniform_(a=sqrt(5)) on [O, C, 1, 1]:
    # fan_in = C, bound = 1/sqrt(fan_in) for both weight and bias.
    bound = 1.0 / math.sqrt(C)
    weight = jax.random.uniform(k_w, (O, C), jnp.float32, -bound, bound)
    bias = jax.random.uniform(k_b, (O,), jnp.float32, -bound, bound)

    x = jax.random.normal(k_x, (B, C, N), jnp.float32)
    offset = jax.random.uniform(k_off, (B, C, N), jnp.float32, -5.0, 5.0)
    attn_mask = jax.random.uniform(k_m, (B, N)) > 0.2   # bool padding mask

    # masked path (seq_tile/src_chunk=128 exercises the N-tiling and the chunked loop)
    out_m = jax.block_until_ready(
        atm_op(x, offset, weight, bias, attn_mask, seq_tile=128, src_chunk=128))
    ref_m = atm_ref(x, offset, weight, bias, attn_mask)
    np.testing.assert_allclose(np.asarray(out_m), np.asarray(ref_m), rtol=1e-5, atol=1e-5)

    # unmasked path (specialised kernel compiled without a mask input)
    out_n = jax.block_until_ready(atm_op(x, offset, weight, bias, None))
    ref_n = atm_ref(x, offset, weight, bias, None)
    np.testing.assert_allclose(np.asarray(out_n), np.asarray(ref_n), rtol=1e-5, atol=1e-5)

    # TODO(synk): ATMixer's surrounding glue (atm_c linear, fusion MLP + softmax gating,
    # proj, dropout) is plain dense algebra best left to XLA, and its helper modules
    # (Mlp, LayerNormGeneral) are not defined in the spec, so only the ATMOp deformable
    # token-mixing core is implemented as a Pallas kernel here.

    print("KERNEL_OK")
</pallas_src>

<mosaic_0001>
module attributes {stable_mosaic.version = 11 : i64} {
  func.func @kernel(%arg0: i32, %arg1: i32, %arg2: memref<1x8x256xf32, #tpu.memory_space<vmem>>, %arg3: memref<1x8x128xf32, #tpu.memory_space<vmem>>, %arg4: memref<1x1x128xf32, #tpu.memory_space<vmem>>, %arg5: memref<8x8xf32, #tpu.memory_space<vmem>>, %arg6: memref<8x1xf32, #tpu.memory_space<vmem>>, %arg7: memref<1x8x128xf32, #tpu.memory_space<vmem>>) attributes {dimension_semantics = [#tpu.dimension_semantics<parallel>, #tpu.dimension_semantics<parallel>], iteration_bounds = array<i64: 2, 2>, scalar_prefetch = 0 : i64, scratch_operands = 0 : i64, tpu.core_type = #tpu.core_type<tc>, window_params = [{transform_indices = @transform_0, window_bounds = array<i64: 1, 8, 256>}, {transform_indices = @transform_1, window_bounds = array<i64: 1, 8, 128>}, {transform_indices = @transform_2, window_bounds = array<i64: 1, 1, 128>}, {pipeline_mode = #tpu.pipeline_mode<synchronous>, transform_indices = @transform_3, window_bounds = array<i64: 8, 8>}, {pipeline_mode = #tpu.pipeline_mode<synchronous>, transform_indices = @transform_4, window_bounds = array<i64: 8, 1>}, {transform_indices = @transform_5, window_bounds = array<i64: 1, 8, 128>}]} {
    %0 = tpu.iota {dimensions = array<i32: 1>} : vector<8x128xi32>
    %c128_i32 = arith.constant 128 : i32
    %1 = arith.muli %arg1, %c128_i32 : i32
    %2 = vector.broadcast %1 : i32 to vector<8x128xi32>
    %3 = arith.addi %0, %2 : vector<8x128xi32>
    %4 = arith.sitofp %3 : vector<8x128xi32> to vector<8x128xf32>
    %c0 = arith.constant 0 : index
    %c0_0 = arith.constant 0 : index
    %c0_1 = arith.constant 0 : index
    %5 = vector.load %arg3[%c0, %c0_0, %c0_1] : memref<1x8x128xf32, #tpu.memory_space<vmem>>, vector<1x8x128xf32>
    %6 = vector.shape_cast %5 : vector<1x8x128xf32> to vector<8x128xf32>
    %7 = arith.addf %4, %6 : vector<8x128xf32>
    %8 = vector.shape_cast %7 : vector<8x128xf32> to vector<8x128x1xf32>
    %cst = arith.constant 0.000000e+00 : f32
    %9 = vector.broadcast %cst : f32 to vector<8x128xf32>
    %c0_2 = arith.constant 0 : index
    %c0_3 = arith.constant 0 : index
    %c0_4 = arith.constant 0 : index
    %10 = vector.load %arg2[%c0_2, %c0_3, %c0_4] : memref<1x8x256xf32, #tpu.memory_space<vmem>>, vector<1x8x128xf32>
    %11 = vector.shape_cast %10 : vector<1x8x128xf32> to vector<8x128xf32>
    %12 = tpu.iota {dimensions = array<i32: 2>} : vector<1x1x128xi32>
    %c0_i32 = arith.constant 0 : i32
    %13 = vector.broadcast %c0_i32 : i32 to vector<1x1x128xi32>
    %14 = arith.addi %12, %13 : vector<1x1x128xi32>
    %15 = arith.sitofp %14 : vector<1x1x128xi32> to vector<1x1x128xf32>
    %16 = vector.broadcast %15 : vector<1x1x128xf32> to vector<8x128x128xf32>
    %17 = vector.broadcast %8 : vector<8x128x1xf32> to vector<8x128x128xf32>
    %18 = arith.subf %16, %17 : vector<8x128x128xf32>
    %19 = math.absf %18 : vector<8x128x128xf32>
    %cst_5 = arith.constant 1.000000e+00 : f32
    %20 = vector.broadcast %cst_5 : f32 to vector<8x128x128xf32>
    %21 = arith.subf %20, %19 : vector<8x128x128xf32>
    %cst_6 = arith.constant 0.000000e+00 : f32
    %22 = vector.broadcast %cst_6 : f32 to vector<8x128x128xf32>
    %23 = arith.maximumf %21, %22 : vector<8x128x128xf32>
    %24 = vector.shape_cast %11 : vector<8x128xf32> to vector<8x1x128xf32>
    %25 = vector.broadcast %24 : vector<8x1x128xf32> to vector<8x128x128xf32>
    %26 = arith.mulf %23, %25 : vector<8x128x128xf32>
    %cst_7 = arith.constant dense<0.000000e+00> : vector<8x128xf32>
    %27 = vector.multi_reduction <add>, %26, %cst_7 [2] : vector<8x128x128xf32> to vector<8x128xf32>
    %28 = arith.addf %9, %27 : vector<8x128xf32>
    %c0_8 = arith.constant 0 : index
    %c0_9 = arith.constant 0 : index
    %c128 = arith.constant 128 : index
    %29 = vector.load %arg2[%c0_8, %c0_9, %c128] : memref<1x8x256xf32, #tpu.memory_space<vmem>>, vector<1x8x128xf32>
    %30 = vector.shape_cast %29 : vector<1x8x128xf32> to vector<8x128xf32>
    %31 = tpu.iota {dimensions = array<i32: 2>} : vector<1x1x128xi32>
    %c128_i32_10 = arith.constant 128 : i32
    %32 = vector.broadcast %c128_i32_10 : i32 to vector<1x1x128xi32>
    %33 = arith.addi %31, %32 : vector<1x1x128xi32>
    %34 = arith.sitofp %33 : vector<1x1x128xi32> to vector<1x1x128xf32>
    %35 = vector.broadcast %34 : vector<1x1x128xf32> to vector<8x128x128xf32>
    %36 = vector.broadcast %8 : vector<8x128x1xf32> to vector<8x128x128xf32>
    %37 = arith.subf %35, %36 : vector<8x128x128xf32>
    %38 = math.absf %37 : vector<8x128x128xf32>
    %cst_11 = arith.constant 1.000000e+00 : f32
    %39 = vector.broadcast %cst_11 : f32 to vector<8x128x128xf32>
    %40 = arith.subf %39, %38 : vector<8x128x128xf32>
    %cst_12 = arith.constant 0.000000e+00 : f32
    %41 = vector.broadcast %cst_12 : f32 to vector<8x128x128xf32>
    %42 = arith.maximumf %40, %41 : vector<8x128x128xf32>
    %43 = vector.shape_cast %30 : vector<8x128xf32> to vector<8x1x128xf32>
    %44 = vector.broadcast %43 : vector<8x1x128xf32> to vector<8x128x128xf32>
    %45 = arith.mulf %42, %44 : vector<8x128x128xf32>
    %cst_13 = arith.constant dense<0.000000e+00> : vector<8x128xf32>
    %46 = vector.multi_reduction <add>, %45, %cst_13 [2] : vector<8x128x128xf32> to vector<8x128xf32>
    %47 = arith.addf %28, %46 : vector<8x128xf32>
    %c0_14 = arith.constant 0 : index
    %c0_15 = arith.constant 0 : index
    %48 = vector.load %arg5[%c0_14, %c0_15] : memref<8x8xf32, #tpu.memory_space<vmem>>, vector<8x8xf32>
    %cst_16 = arith.constant dense<0.000000e+00> : vector<8x128xf32>
    %49 = tpu.matmul %48, %47, %cst_16 {dimension_numbers = #tpu.dot_dimension_numbers<[1], [0], [0], [1], [0, 0, 1, 1], [], []>} : vector<8x8xf32>, vector<8x128xf32>, vector<8x128xf32> -> vector<8x128xf32>
    %c0_17 = arith.constant 0 : index
    %c0_18 = arith.constant 0 : index
    %c0_19 = arith.constant 0 : index
    %50 = vector.load %arg4[%c0_17, %c0_18, %c0_19] : memref<1x1x128xf32, #tpu.memory_space<vmem>>, vector<1x1x128xf32>
    %51 = vector.shape_cast %50 : vector<1x1x128xf32> to vector<1x128xf32>
    %52 = vector.broadcast %51 : vector<1x128xf32> to vector<8x128xf32>
    %53 = arith.mulf %49, %52 : vector<8x128xf32>
    %c0_20 = arith.constant 0 : index
    %c0_21 = arith.constant 0 : index
    %54 = vector.load %arg6[%c0_20, %c0_21] : memref<8x1xf32, #tpu.memory_space<vmem>>, vector<8x1xf32>
    %55 = vector.broadcast %54 : vector<8x1xf32> to vector<8x128xf32>
    %56 = arith.addf %53, %55 : vector<8x128xf32>
    %c0_22 = arith.constant 0 : index
    %c0_23 = arith.constant 0 : index
    %c0_24 = arith.constant 0 : index
    %57 = vector.load %arg7[%c0_22, %c0_23, %c0_24] : memref<1x8x128xf32, #tpu.memory_space<vmem>>, vector<1x8x128xf32>
    %58 = vector.shape_cast %57 : vector<1x8x128xf32> to vector<8x128xf32>
    %59 = vector.shape_cast %56 : vector<8x128xf32> to vector<1x8x128xf32>
    tpu.vector_store %arg7[%c0_22, %c0_23, %c0_24], %59 {strides = array<i32>} : memref<1x8x128xf32, #tpu.memory_space<vmem>>, vector<1x8x128xf32>,
    return
  }
  func.func @transform_0(%arg0: i32, %arg1: i32) -> (i32, i32, i32) {
    %c0_i32 = arith.constant 0 : i32
    %c0_i32_0 = arith.constant 0 : i32
    %c0_i32_1 = arith.constant 0 : i32
    return %arg0, %c0_i32, %c0_i32_0 : i32, i32, i32
  }
  func.func @transform_1(%arg0: i32, %arg1: i32) -> (i32, i32, i32) {
    %c0_i32 = arith.constant 0 : i32
    %c0_i32_0 = arith.constant 0 : i32
    return %arg0, %c0_i32, %arg1 : i32, i32, i32
  }
  func.func @transform_2(%arg0: i32, %arg1: i32) -> (i32, i32, i32) {
    %c0_i32 = arith.constant 0 : i32
    %c0_i32_0 = arith.constant 0 : i32
    return %arg0, %c0_i32, %arg1 : i32, i32, i32
  }
  func.func @transform_3(%arg0: i32, %arg1: i32) -> (i32, i32) {
    %c0_i32 = arith.constant 0 : i32
    %c0_i32_0 = arith.constant 0 : i32
    %c0_i32_1 = arith.constant 0 : i32
    return %c0_i32, %c0_i32_0 : i32, i32
  }
  func.func @transform_4(%arg0: i32, %arg1: i32) -> (i32, i32) {
    %c0_i32 = arith.constant 0 : i32
    %c0_i32_0 = arith.constant 0 : i32
    %c0_i32_1 = arith.constant 0 : i32
    return %c0_i32, %c0_i32_0 : i32, i32
  }
  func.func @transform_5(%arg0: i32, %arg1: i32) -> (i32, i32, i32) {
    %c0_i32 = arith.constant 0 : i32
    %c0_i32_0 = arith.constant 0 : i32
    return %arg0, %c0_i32, %arg1 : i32, i32, i32
  }
}

</mosaic_0001>

<bundles_post_ra>
// kernel: tpu_custom_call.1
= control target key start
LH: loop header
LB: loop body
LE: loop exit
PB: predicated region body
PF: predicated region fallthrough
CT: control target
= control target key end

     0   :  { %s6729_s0 = inlined_call_operand.hbm [shape: f32[2,8,256], index: 0, kind: input, shape index: {}]   ;;  %s6730_s1 = inlined_call_operand.hbm [shape: f32[2,8,256], index: 1, kind: input, shape index: {}]   ;;  %s6731_s2 = inlined_call_operand.vmem [shape: f32[2,1,256], index: 2, kind: input, shape index: {}]   ;;  %s6732_s3 = inlined_call_operand.vmem [shape: f32[8,8], index: 3, kind: input, shape index: {}]   ;;  %s6733_s4 = inlined_call_operand.vmem [shape: f32[8,1], index: 4, kind: input, shape index: {}]   ;;  %s6734_s5 = inlined_call_operand.hbm [shape: f32[2,8,256], index: 5, kind: output, shape index: {}]  }
   0x1   :  { %6871 = sst [smem:[#allocation168_spill]] %s6729_s0 }
   0x2   :  { %6872 = sst [smem:[#allocation169_spill]] %s6731_s2 }
   0x3   :  { %6873 = sst [smem:[#allocation170_spill]] %s6732_s3 }
   0x4   :  { %6874 = sst [smem:[#allocation171_spill]] %s6734_s5 }
   0x5   :  { %10 = vsyncpa [#allocation3], 0 }
   0x6   :  { %12 = vsyncpa [#allocation3 + $0x1], 0 }
   0x7   :  { %13 = vsyncpa [#allocation6], 0 }
   0x8   :  { %15 = vsyncpa [#allocation6 + $0x1], 0 }
   0x9   :  { %16 = vsyncpa [#allocation4], 0 }
   0xa   :  { %18 = vsyncpa [#allocation4 + $0x1], 0  ;;  %s4501_s18 = smov 0   ;;  %s4503_s19 = smov 0  }
   0xb   :  { %s4505_s20 = smov 0   ;;  %s4507_s21 = smov 0  }
   0xc   :  { %s4509_s22 = smov 0   ;;  %s4511_s23 = smov 0  }
   0xd   :  { %s4513_s24 = smov 0   ;;  %s4515_s25 = smov 0  }
   0xe   :  { %s4517_s26 = smov 0   ;;  %s4519_s27 = smov 0  }
   0xf   :  { %s4521_s28 = smov 0  }
  0x10 LB: > { %6875 = sst [smem:[#allocation11_spill]] %s4422_s18  ;;  %s4136_s29 = sadd.s32 4294967295, %s4462_s28   ;;  %s4462_s28 = sphi %s4521_s28, %s24_s28   ;;  %s4458_s27 = sphi %s4519_s27, %s7401_s27   ;;  %s4454_s26 = sphi %s4517_s26, %s7400_s26   ;;  %s4450_s25 = sphi %s4515_s25, %s7399_s25   ;;  %s4446_s24 = sphi %s4513_s24, %s7398_s24   ;;  %s4442_s23 = sphi %s4511_s23, %s7397_s23   ;;  %s4438_s22 = sphi %s4509_s22, %s7396_s22   ;;  %s4434_s21 = sphi %s4507_s21, %s7395_s21   ;;  %s4430_s20 = sphi %s4505_s20, %s7394_s20   ;;  %s4426_s19 = sphi %s4503_s19, %s7393_s19   ;;  %s4422_s18 = sphi %s4501_s18, %s7392_s18  }
  0x11   : > { %6876 = sst [smem:[#allocation12_spill]] %s4450_s25  ;;  %p50_p0 = scmp.ne.s32.totalorder %s4442_s23, %s4438_s22 }
  0x12   : > { %p51_p1 = scmp.eq.s32.totalorder %s4462_s28, 0  ;;  %p56_p2 = scmp.ne.s32.totalorder %s4438_s22, %s4434_s21 }
  0x13   : > { %p4561_p3 = scmp.eq.s32.totalorder %s4136_s29, 0  ;;  %p6735_p6 = scmp.lt.s32.totalorder %s4462_s28, 4 }
  0x14   : > { %p52_p4 = por %p51_p1, %p50_p0  ;;  %s212_s7 = sand.u32 1, %s4442_s23  }
  0x15   : > { %p4569_p5 = por %p4561_p3, %p56_p2  ;;  %s4159_s8 = sshll.u32 %s4458_s27, 8 }
  0x16   : > { %s4140_s9 = sshll.u32 %s212_s7, 4  ;;  %s6879_s0 = sld [smem:[#allocation168_spill]] }
  0x17   : > { %s216_s13 = scalar_lea.vmem [#allocation2], %s4140_s9  ;;  %p4581_p7 = pnand %p6735_p6, %p52_p4 }
  0x18   : > { %s224_s14 = sshll.u32 %s216_s13, 4  ;;  %p4146_p8 = scmp.ge.s32.totalorder %s4462_s28, 1  ;;  %s225_s14 = int_to_ptr.vmem [resolvable:$true] %s224_s14 }
  0x19   : > { %p259_p9 = scmp.lt.s32.totalorder %s4462_s28, 5  ;;  %s213_s16 = scalar_lea.sflag [#allocation3], %s212_s7 }
  0x1a   : > { %p4284_p10 = pneg %p4581_p7  ;;  %s4295_s17 = scalar_lea.vmem %s225_s14, 256 }
  0x1b   : > { %p4296_p11 = scmp.ne.s32.totalorder %s225_s14, %s4295_s17  ;;  %s4464_s21 = smov [#allocation2]  }
  0x1c   : > { %s222_s12 = scalar_lea.hbm %s6879_s0, %s4159_s8  ;;  %s4300_s8 = sshll.u32 %s4464_s21, 4  ;;  %s4301_s8 = int_to_ptr.vmem [resolvable:$false] %s4300_s8 }
  0x1d   : > { %p4298_p12 = pnand %p4296_p11, %p4284_p10  ;;  %s4302_s9 = scalar_lea.vmem %s4301_s8, 512 }
  0x1e   : > { %p4303_p0 = scmp.lt.s32.totalorder %s225_s14, %s4301_s8  ;;  %p4304_p2 = scmp.lt.s32.totalorder %s4302_s9, %s4295_s17 }
  0x1f   : > { %p4299_p13 = pneg %p4298_p12 }
  0x20   : > { %p4305_p4 = por %p4304_p2, %p4303_p0 }
  0x22   : > { %p4306_p6 = pnand %p4305_p4, %p4299_p13 }
  0x24   : > { %4309 = shalt.err (!%p4306_p6)
}
  0x25   : > { %4176 = dma.hbm_to_vmem [thread:$0]  (!%p4581_p7), %s222_s12, 256, %s225_s14, %s213_s16  }
  0x26   : > { %p4595_p6 = pnand %p4146_p8, %p259_p9  ;;  %s43_s10 = sadd.s32 1, %s4442_s23 }
  0x27   : > { %s4137_s11 = sadd.s32 4294967294, %s4462_s28   ;;  %s33_s13 = sadd.s32 1, %s4454_s26 }
  0x28   : > { %p34_p10 = scmp.ge.s32.totalorder %s33_s13, 2  ;;  %s36_s15 = sadd.s32 1, %s4458_s27 }
  0x29   : > { %s71_s17 = sadd.s32 1, %s4430_s20  ;;  %p84_p11 = scmp.ne.s32.totalorder %s4426_s19, %s4422_s18 }
  0x2a   : > { %s7403_s13 = smov (%p34_p10, %s33_s13), 0  ;;  %s7405_s15 = smov (!%p34_p10, %s36_s15), %s4458_s27 }
  0x2b   : > { %6882 = sst [smem:[#allocation13_spill]] %s7403_s13  ;;  %s67_s12 = ssub.s32 %s4454_s26, %s7403_s13 }
  0x2c   : > { %p78_p7 = scmp.ne.s32.totalorder %s4430_s20, %s4426_s19  ;;  %p38_p8 = scmp.ge.s32.totalorder %s7405_s15, 2 }
  0x2d   : > { %p4615_p9 = por %p84_p11, %p4561_p3  ;;  %p180_p12 = scmp.eq.s32.totalorder %s4136_s29, 3 }
  0x2e   : > { %p186_p13 = scmp.eq.s32.totalorder %s4137_s11, 3  ;;  %s7407_s15 = smov (%p38_p8, %s7405_s15), 0 }
  0x2f   : > { %6884 = sst [smem:[#allocation14_spill]] %s7407_s15  ;;  %p4623_p0 = por %p180_p12, %p78_p7 }
  0x30   : > { %p4627_p2 = por %p186_p13, %p84_p11  ;;  %s40_s30 = ssub.s32 %s4458_s27, %s7407_s15 }
  0x31   : > { %s6885_s16 = scalar_select %p4623_p0, 1, 0 }
  0x32   : > { %s6887_s21 = scalar_select %p4627_p2, 1, 0 }
  0x33   : > { %6886 = sst [smem:[#allocation15_spill]] %s6885_s16  ;;  %p4635_p3 = por %p78_p7, %p51_p1 }
  0x34   : > { %6888 = sst [smem:[#allocation16_spill]] %s6887_s21  ;;  %p41_p4 = scmp.eq.s32.totalorder %s40_s30, 0 }
  0x35   : > { %s68_s29 = sor.u32 %s67_s12, %s40_s30  ;;  %s231_s9 = sand.u32 1, %s4430_s20  }
  0x36   : > { %p69_p10 = scmp.eq.s32.totalorder %s68_s29, 0  ;;  %s4143_s13 = sshll.u32 %s231_s9, 3 }
  0x37   : > { %s4641_s11 = scalar_select %p41_p4, %s4442_s23, %s43_s10  }
  0x38   : > { %s4644_s0 = scalar_select %p69_p10, %s4430_s20, %s71_s17  }
  0x39   : > { %s4144_s18 = sshll.u32 %s4458_s27, 1  ;;  %s235_s15 = scalar_lea.vmem [#allocation5], %s4143_s13 }
  0x3a   : > { %s240_s5 = sadd.s32 %s4454_s26, %s4144_s18  ;;  %s244_s16 = sshll.u32 %s235_s15, 4  ;;  %s245_s16 = int_to_ptr.vmem [resolvable:$true] %s244_s16 }
  0x3b   : > { %s4145_s21 = sshll.u32 %s240_s5, 7  ;;  %p6890_p1 = scmp.lt.s32.totalorder %s4462_s28, 4 }
  0x3c   : > { %s242_s25 = scalar_lea.hbm %s6730_s1, %s4145_s21  ;;  %s232_s10 = scalar_lea.sflag [#allocation6], %s231_s9 }
  0x3d   : > { %p4655_p11 = pnand %p6890_p1, %p4635_p3  ;;  %s4323_s17 = scalar_lea.vmem %s245_s16, 128 }
  0x3e   : > { %p4324_p8 = scmp.ne.s32.totalorder %s245_s16, %s4323_s17  ;;  %s4465_s5 = smov [#allocation5]  }
  0x3f   : > { %p4312_p7 = pneg %p4655_p11  ;;  %s4328_s18 = sshll.u32 %s4465_s5, 4  ;;  %s4329_s18 = int_to_ptr.vmem [resolvable:$false] %s4328_s18 }
  0x40   : > { %s4330_s2 = scalar_lea.vmem %s4329_s18, 256  ;;  %p4331_p4 = scmp.lt.s32.totalorder %s245_s16, %s4329_s18 }
  0x41   : > { %p4326_p12 = pnand %p4324_p8, %p4312_p7  ;;  %p4332_p10 = scmp.lt.s32.totalorder %s4330_s2, %s4323_s17 }
  0x43   : > { %p4327_p13 = pneg %p4326_p12  ;;  %p4333_p2 = por %p4332_p10, %p4331_p4 }
  0x45   : > { %p4334_p0 = pnand %p4333_p2, %p4327_p13 }
  0x47   : > { %4337 = shalt.err (!%p4334_p0)
}
  0x48   : > { %4179 = dma.hbm_to_vmem [thread:$0]  (!%p4655_p11), %s242_s25, 128, %s245_s16, %s232_s10  }
  0x49   : > { %263 = sbr.rel (%p4595_p6) target bundleno = 1254 (0x4e6), region = 40 }
  0x4e   : > { %s265_s3 = sand.u32 1, %s4438_s22  }
  0x4f   : > { %s4147_s13 = sshll.u32 %s265_s3, 4  ;;  %s266_s15 = scalar_lea.sflag [#allocation3], %s265_s3 }
  0x50   : > { %s269_s21 = scalar_lea.vmem [#allocation2], %s4147_s13 }
  0x51   : > { %4409 = dma.done.wait (%p4569_p5), %s266_s15, 256  }
  0x52   : > { %4411 = vsyncadd (%p4569_p5), %s266_s15, 4294967040  ;;  %s4671_s30 = sand.u32 1, %s4426_s19  }
  0x53   : > { %s4148_s25 = sshll.u32 %s4671_s30, 3  ;;  %s275_s7 = scalar_lea.sflag [#allocation6], %s4671_s30 }
  0x54   : > { %s278_s16 = scalar_lea.vmem [#allocation5], %s4148_s25 }
  0x55   : > { %4413 = dma.done.wait (%p4615_p9), %s275_s7, 128  }
  0x56   : > { %4415 = vsyncadd (%p4615_p9), %s275_s7, 4294967168  ;;  %v324_v0 = vlaneseq  ;;  %s4151_s6 = sshll.u32 %s4446_s24, 7  ;;  %v4466_v2 = vmov 1966171168   ;;  %v330_v10 = vld [vmem:[%s278_s16] sm:$0xff]  ;;  %v1984_v13 = vld [vmem:[%s269_s21 + $0x8] sm:$0xff] }
  0x57   : > { %v327_v1 = vstv %s4151_s6  ;;  %v1385_v3 = vunpack.c.l.s4 %v4466_v2  ;;  %v868_v12 = vld [vmem:[%s269_s21] sm:$0xff]  ;;  %v2500_v17 = vcombine.high %v1984_v13, %v1984_v13  ;;  %vm3239_vm0 = vcmask 130112   ;;  %s7381_s29 = sld [smem:[#allocation12_spill]]  ;;  %p319_p6 = scmp.lt.s32.totalorder %s4446_s24, 1 }
  0x58   : > { %v4682_v4 = vand.u32 127, %v324_v0  ;;  %v4684_v5 = vshrl.u32 %v324_v0, 7  ;;  %v1383_v15 = vcombine.high %v868_v12, %v868_v12  ;;  %vm3246_vm1 = vcmask 195712   ;;  %s7382_s10 = sld [smem:[#allocation170_spill]]  ;;  %s316_s8 = scalar_lea.vmem [#allocation7], %s4148_s25 }
  0x59   : > { %v1386_v6 = vunpack.c.0.s8 %v1385_v3  ;;  %vm3253_vm2 = vcmask 261312   ;;  %vm3260_vm3 = vcmask 326912   ;;  %vm3267_vm4 = vcmask 392512   ;;  %s320_s5 = scalar_select %p319_p6, %s4446_s24, 1 }
  0x5a   : > { %6892 = vst [vmem:[#allocation17_spill] sm:$0xff] %v4682_v4  ;;  %6893 = vst [vmem:[#allocation18_spill] sm:$0xff] %v4684_v5  ;;  %v328_v7 = vadd.s32 %v327_v1, %v4682_v4  ;;  %v4689_v11 = vsub.s32 0, %v4684_v5  ;;  %v401_v56 = vsub.s32 1, %v4684_v5  ;;  %v468_v58 = vsub.s32 2, %v4684_v5  ;;  %s7383_s21 = sld [smem:[#allocation169_spill]] }
  0x5b   : > { %v1389_v8 = vsub.s32 %v1386_v6, %v4684_v5  ;;  %v535_v60 = vsub.s32 3, %v4684_v5  ;;  %v602_v2 = vsub.s32 4, %v4684_v5  ;;  %vm3274_vm5 = vcmask 458112   ;;  %s7384_s6 = sld [smem:[#allocation15_spill]]  ;;  %s4013_s9 = sshll.u32 %s316_s8, 4  ;;  %s4014_s9 = int_to_ptr.vmem [resolvable:$true] %s4013_s9 }
  0x5c   : > { %v329_v9 = vcvt.s32.f32 %v328_v7  ;;  %vm3281_vm6 = vcmask 523712   ;;  %vm3288_vm7 = vcmask 589312   ;;  %vm3295_vm8 = vcmask 654912  }
  0x5d   : > { %v1390_v16 = vrot.slane %v868_v12, %v1389_v8  ;;  %v2507_v18 = vrot.slane %v1984_v13, %v1389_v8  ;;  %v1397_v19 = vrot.slane %v1383_v15, %v1389_v8  ;;  %v2514_v22 = vrot.slane %v2500_v17, %v1389_v8  ;;  %p317_p5 = scmp.lt.s32.totalorder %s7381_s29, 1  ;;  %s4155_s3 = sshll.u32 %s7381_s29, 1 }
  0x5e   : > { %v4691_v14 = vadd.f32 %v330_v10, %v329_v9  ;;  %vm3302_vm9 = vcmask 720512   ;;  %vm3309_vm10 = vcmask 786112   ;;  %vm4468_vm11 = vmmov 0   ;;  %s4009_s16 = sadd.s32 %s4446_s24, %s4155_s3  ;;  %s4470_s24 = smov [#allocation7]  }
  0x5f   : > { %v1398_v20 = vcombine.high %v1390_v16, %v1390_v16  ;;  %v4693_v21 = vrot.slane %v1390_v16, %v1389_v8  ;;  %v2515_v23 = vcombine.high %v2507_v18, %v2507_v18  ;;  %v1399_v25 = vcombine.high %v1397_v19, %v1397_v19  ;;  %s318_s17 = scalar_select %p317_p5, %s7381_s29, 1 }
  0x60   : > { %v335_v24 = vrot.slane %v4691_v14, %v4689_v11  ;;  %v1413_v26 = vrot.slane %v1397_v19, %v1389_v8  ;;  %v2516_v29 = vcombine.high %v2514_v22, %v2514_v22  ;;  %v2523_v30 = vrot.slane %v2507_v18, %v1389_v8  ;;  %s4156_s14 = sshll.u32 %s4009_s16, 7 }
  0x61   : > { %v4697_v27 = vrot.slane %v1398_v20, %v1389_v8  ;;  %v1428_v28 = vcombine.high %v4693_v21, %v4693_v21  ;;  %v2530_v31 = vrot.slane %v2514_v22, %v1389_v8  ;;  %v1427_v32 = vrot.slane %v1399_v25, %v1389_v8  ;;  %s4150_s18 = sshll.u32 %s318_s17, 1  ;;  %s7385_s17 = sld [smem:[#allocation171_spill]] }
  0x62   : > { %345 = vbcast.lane.b32.xlu1 %v335_v24, 272  ;;  %v1429_v33 = vcombine.high %v1413_v26, %v1413_v26  ;;  %v2537_v35 = vrot.slane %v2515_v23, %v1389_v8  ;;  %337 = vbcast.lane.b32.xlu0 %v335_v24, 256  ;;  %v4707_v37 = vrot.slane %v1413_v26, %v4689_v11  ;;  %v669_v25 = vsub.s32 5, %v4684_v5  ;;  %s322_s2 = sadd.s32 %s4150_s18, %s320_s5  ;;  %s3998_s5 = scalar_lea.sflag [#allocation4], %s4671_s30 }
  0x63   : > { %v1430_v34 = vcombine.high %v4697_v27, %v4697_v27  ;;  %v4704_v36 = vrot.slane %v1428_v28, %v4689_v11  ;;  %v2544_v38 = vrot.slane %v2516_v29, %v1389_v8  ;;  %v2545_v39 = vcombine.high %v2523_v30, %v2523_v30  ;;  %s323_s7 = scalar_lea.vmem %s7383_s21, %s322_s2  ;;  %s4338_s18 = scalar_lea.vmem %s4014_s9, 128 }
  0x64   : > { %6894 = vst [vmem:[#allocation19_spill] sm:$0xff] %v4707_v37  ;;  %v1431_v40 = vcombine.high %v1427_v32, %v1427_v32  ;;  %v4713_v42 = vrot.slane %v1427_v32, %v4689_v11  ;;  %v4716_v43 = vrot.slane %v1429_v33, %v4689_v11  ;;  %v2546_v44 = vcombine.high %v2530_v31, %v2530_v31  ;;  %p4339_p9 = scmp.ne.s32.totalorder %s4014_s9, %s4338_s18  ;;  %p7386_p0 = scmp.ne.s32.totalorder %s7384_s6, 0 }
  0x65   : > { %v4710_v41 = vrot.slane %v1430_v34, %v4689_v11  ;;  %v2547_v45 = vcombine.high %v2537_v35, %v2537_v35  ;;  %v2548_v46 = vcombine.high %v2544_v38, %v2544_v38  ;;  %v4719_v47 = vrot.slane %v2523_v30, %v4689_v11  ;;  %s4342_s2 = sshll.u32 %s4470_s24, 4  ;;  %s4343_s2 = int_to_ptr.vmem [resolvable:$false] %s4342_s2 }
  0x66   : > { %6896 = vst [vmem:[#allocation21_spill] sm:$0xff] %v4713_v42  ;;  %6897 = vst [vmem:[#allocation22_spill] sm:$0xff] %v4716_v43  ;;  %349 = vbcast.lane.b32.xlu1 %v335_v24, 280  ;;  %v4722_v48 = vrot.slane %v1431_v40, %v4689_v11  ;;  %v4725_v49 = vrot.slane %v2537_v35, %v4689_v11  ;;  %v4728_v50 = vrot.slane %v2545_v39, %v4689_v11  ;;  %vm3316_vm12 = vcmask 851712   ;;  %p4340_p2 = pnand %p4339_p9, %p7386_p0  ;;  %s4344_s25 = scalar_lea.vmem %s4343_s2, 256 }
  0x67   : > { %6895 = vst [vmem:[#allocation20_spill] sm:$0xff] %v4710_v41  ;;  %6898 = vst [vmem:[#allocation23_spill] sm:$0xff] %v4719_v47  ;;  %v4731_v51 = vrot.slane %v2530_v31, %v4689_v11  ;;  %341 = vbcast.lane.b32.xlu0 %v335_v24, 264  ;;  %v4734_v52 = vrot.slane %v2547_v45, %v4689_v11  ;;  %v4737_v53 = vrot.slane %v2544_v38, %v4689_v11  ;;  %vm3323_vm13 = vcmask 917312   ;;  %s4011_s29 = scalar_lea.hbm %s7385_s17, %s4156_s14  ;;  %p4345_p1 = scmp.lt.s32.totalorder %s4014_s9, %s4343_s2 }
  0x68   : > { %6899 = vst [vmem:[#allocation24_spill] sm:$0xff] %v4722_v48  ;;  %6900 = vst [vmem:[#allocation25_spill] sm:$0xff] %v4725_v49  ;;  %v4740_v54 = vrot.slane %v2546_v44, %v4689_v11  ;;  %v4743_v55 = vrot.slane %v2548_v46, %v4689_v11  ;;  %v402_v57 = vrot.slane %v4691_v14, %v401_v56  ;;  %v803_v43 = vsub.s32 7, %v4684_v5  ;;  %p4341_p3 = pneg %p4340_p2  ;;  %p4346_p11 = scmp.lt.s32.totalorder %s4344_s25, %s4338_s18 }
  0x69   : > { %6901 = vst [vmem:[#allocation26_spill] sm:$0xff] %v4728_v50  ;;  %6902 = vst [vmem:[#allocation27_spill] sm:$0xff] %v4731_v51  ;;  %v469_v59 = vrot.slane %v4691_v14, %v468_v58  ;;  %v536_v61 = vrot.slane %v4691_v14, %v535_v60  ;;  %v603_v7 = vrot.slane %v4691_v14, %v602_v2  ;;  %v736_v58 = vsub.s32 6, %v4684_v5 }
  0x6a   : > { %6903 = vst [vmem:[#allocation28_spill] sm:$0xff] %v4734_v52  ;;  %6904 = vst [vmem:[#allocation29_spill] sm:$0xff] %v4737_v53  ;;  %357 = vbcast.lane.b32.xlu1 %v335_v24, 296  ;;  %v670_v29 = vrot.slane %v4691_v14, %v669_v25  ;;  %v804_v41 = vrot.slane %v4691_v14, %v803_v43  ;;  %vm3330_vm14 = vcmask 982912   ;;  %vm3337_vm15 = vcmask 1048512   ;;  %p4347_p7 = por %p4346_p11, %p4345_p1 }
  0x6b   : > { %6905 = vst [vmem:[#allocation30_spill] sm:$0xff] %v4740_v54  ;;  %6906 = vst [vmem:[#allocation31_spill] sm:$0xff] %v4743_v55  ;;  %353 = vbcast.lane.b32.xlu0 %v335_v24, 288 }
  0x6c   : > { %p4348_p8 = pnand %p4347_p7, %p4341_p3 }
  0x6e   : > { %365 = vbcast.lane.b32.xlu1 %v335_v24, 312 }
  0x6f   : > { %361 = vbcast.lane.b32.xlu0 %v335_v24, 304 }
  0x72   : > { %373 = vbcast.lane.b32.xlu1 %v335_v24, 328 }
  0x73   : > { %369 = vbcast.lane.b32.xlu0 %v335_v24, 320 }
  0x76   : > { %381 = vbcast.lane.b32.xlu1 %v335_v24, 344 }
  0x77   : > { %377 = vbcast.lane.b32.xlu0 %v335_v24, 336 }
  0x7a   : > { %389 = vbcast.lane.b32.xlu1 %v335_v24, 360 }
  0x7b   : > { %385 = vbcast.lane.b32.xlu0 %v335_v24, 352 }
  0x7e   : > { %397 = vbcast.lane.b32.xlu1 %v335_v24, 376 }
  0x7f   : > { %393 = vbcast.lane.b32.xlu0 %v335_v24, 368 }
  0x82   : > { %408 = vbcast.lane.b32.xlu1 %v402_v57, 264 }
  0x83   : > { %404 = vbcast.lane.b32.xlu0 %v402_v57, 256 }
  0x86   : > { %416 = vbcast.lane.b32.xlu1 %v402_v57, 280 }
  0x87   : > { %412 = vbcast.lane.b32.xlu0 %v402_v57, 272 }
  0x8a   : > { %424 = vbcast.lane.b32.xlu1 %v402_v57, 296 }
  0x8b   : > { %420 = vbcast.lane.b32.xlu0 %v402_v57, 288 }
  0x8e   : > { %432 = vbcast.lane.b32.xlu1 %v402_v57, 312 }
  0x8f   : > { %428 = vbcast.lane.b32.xlu0 %v402_v57, 304 }
  0x92   : > { %440 = vbcast.lane.b32.xlu1 %v402_v57, 328 }
  0x93   : > { %436 = vbcast.lane.b32.xlu0 %v402_v57, 320 }
  0x96   : > { %448 = vbcast.lane.b32.xlu1 %v402_v57, 344 }
  0x97   : > { %444 = vbcast.lane.b32.xlu0 %v402_v57, 336 }
  0x9a   : > { %456 = vbcast.lane.b32.xlu1 %v402_v57, 360 }
  0x9b   : > { %452 = vbcast.lane.b32.xlu0 %v402_v57, 352 }
  0x9e   : > { %464 = vbcast.lane.b32.xlu1 %v402_v57, 376 }
  0x9f   : > { %460 = vbcast.lane.b32.xlu0 %v402_v57, 368 }
  0xa2   : > { %475 = vbcast.lane.b32.xlu1 %v469_v59, 264 }
  0xa3   : > { %471 = vbcast.lane.b32.xlu0 %v469_v59, 256 }
  0xa6   : > { %483 = vbcast.lane.b32.xlu1 %v469_v59, 280 }
  0xa7   : > { %479 = vbcast.lane.b32.xlu0 %v469_v59, 272 }
  0xaa   : > { %491 = vbcast.lane.b32.xlu1 %v469_v59, 296 }
  0xab   : > { %487 = vbcast.lane.b32.xlu0 %v469_v59, 288 }
  0xae   : > { %499 = vbcast.lane.b32.xlu1 %v469_v59, 312 }
  0xaf   : > { %495 = vbcast.lane.b32.xlu0 %v469_v59, 304 }
  0xb2   : > { %507 = vbcast.lane.b32.xlu1 %v469_v59, 328 }
  0xb3   : > { %503 = vbcast.lane.b32.xlu0 %v469_v59, 320 }
  0xb6   : > { %515 = vbcast.lane.b32.xlu1 %v469_v59, 344 }
  0xb7   : > { %511 = vbcast.lane.b32.xlu0 %v469_v59, 336 }
  0xba   : > { %523 = vbcast.lane.b32.xlu1 %v469_v59, 360 }
  0xbb   : > { %519 = vbcast.lane.b32.xlu0 %v469_v59, 352 }
  0xbe   : > { %531 = vbcast.lane.b32.xlu1 %v469_v59, 376 }
  0xbf   : > { %527 = vbcast.lane.b32.xlu0 %v469_v59, 368 }
  0xc2   : > { %542 = vbcast.lane.b32.xlu1 %v536_v61, 264 }
  0xc3   : > { %538 = vbcast.lane.b32.xlu0 %v536_v61, 256 }
  0xc6   : > { %550 = vbcast.lane.b32.xlu1 %v536_v61, 280 }
  0xc7   : > { %546 = vbcast.lane.b32.xlu0 %v536_v61, 272 }
  0xca   : > { %558 = vbcast.lane.b32.xlu1 %v536_v61, 296 }
  0xcb   : > { %554 = vbcast.lane.b32.xlu0 %v536_v61, 288 }
  0xce   : > { %566 = vbcast.lane.b32.xlu1 %v536_v61, 312 }
  0xcf   : > { %562 = vbcast.lane.b32.xlu0 %v536_v61, 304 }
  0xd2   : > { %574 = vbcast.lane.b32.xlu1 %v536_v61, 328 }
  0xd3   : > { %570 = vbcast.lane.b32.xlu0 %v536_v61, 320 }
  0xd4   : > { %v4751_v62 = vpop.permute.xlu1 %345  ;;  %v4753_v63 = vpop.permute.xlu0 %337 }
  0xd5   : > { %6907 = vst [vmem:[#allocation32_spill] sm:$0xff] %v4751_v62  ;;  %6908 = vst [vmem:[#allocation33_spill] sm:$0xff] %v4753_v63 }
  0xd6   : > { %582 = vbcast.lane.b32.xlu1 %v536_v61, 344 }
  0xd7   : > { %578 = vbcast.lane.b32.xlu0 %v536_v61, 336 }
  0xd8   : > { %v4755_v0 = vpop.permute.xlu1 %349 }
  0xd9   : > { %6909 = vst [vmem:[#allocation34_spill] sm:$0xff] %v4755_v0  ;;  %v4757_v1 = vpop.permute.xlu0 %341 }
  0xda   : > { %6910 = vst [vmem:[#allocation35_spill] sm:$0xff] %v4757_v1  ;;  %590 = vbcast.lane.b32.xlu1 %v536_v61, 360 }
  0xdb   : > { %586 = vbcast.lane.b32.xlu0 %v536_v61, 352 }
  0xdc   : > { %v4760_v3 = vpop.permute.xlu1 %357 }
  0xdd   : > { %6911 = vst [vmem:[#allocation36_spill] sm:$0xff] %v4760_v3  ;;  %v4762_v6 = vpop.permute.xlu0 %353 }
  0xde   : > { %6912 = vst [vmem:[#allocation37_spill] sm:$0xff] %v4762_v6  ;;  %598 = vbcast.lane.b32.xlu1 %v536_v61, 376 }
  0xdf   : > { %594 = vbcast.lane.b32.xlu0 %v536_v61, 368  ;;  %v737_v61 = vrot.slane %v4691_v14, %v736_v58 }
  0xe0   : > { %v4765_v8 = vpop.permute.xlu1 %365 }
  0xe1   : > { %6913 = vst [vmem:[#allocation38_spill] sm:$0xff] %v4765_v8  ;;  %v4767_v9 = vpop.permute.xlu0 %361 }
  0xe2   : > { %6914 = vst [vmem:[#allocation39_spill] sm:$0xff] %v4767_v9  ;;  %609 = vbcast.lane.b32.xlu1 %v603_v7, 264 }
  0xe3   : > { %605 = vbcast.lane.b32.xlu0 %v603_v7, 256 }
  0xe4   : > { %v4769_v10 = vpop.permute.xlu1 %373 }
  0xe5   : > { %6915 = vst [vmem:[#allocation40_spill] sm:$0xff] %v4769_v10  ;;  %v4771_v12 = vpop.permute.xlu0 %369 }
  0xe6   : > { %6916 = vst [vmem:[#allocation41_spill] sm:$0xff] %v4771_v12  ;;  %617 = vbcast.lane.b32.xlu1 %v603_v7, 280 }
  0xe7   : > { %613 = vbcast.lane.b32.xlu0 %v603_v7, 272 }
  0xe8   : > { %v4773_v13 = vpop.permute.xlu1 %381 }
  0xe9   : > { %6917 = vst [vmem:[#allocation42_spill] sm:$0xff] %v4773_v13  ;;  %v4775_v15 = vpop.permute.xlu0 %377 }
  0xea   : > { %6918 = vst [vmem:[#allocation43_spill] sm:$0xff] %v4775_v15  ;;  %625 = vbcast.lane.b32.xlu1 %v603_v7, 296 }
  0xeb   : > { %621 = vbcast.lane.b32.xlu0 %v603_v7, 288 }
  0xec   : > { %v4777_v16 = vpop.permute.xlu1 %389 }
  0xed   : > { %6919 = vst [vmem:[#allocation44_spill] sm:$0xff] %v4777_v16  ;;  %v4779_v17 = vpop.permute.xlu0 %385 }
  0xee   : > { %6920 = vst [vmem:[#allocation45_spill] sm:$0xff] %v4779_v17  ;;  %633 = vbcast.lane.b32.xlu1 %v603_v7, 312 }
  0xef   : > { %629 = vbcast.lane.b32.xlu0 %v603_v7, 304 }
  0xf0   : > { %v4781_v18 = vpop.permute.xlu1 %397 }
  0xf1   : > { %6921 = vst [vmem:[#allocation46_spill] sm:$0xff] %v4781_v18  ;;  %v4783_v19 = vpop.permute.xlu0 %393 }
  0xf2   : > { %6922 = vst [vmem:[#allocation47_spill] sm:$0xff] %v4783_v19  ;;  %641 = vbcast.lane.b32.xlu1 %v603_v7, 328 }
  0xf3   : > { %637 = vbcast.lane.b32.xlu0 %v603_v7, 320 }
  0xf4   : > { %v4785_v20 = vpop.permute.xlu1 %408 }
  0xf5   : > { %6923 = vst [vmem:[#allocation48_spill] sm:$0xff] %v4785_v20  ;;  %v4787_v22 = vpop.permute.xlu0 %404 }
  0xf6   : > { %6924 = vst [vmem:[#allocation49_spill] sm:$0xff] %v4787_v22  ;;  %649 = vbcast.lane.b32.xlu1 %v603_v7, 344 }
  0xf7   : > { %645 = vbcast.lane.b32.xlu0 %v603_v7, 336 }
  0xf8   : > { %v4789_v23 = vpop.permute.xlu1 %416 }
  0xf9   : > { %6925 = vst [vmem:[#allocation50_spill] sm:$0xff] %v4789_v23  ;;  %v4791_v24 = vpop.permute.xlu0 %412 }
  0xfa   : > { %6926 = vst [vmem:[#allocation51_spill] sm:$0xff] %v4791_v24  ;;  %657 = vbcast.lane.b32.xlu1 %v603_v7, 360 }
  0xfb   : > { %653 = vbcast.lane.b32.xlu0 %v603_v7, 352 }
  0xfc   : > { %v4794_v26 = vpop.permute.xlu1 %424 }
  0xfd   : > { %6927 = vst [vmem:[#allocation52_spill] sm:$0xff] %v4794_v26  ;;  %v4796_v28 = vpop.permute.xlu0 %420 }
  0xfe   : > { %6928 = vst [vmem:[#allocation53_spill] sm:$0xff] %v4796_v28  ;;  %665 = vbcast.lane.b32.xlu1 %v603_v7, 376 }
  0xff   : > { %661 = vbcast.lane.b32.xlu0 %v603_v7, 368 }
 0x100   : > { %v4799_v30 = vpop.permute.xlu1 %432 }
 0x101   : > { %6929 = vst [vmem:[#allocation54_spill] sm:$0xff] %v4799_v30  ;;  %v4801_v31 = vpop.permute.xlu0 %428 }
 0x102   : > { %6930 = vst [vmem:[#allocation55_spill] sm:$0xff] %v4801_v31  ;;  %676 = vbcast.lane.b32.xlu1 %v670_v29, 264 }
 0x103   : > { %672 = vbcast.lane.b32.xlu0 %v670_v29, 256 }
 0x104   : > { %v4803_v32 = vpop.permute.xlu1 %440 }
 0x105   : > { %6931 = vst [vmem:[#allocation56_spill] sm:$0xff] %v4803_v32  ;;  %v4805_v33 = vpop.permute.xlu0 %436 }
 0x106   : > { %6932 = vst [vmem:[#allocation57_spill] sm:$0xff] %v4805_v33  ;;  %684 = vbcast.lane.b32.xlu1 %v670_v29, 280 }
 0x107   : > { %680 = vbcast.lane.b32.xlu0 %v670_v29, 272 }
 0x108   : > { %v4807_v34 = vpop.permute.xlu1 %448 }
 0x109   : > { %6933 = vst [vmem:[#allocation58_spill] sm:$0xff] %v4807_v34  ;;  %v4809_v35 = vpop.permute.xlu0 %444 }
 0x10a   : > { %6934 = vst [vmem:[#allocation59_spill] sm:$0xff] %v4809_v35  ;;  %692 = vbcast.lane.b32.xlu1 %v670_v29, 296 }
 0x10b   : > { %688 = vbcast.lane.b32.xlu0 %v670_v29, 288 }
 0x10c   : > { %v4811_v38 = vpop.permute.xlu1 %456 }
 0x10d   : > { %6935 = vst [vmem:[#allocation60_spill] sm:$0xff] %v4811_v38  ;;  %v4813_v39 = vpop.permute.xlu0 %452 }
 0x10e   : > { %6936 = vst [vmem:[#allocation61_spill] sm:$0xff] %v4813_v39  ;;  %700 = vbcast.lane.b32.xlu1 %v670_v29, 312 }
 0x10f   : > { %696 = vbcast.lane.b32.xlu0 %v670_v29, 304 }
 0x110   : > { %v4815_v40 = vpop.permute.xlu1 %464 }
 0x111   : > { %6937 = vst [vmem:[#allocation62_spill] sm:$0xff] %v4815_v40  ;;  %v4817_v44 = vpop.permute.xlu0 %460 }
 0x112   : > { %6938 = vst [vmem:[#allocation63_spill] sm:$0xff] %v4817_v44  ;;  %708 = vbcast.lane.b32.xlu1 %v670_v29, 328 }
 0x113   : > { %704 = vbcast.lane.b32.xlu0 %v670_v29, 320 }
 0x114   : > { %v4819_v45 = vpop.permute.xlu1 %475 }
 0x115   : > { %6939 = vst [vmem:[#allocation64_spill] sm:$0xff] %v4819_v45  ;;  %v4821_v46 = vpop.permute.xlu0 %471 }
 0x116   : > { %6940 = vst [vmem:[#allocation65_spill] sm:$0xff] %v4821_v46  ;;  %716 = vbcast.lane.b32.xlu1 %v670_v29, 344 }
 0x117   : > { %712 = vbcast.lane.b32.xlu0 %v670_v29, 336 }
 0x118   : > { %v4823_v56 = vpop.permute.xlu1 %483 }
 0x119   : > { %6941 = vst [vmem:[#allocation66_spill] sm:$0xff] %v4823_v56  ;;  %v4825_v57 = vpop.permute.xlu0 %479 }
 0x11a   : > { %6942 = vst [vmem:[#allocation67_spill] sm:$0xff] %v4825_v57  ;;  %724 = vbcast.lane.b32.xlu1 %v670_v29, 360 }
 0x11b   : > { %720 = vbcast.lane.b32.xlu0 %v670_v29, 352 }
 0x11c   : > { %v4828_v59 = vpop.permute.xlu1 %491 }
 0x11d   : > { %6943 = vst [vmem:[#allocation68_spill] sm:$0xff] %v4828_v59  ;;  %v4830_v60 = vpop.permute.xlu0 %487 }
 0x11e   : > { %6944 = vst [vmem:[#allocation69_spill] sm:$0xff] %v4830_v60  ;;  %732 = vbcast.lane.b32.xlu1 %v670_v29, 376 }
 0x11f   : > { %728 = vbcast.lane.b32.xlu0 %v670_v29, 368 }
 0x120   : > { %v4833_v2 = vpop.permute.xlu1 %499 }
 0x121   : > { %6945 = vst [vmem:[#allocation70_spill] sm:$0xff] %v4833_v2  ;;  %v4835_v7 = vpop.permute.xlu0 %495 }
 0x122   : > { %6946 = vst [vmem:[#allocation71_spill] sm:$0xff] %v4835_v7  ;;  %743 = vbcast.lane.b32.xlu1 %v737_v61, 264 }
 0x123   : > { %739 = vbcast.lane.b32.xlu0 %v737_v61, 256 }
 0x124   : > { %v4837_v25 = vpop.permute.xlu1 %507 }
 0x125   : > { %6947 = vst [vmem:[#allocation72_spill] sm:$0xff] %v4837_v25  ;;  %v4839_v55 = vpop.permute.xlu0 %503 }
 0x126   : > { %6948 = vst [vmem:[#allocation73_spill] sm:$0xff] %v4839_v55  ;;  %751 = vbcast.lane.b32.xlu1 %v737_v61, 280 }
 0x127   : > { %747 = vbcast.lane.b32.xlu0 %v737_v61, 272 }
 0x128   : > { %v4841_v54 = vpop.permute.xlu1 %515 }
 0x129   : > { %6949 = vst [vmem:[#allocation74_spill] sm:$0xff] %v4841_v54  ;;  %v4843_v53 = vpop.permute.xlu0 %511 }
 0x12a   : > { %6950 = vst [vmem:[#allocation75_spill] sm:$0xff] %v4843_v53  ;;  %759 = vbcast.lane.b32.xlu1 %v737_v61, 296 }
 0x12b   : > { %755 = vbcast.lane.b32.xlu0 %v737_v61, 288 }
 0x12c   : > { %v4845_v58 = vpop.permute.xlu1 %523 }
 0x12d   : > { %6951 = vst [vmem:[#allocation76_spill] sm:$0xff] %v4845_v58  ;;  %v4847_v29 = vpop.permute.xlu0 %519 }
 0x12e   : > { %6952 = vst [vmem:[#allocation77_spill] sm:$0xff] %v4847_v29  ;;  %767 = vbcast.lane.b32.xlu1 %v737_v61, 312 }
 0x12f   : > { %763 = vbcast.lane.b32.xlu0 %v737_v61, 304 }
 0x130   : > { %v4849_v51 = vpop.permute.xlu1 %531 }
 0x131   : > { %6953 = vst [vmem:[#allocation78_spill] sm:$0xff] %v4849_v51  ;;  %v4851_v52 = vpop.permute.xlu0 %527 }
 0x132   : > { %6954 = vst [vmem:[#allocation79_spill] sm:$0xff] %v4851_v52  ;;  %775 = vbcast.lane.b32.xlu1 %v737_v61, 328 }
 0x133   : > { %771 = vbcast.lane.b32.xlu0 %v737_v61, 320 }
 0x134   : > { %v4853_v50 = vpop.permute.xlu1 %542 }
 0x135   : > { %6955 = vst [vmem:[#allocation80_spill] sm:$0xff] %v4853_v50  ;;  %v4855_v49 = vpop.permute.xlu0 %538 }
 0x136   : > { %6956 = vst [vmem:[#allocation81_spill] sm:$0xff] %v4855_v49  ;;  %783 = vbcast.lane.b32.xlu1 %v737_v61, 344 }
 0x137   : > { %779 = vbcast.lane.b32.xlu0 %v737_v61, 336 }
 0x138   : > { %v4857_v47 = vpop.permute.xlu1 %550 }
 0x139   : > { %6957 = vst [vmem:[#allocation82_spill] sm:$0xff] %v4857_v47  ;;  %v4859_v48 = vpop.permute.xlu0 %546 }
 0x13a   : > { %6958 = vst [vmem:[#allocation83_spill] sm:$0xff] %v4859_v48  ;;  %791 = vbcast.lane.b32.xlu1 %v737_v61, 360 }
 0x13b   : > { %787 = vbcast.lane.b32.xlu0 %v737_v61, 352 }
 0x13c   : > { %v4862_v42 = vpop.permute.xlu1 %558 }
 0x13d   : > { %6959 = vst [vmem:[#allocation84_spill] sm:$0xff] %v4862_v42  ;;  %v4864_v37 = vpop.permute.xlu0 %554 }
 0x13e   : > { %6960 = vst [vmem:[#allocation85_spill] sm:$0xff] %v4864_v37  ;;  %799 = vbcast.lane.b32.xlu1 %v737_v61, 376 }
 0x13f   : > { %795 = vbcast.lane.b32.xlu0 %v737_v61, 368 }
 0x140   : > { %v4867_v50 = vpop.permute.xlu1 %566 }
 0x141   : > { %6961 = vst [vmem:[#allocation86_spill] sm:$0xff] %v4867_v50  ;;  %v4869_v49 = vpop.permute.xlu0 %562 }
 0x142   : > { %6962 = vst [vmem:[#allocation87_spill] sm:$0xff] %v4869_v49  ;;  %810 = vbcast.lane.b32.xlu1 %v804_v41, 264 }
 0x143   : > { %806 = vbcast.lane.b32.xlu0 %v804_v41, 256 }
 0x144   : > { %v4871_v47 = vpop.permute.xlu1 %574 }
 0x145   : > { %6963 = vst [vmem:[#allocation88_spill] sm:$0xff] %v4871_v47  ;;  %v4873_v48 = vpop.permute.xlu0 %570 }
 0x146   : > { %6964 = vst [vmem:[#allocation89_spill] sm:$0xff] %v4873_v48  ;;  %818 = vbcast.lane.b32.xlu1 %v804_v41, 280 }
 0x147   : > { %814 = vbcast.lane.b32.xlu0 %v804_v41, 272 }
 0x148   : > { %v4875_v5 = vpop.permute.xlu1 %582 }
 0x149   : > { %6965 = vst [vmem:[#allocation90_spill] sm:$0xff] %v4875_v5  ;;  %v4877_v42 = vpop.permute.xlu0 %578 }
 0x14a   : > { %6966 = vst [vmem:[#allocation91_spill] sm:$0xff] %v4877_v42  ;;  %826 = vbcast.lane.b32.xlu1 %v804_v41, 296 }
 0x14b   : > { %822 = vbcast.lane.b32.xlu0 %v804_v41, 288 }
 0x14c   : > { %v4879_v14 = vpop.permute.xlu1 %590 }
 0x14d   : > { %6967 = vst [vmem:[#allocation92_spill] sm:$0xff] %v4879_v14  ;;  %v4881_v43 = vpop.permute.xlu0 %586 }
 0x14e   : > { %6968 = vst [vmem:[#allocation93_spill] sm:$0xff] %v4881_v43  ;;  %834 = vbcast.lane.b32.xlu1 %v804_v41, 312 }
 0x14f   : > { %830 = vbcast.lane.b32.xlu0 %v804_v41, 304 }
 0x150   : > { %v4883_v61 = vpop.permute.xlu1 %598 }
 0x151   : > { %6969 = vst [vmem:[#allocation94_spill] sm:$0xff] %v4883_v61  ;;  %v4885_v50 = vpop.permute.xlu0 %594 }
 0x152   : > { %6970 = vst [vmem:[#allocation95_spill] sm:$0xff] %v4885_v50  ;;  %842 = vbcast.lane.b32.xlu1 %v804_v41, 328 }
 0x153   : > { %838 = vbcast.lane.b32.xlu0 %v804_v41, 320 }
 0x154   : > { %v4887_v47 = vpop.permute.xlu1 %609 }
 0x155   : > { %6971 = vst [vmem:[#allocation96_spill] sm:$0xff] %v4887_v47  ;;  %v4889_v48 = vpop.permute.xlu0 %605 }
 0x156   : > { %6972 = vst [vmem:[#allocation97_spill] sm:$0xff] %v4889_v48  ;;  %850 = vbcast.lane.b32.xlu1 %v804_v41, 344  ;;  %v4906_v48 = vcvt.s32.f32 %v4682_v4 }
 0x157   : > { %846 = vbcast.lane.b32.xlu0 %v804_v41, 336 }
 0x158   : > { %v4891_v5 = vpop.permute.xlu1 %617  ;;  %6980 = vst [vmem:[#allocation105_spill] sm:$0xff] %v4906_v48 }
 0x159   : > { %6973 = vst [vmem:[#allocation98_spill] sm:$0xff] %v4891_v5  ;;  %v4893_v42 = vpop.permute.xlu0 %613 }
 0x15a   : > { %6974 = vst [vmem:[#allocation99_spill] sm:$0xff] %v4893_v42  ;;  %858 = vbcast.lane.b32.xlu1 %v804_v41, 360 }
 0x15b   : > { %854 = vbcast.lane.b32.xlu0 %v804_v41, 352 }
 0x15c   : > { %v4895_v14 = vpop.permute.xlu1 %625 }
 0x15d   : > { %6975 = vst [vmem:[#allocation100_spill] sm:$0xff] %v4895_v14  ;;  %v4897_v43 = vpop.permute.xlu0 %621  ;;  %v870_v14 = vsub.f32 %v4906_v48, %v4753_v63  ;;  %v873_v63 = vsub.f32 %v4906_v48, %v4755_v0  ;;  %v875_v0 = vsub.f32 %v4906_v48, %v4760_v3 }
 0x15e   : > { %6976 = vst [vmem:[#allocation101_spill] sm:$0xff] %v4897_v43  ;;  %866 = vbcast.lane.b32.xlu1 %v804_v41, 376 }
 0x15f   : > { %862 = vbcast.lane.b32.xlu0 %v804_v41, 368  ;;  %v998_v41 = vand.u32 2147483647, %v870_v14  ;;  %v4932_v14 = vrot.slane %v4693_v21, %v4689_v11  ;;  %v876_v21 = vsub.f32 %v4906_v48, %v4767_v9 }
 0x160   : > { %v4901_v50 = vpop.permute.xlu1 %633 }
 0x161   : > { %v4899_v61 = vpop.permute.xlu0 %629  ;;  %6978 = vst [vmem:[#allocation103_spill] sm:$0xff] %v4901_v50  ;;  %v872_v50 = vsub.f32 %v4906_v48, %v4751_v62  ;;  %v1004_v3 = vand.u32 2147483647, %v876_v21  ;;  %v880_v21 = vsub.f32 %v4906_v48, %v4775_v15 }
 0x162   : > { %6977 = vst [vmem:[#allocation102_spill] sm:$0xff] %v4899_v61  ;;  %v1126_v61 = vsub.f32 1.0, %v998_v41 }
 0x164   : > { %v4908_v5 = vpop.permute.xlu1 %641  ;;  %v1254_v62 = vmax.f32 %v1126_v61, 0.0 }
 0x165   : > { %v4903_v47 = vpop.permute.xlu0 %637  ;;  %6981 = vst [vmem:[#allocation106_spill] sm:$0xff] %v4908_v5 }
 0x166   : > { %6979 = vst [vmem:[#allocation104_spill] sm:$0xff] %v4903_v47  ;;  %v871_v47 = vsub.f32 %v4906_v48, %v4757_v1  ;;  %v1001_v1 = vand.u32 2147483647, %v873_v63  ;;  %v1003_v63 = vand.u32 2147483647, %v875_v0  ;;  %v879_v0 = vsub.f32 %v4906_v48, %v4769_v10 }
 0x168   : > { %v4916_v43 = vpop.permute.xlu1 %649  ;;  %v999_v37 = vand.u32 2147483647, %v871_v47  ;;  %v1472_v47 = vmul.f32 %v4932_v14, %v1254_v62  ;;  %v878_v62 = vsub.f32 %v4906_v48, %v4771_v12  ;;  %v1131_v9 = vsub.f32 1.0, %v1003_v63 }
 0x169   : > { %v4910_v42 = vpop.permute.xlu0 %645  ;;  %6984 = vst [vmem:[#allocation109_spill] sm:$0xff] %v4916_v43  ;;  %v1007_v63 = vand.u32 2147483647, %v879_v0 }
 0x16a   : > { %6982 = vst [vmem:[#allocation107_spill] sm:$0xff] %v4910_v42  ;;  %v1000_v42 = vand.u32 2147483647, %v872_v50 }
 0x16c   : > { %v4924_v5 = vpop.permute.xlu1 %657  ;;  %v1128_v43 = vsub.f32 1.0, %v1000_v42 }
 0x16d   : > { %v4914_v49 = vpop.permute.xlu0 %653  ;;  %6986 = vst [vmem:[#allocation111_spill] sm:$0xff] %v4924_v5 }
 0x16e   : > { %6983 = vst [vmem:[#allocation108_spill] sm:$0xff] %v4914_v49  ;;  %v874_v49 = vsub.f32 %v4906_v48, %v4762_v6  ;;  %v1256_v5 = vmax.f32 %v1128_v43, 0.0  ;;  %v1129_v6 = vsub.f32 1.0, %v1001_v1 }
 0x170   : > { %v4936_v41 = vpop.permute.xlu1 %665  ;;  %v1002_v50 = vand.u32 2147483647, %v874_v49  ;;  %v1257_v49 = vmax.f32 %v1129_v6, 0.0  ;;  %v1474_v1 = vmul.f32 %v4932_v14, %v1256_v5 }
 0x171   : > { %v4922_v4 = vpop.permute.xlu0 %661  ;;  %6988 = vst [vmem:[#allocation113_spill] sm:$0xff] %v4936_v41 }
 0x172   : > { %6985 = vst [vmem:[#allocation110_spill] sm:$0xff] %v4922_v4  ;;  %v1127_v4 = vsub.f32 1.0, %v999_v37  ;;  %v1130_v42 = vsub.f32 1.0, %v1002_v50  ;;  %v1132_v50 = vsub.f32 1.0, %v1004_v3  ;;  %v1475_v6 = vmul.f32 %v4932_v14, %v1257_v49 }
 0x173   : > { %v881_v3 = vsub.f32 %v4906_v48, %v4773_v13  ;;  %v882_v49 = vsub.f32 %v4906_v48, %v4779_v17 }
 0x174   : > { %v1255_v61 = vmax.f32 %v1127_v4, 0.0  ;;  %v4947_v37 = vpop.permute.xlu1 %676  ;;  %v1258_v43 = vmax.f32 %v1130_v42, 0.0  ;;  %v1259_v42 = vmax.f32 %v1131_v9, 0.0 }
 0x175   : > { %v4934_v51 = vpop.permute.xlu0 %672  ;;  %v1009_v0 = vand.u32 2147483647, %v881_v3 }
 0x176   : > { %6987 = vst [vmem:[#allocation112_spill] sm:$0xff] %v4934_v51  ;;  %v877_v51 = vsub.f32 %v4906_v48, %v4765_v8  ;;  %v1473_v4 = vmul.f32 %v4932_v14, %v1255_v61  ;;  %v1006_v8 = vand.u32 2147483647, %v878_v62  ;;  %v1476_v61 = vmul.f32 %v4932_v14, %v1258_v43 }
 0x177   : > { %v1008_v62 = vand.u32 2147483647, %v880_v21  ;;  %v1477_v9 = vmul.f32 %v4932_v14, %v1259_v42 }
 0x178   : > { %v4960_v5 = vpop.permute.xlu1 %684  ;;  %v1134_v10 = vsub.f32 1.0, %v1006_v8  ;;  %v883_v8 = vsub.f32 %v4906_v48, %v4777_v16 }
 0x179   : > { %v4945_v41 = vpop.permute.xlu0 %680  ;;  %v1136_v21 = vsub.f32 1.0, %v1008_v62 }
 0x17a   : > { %6989 = vst [vmem:[#allocation114_spill] sm:$0xff] %v4945_v41  ;;  %v1262_v43 = vmax.f32 %v1134_v10, 0.0  ;;  %v1011_v13 = vand.u32 2147483647, %v883_v8 }
 0x17b   : > { %v1264_v3 = vmax.f32 %v1136_v21, 0.0 }
 0x17c   : > { %v1480_v10 = vmul.f32 %v4932_v14, %v1262_v43  ;;  %v887_v43 = vsub.f32 %v4906_v48, %v4785_v20  ;;  %v7017_v20 = vld [vmem:[#allocation90_spill] sm:$0xff] }
 0x17d   : > { %v4955_v41 = vpop.permute.xlu0 %688  ;;  %v1482_v21 = vmul.f32 %v4932_v14, %v1264_v3 }
 0x17e   : > { %1600 = vadd.xlane.f32.xlu0 %v1472_v47  ;;  %v1005_v47 = vand.u32 2147483647, %v877_v51 }
 0x180   : > { %v1133_v51 = vsub.f32 1.0, %v1005_v47  ;;  %v1135_v47 = vsub.f32 1.0, %v1007_v63  ;;  %v1137_v63 = vsub.f32 1.0, %v1009_v0 }
 0x181   : > { %v4967_v15 = vpop.permute.xlu0 %696 }
 0x182   : > { %1604 = vadd.xlane.f32.xlu0 %v1474_v1  ;;  %1602 = vadd.xlane.f32.xlu1 %v1473_v4  ;;  %v1260_v1 = vmax.f32 %v1132_v50, 0.0  ;;  %v1261_v4 = vmax.f32 %v1133_v51, 0.0  ;;  %v884_v51 = vsub.f32 %v4906_v48, %v4783_v19  ;;  %v1263_v42 = vmax.f32 %v1135_v47, 0.0 }
 0x183   : > { %v1139_v47 = vsub.f32 1.0, %v1011_v13 }
 0x184   : > { %v1478_v50 = vmul.f32 %v4932_v14, %v1260_v1  ;;  %v1479_v17 = vmul.f32 %v4932_v14, %v1261_v4  ;;  %v885_v1 = vsub.f32 %v4906_v48, %v4781_v18  ;;  %v1265_v4 = vmax.f32 %v1137_v63, 0.0 }
 0x185   : > { %v4978_v12 = vpop.permute.xlu0 %704  ;;  %v1481_v0 = vmul.f32 %v4932_v14, %v1263_v42  ;;  %v1267_v42 = vmax.f32 %v1139_v47, 0.0 }
 0x186   : > { %1606 = vadd.xlane.f32.xlu0 %v1475_v6  ;;  %1608 = vadd.xlane.f32.xlu1 %v1476_v61  ;;  %v4970_v6 = vpop.permute.xlu1 %692  ;;  %v1010_v61 = vand.u32 2147483647, %v882_v49  ;;  %6990 = vst [vmem:[#allocation115_spill] sm:$0xff] %v4978_v12  ;;  %v1012_v49 = vand.u32 2147483647, %v884_v51  ;;  %v888_v51 = vsub.f32 %v4906_v48, %v4791_v24  ;;  %v1483_v13 = vmul.f32 %v4932_v14, %v1265_v4 }
 0x187   : > { %v5007_v4 = vrot.slane %v4697_v27, %v4689_v11  ;;  %v892_v11 = vsub.f32 %v4906_v48, %v4801_v31 }
 0x189   : > { %v4991_v19 = vpop.permute.xlu0 %712 }
 0x18a   : > { %1610 = vadd.xlane.f32.xlu0 %v1477_v9  ;;  %1612 = vadd.xlane.f32.xlu1 %v1478_v50  ;;  %v1138_v9 = vsub.f32 1.0, %v1010_v61  ;;  %v4983_v62 = vpop.permute.xlu1 %700  ;;  %v886_v50 = vsub.f32 %v4906_v48, %v4787_v22  ;;  %v1140_v61 = vsub.f32 1.0, %v1012_v49  ;;  %6991 = vst [vmem:[#allocation116_spill] sm:$0xff] %v4991_v19  ;;  %v889_v49 = vsub.f32 %v4906_v48, %v4789_v23  ;;  %v7014_v23 = vld [vmem:[#allocation20_spill] sm:$0xff] }
 0x18c   : > { %v1266_v8 = vmax.f32 %v1138_v9, 0.0  ;;  %v1014_v18 = vand.u32 2147483647, %v886_v50  ;;  %v1015_v9 = vand.u32 2147483647, %v887_v43  ;;  %v1268_v16 = vmax.f32 %v1140_v61, 0.0 }
 0x18d   : > { %v1016_v50 = vand.u32 2147483647, %v888_v51  ;;  %v5003_v24 = vpop.permute.xlu0 %720  ;;  %v891_v61 = vsub.f32 %v4906_v48, %v4794_v26 }
 0x18e   : > { %1614 = vadd.xlane.f32.xlu0 %v1479_v17  ;;  %1616 = vadd.xlane.f32.xlu1 %v1480_v10  ;;  %v1013_v17 = vand.u32 2147483647, %v885_v1  ;;  %v4995_v10 = vpop.permute.xlu1 %708  ;;  %v1484_v1 = vmul.f32 %v4932_v14, %v1266_v8  ;;  %v1142_v3 = vsub.f32 1.0, %v1014_v18  ;;  %6992 = vst [vmem:[#allocation117_spill] sm:$0xff] %v5003_v24  ;;  %v1485_v18 = vmul.f32 %v4932_v14, %v1267_v42 }
 0x18f   : > { %v1486_v51 = vmul.f32 %v4932_v14, %v1268_v16  ;;  %v893_v16 = vsub.f32 %v4906_v48, %v4799_v30 }
 0x190   : > { %v1141_v63 = vsub.f32 1.0, %v1013_v17  ;;  %v1143_v17 = vsub.f32 1.0, %v1015_v9  ;;  %v1270_v43 = vmax.f32 %v1142_v3, 0.0 }
 0x191   : > { %v5018_v42 = vpop.permute.xlu0 %728 }
 0x192   : > { %1618 = vadd.xlane.f32.xlu0 %v1481_v0  ;;  %1620 = vadd.xlane.f32.xlu1 %v1482_v21  ;;  %v890_v0 = vsub.f32 %v4906_v48, %v4796_v28  ;;  %v1269_v47 = vmax.f32 %v1141_v63, 0.0  ;;  %v5009_v8 = vpop.permute.xlu1 %716  ;;  %v1017_v21 = vand.u32 2147483647, %v889_v49  ;;  %v1271_v63 = vmax.f32 %v1143_v17, 0.0  ;;  %6994 = vst [vmem:[#allocation119_spill] sm:$0xff] %v5018_v42 }
 0x193   : > { %6993 = vst [vmem:[#allocation118_spill] sm:$0xff] %v5009_v8  ;;  %v1019_v28 = vand.u32 2147483647, %v891_v61  ;;  %v1488_v3 = vmul.f32 %v5007_v4, %v1270_v43  ;;  %v1021_v61 = vand.u32 2147483647, %v893_v16  ;;  %v895_v43 = vsub.f32 %v4906_v48, %v4803_v32 }
 0x194   : > { %v1487_v27 = vmul.f32 %v4932_v14, %v1269_v47  ;;  %v1145_v9 = vsub.f32 1.0, %v1017_v21  ;;  %v1489_v17 = vmul.f32 %v5007_v4, %v1271_v63 }
 0x195   : > { %v1147_v47 = vsub.f32 1.0, %v1019_v28  ;;  %v5031_v30 = vpop.permute.xlu0 %739  ;;  %v1149_v63 = vsub.f32 1.0, %v1021_v61 }
 0x196   : > { %1622 = vadd.xlane.f32.xlu0 %v1483_v13  ;;  %1624 = vadd.xlane.f32.xlu1 %v1484_v1  ;;  %v1144_v13 = vsub.f32 1.0, %v1016_v50  ;;  %v1018_v1 = vand.u32 2147483647, %v890_v0  ;;  %v5023_v50 = vpop.permute.xlu1 %724  ;;  %v1020_v0 = vand.u32 2147483647, %v892_v11  ;;  %v1273_v14 = vmax.f32 %v1145_v9, 0.0 }
 0x197   : > { %6995 = vst [vmem:[#allocation120_spill] sm:$0xff] %v5023_v50  ;;  %v896_v11 = vsub.f32 %v4906_v48, %v4809_v35  ;;  %v1023_v9 = vand.u32 2147483647, %v895_v43 }
 0x198   : > { %v1272_v49 = vmax.f32 %v1144_v13, 0.0  ;;  %v1146_v26 = vsub.f32 1.0, %v1018_v1  ;;  %v1148_v13 = vsub.f32 1.0, %v1020_v0  ;;  %v1491_v28 = vmul.f32 %v5007_v4, %v1273_v14 }
 0x199   : > { %v897_v0 = vsub.f32 %v4906_v48, %v4807_v34  ;;  %v5043_v35 = vpop.permute.xlu0 %747  ;;  %v1151_v14 = vsub.f32 1.0, %v1023_v9 }
 0x19a   : > { %1626 = vadd.xlane.f32.xlu0 %v1485_v18  ;;  %1628 = vadd.xlane.f32.xlu1 %v1486_v51  ;;  %v894_v18 = vsub.f32 %v4906_v48, %v4805_v33  ;;  %v1274_v21 = vmax.f32 %v1146_v26, 0.0  ;;  %v1490_v51 = vmul.f32 %v5007_v4, %v1272_v49  ;;  %v1275_v26 = vmax.f32 %v1147_v47, 0.0 }
 0x19b   : > { %v1276_v16 = vmax.f32 %v1148_v13, 0.0  ;;  %v1025_v43 = vand.u32 2147483647, %v897_v0  ;;  %v899_v13 = vsub.f32 %v4906_v48, %v4811_v38  ;;  %v1279_v9 = vmax.f32 %v1151_v14, 0.0 }
 0x19c   : > { %v1022_v1 = vand.u32 2147483647, %v894_v18  ;;  %v1024_v18 = vand.u32 2147483647, %v896_v11  ;;  %v1493_v61 = vmul.f32 %v5007_v4, %v1275_v26 }
 0x19d   : > { %v1027_v34 = vand.u32 2147483647, %v899_v13  ;;  %v5054_v26 = vpop.permute.xlu0 %755 }
 0x19e   : > { %1630 = vadd.xlane.f32.xlu0 %v1487_v27  ;;  %1632 = vadd.xlane.f32.xlu1 %v1488_v3  ;;  %v5035_v27 = vpop.permute.xlu1 %732  ;;  %v1492_v3 = vmul.f32 %v5007_v4, %v1274_v21  ;;  %v1150_v49 = vsub.f32 1.0, %v1022_v1  ;;  %v1494_v1 = vmul.f32 %v5007_v4, %v1276_v16  ;;  %v1152_v11 = vsub.f32 1.0, %v1024_v18 }
 0x19f   : > { %6996 = vst [vmem:[#allocation121_spill] sm:$0xff] %v5035_v27  ;;  %v901_v16 = vsub.f32 %v4906_v48, %v4815_v40  ;;  %v1155_v14 = vsub.f32 1.0, %v1027_v34 }
 0x1a0   : > { %v1278_v21 = vmax.f32 %v1150_v49, 0.0  ;;  %v1280_v0 = vmax.f32 %v1152_v11, 0.0 }
 0x1a2   : > { %1634 = vadd.xlane.f32.xlu0 %v1489_v17  ;;  %1636 = vadd.xlane.f32.xlu1 %v1490_v51  ;;  %v898_v17 = vsub.f32 %v4906_v48, %v4813_v39  ;;  %v1277_v51 = vmax.f32 %v1149_v63, 0.0  ;;  %v5045_v47 = vpop.permute.xlu1 %743  ;;  %v1153_v39 = vsub.f32 1.0, %v1025_v43  ;;  %v1496_v49 = vmul.f32 %v5007_v4, %v1278_v21 }
 0x1a3   : > { %v1497_v43 = vmul.f32 %v5007_v4, %v1279_v9  ;;  %v903_v21 = vsub.f32 %v4906_v48, %v4819_v45  ;;  %v1498_v11 = vmul.f32 %v5007_v4, %v1280_v0 }
 0x1a4   : > { %v1495_v63 = vmul.f32 %v5007_v4, %v1277_v51  ;;  %v1281_v51 = vmax.f32 %v1153_v39, 0.0 }
 0x1a5   : > { %v1031_v9 = vand.u32 2147483647, %v903_v21 }
 0x1a6   : > { %1638 = vadd.xlane.f32.xlu0 %v1491_v28  ;;  %1640 = vadd.xlane.f32.xlu1 %v1492_v3  ;;  %v1026_v28 = vand.u32 2147483647, %v898_v17  ;;  %v900_v3 = vsub.f32 %v4906_v48, %v4817_v44  ;;  %v5059_v18 = vpop.permute.xlu1 %751  ;;  %v5067_v44 = vpop.permute.xlu0 %763  ;;  %v1499_v34 = vmul.f32 %v5007_v4, %v1281_v51 }
 0x1a7   : > { %v1159_v51 = vsub.f32 1.0, %v1031_v9 }
 0x1a8   : > { %v1154_v38 = vsub.f32 1.0, %v1026_v28  ;;  %v1028_v17 = vand.u32 2147483647, %v900_v3  ;;  %v904_v3 = vsub.f32 %v4906_v48, %v4825_v57 }
 0x1a9   : > { %v1287_v9 = vmax.f32 %v1159_v51, 0.0 }
 0x1aa   : > { %1642 = vadd.xlane.f32.xlu0 %v1493_v61  ;;  %1644 = vadd.xlane.f32.xlu1 %v1494_v1  ;;  %v902_v61 = vsub.f32 %v4906_v48, %v4821_v46  ;;  %v1282_v13 = vmax.f32 %v1154_v38, 0.0  ;;  %v1029_v1 = vand.u32 2147483647, %v901_v16  ;;  %v1156_v28 = vsub.f32 1.0, %v1028_v17  ;;  %v5079_v32 = vpop.permute.xlu0 %771 }
 0x1ab   : > { %v1283_v38 = vmax.f32 %v1155_v14, 0.0  ;;  %v905_v17 = vsub.f32 %v4906_v48, %v4823_v56  ;;  %v1505_v51 = vmul.f32 %v4704_v36, %v1287_v9  ;;  %v7007_v56 = vld [vmem:[#allocation83_spill] sm:$0xff] }
 0x1ac   : > { %v1030_v40 = vand.u32 2147483647, %v902_v61  ;;  %v1157_v39 = vsub.f32 1.0, %v1029_v1  ;;  %v1284_v16 = vmax.f32 %v1156_v28, 0.0  ;;  %v1032_v61 = vand.u32 2147483647, %v904_v3 }
 0x1ad   : > { %v1501_v1 = vmul.f32 %v5007_v4, %v1283_v38  ;;  %v1033_v21 = vand.u32 2147483647, %v905_v17 }
 0x1ae   : > { %1646 = vadd.xlane.f32.xlu0 %v1495_v63  ;;  %1648 = vadd.xlane.f32.xlu1 %v1496_v49  ;;  %v5071_v63 = vpop.permute.xlu1 %759  ;;  %v1500_v49 = vmul.f32 %v5007_v4, %v1282_v13  ;;  %v1158_v0 = vsub.f32 1.0, %v1030_v40  ;;  %v907_v40 = vsub.f32 %v4906_v48, %v4828_v59  ;;  %v1502_v28 = vmul.f32 %v5007_v4, %v1284_v16  ;;  %v5090_v38 = vpop.permute.xlu0 %779 }
 0x1af   : > { %v1160_v3 = vsub.f32 1.0, %v1032_v61  ;;  %v1161_v33 = vsub.f32 1.0, %v1033_v21  ;;  %6997 = vst [vmem:[#allocation122_spill] sm:$0xff] %v5090_v38  ;;  %v909_v16 = vsub.f32 %v4906_v48, %v4833_v2 }
 0x1b0   : > { %v1286_v13 = vmax.f32 %v1158_v0, 0.0  ;;  %v1035_v31 = vand.u32 2147483647, %v907_v40 }
 0x1b1   : > { %v1288_v17 = vmax.f32 %v1160_v3, 0.0  ;;  %v1037_v40 = vand.u32 2147483647, %v909_v16 }
 0x1b2   : > { %1650 = vadd.xlane.f32.xlu0 %v1497_v43  ;;  %1652 = vadd.xlane.f32.xlu1 %v1498_v11  ;;  %v906_v43 = vsub.f32 %v4906_v48, %v4830_v60  ;;  %v1285_v11 = vmax.f32 %v1157_v39, 0.0  ;;  %v5081_v14 = vpop.permute.xlu1 %767  ;;  %v1504_v0 = vmul.f32 %v4704_v36, %v1286_v13  ;;  %v911_v13 = vsub.f32 %v4906_v48, %v4837_v25  ;;  %v5103_v2 = vpop.permute.xlu0 %787 }
 0x1b3   : > { %6999 = vst [vmem:[#allocation124_spill] sm:$0xff] %v5103_v2 }
 0x1b4   : > { %v1503_v39 = vmul.f32 %v5007_v4, %v1285_v11  ;;  %v1289_v4 = vmax.f32 %v1161_v33, 0.0  ;;  %v1163_v11 = vsub.f32 1.0, %v1035_v31  ;;  %v1039_v9 = vand.u32 2147483647, %v911_v13 }
 0x1b6   : > { %1654 = vadd.xlane.f32.xlu0 %v1499_v34  ;;  %1656 = vadd.xlane.f32.xlu1 %v1500_v49  ;;  %v1034_v34 = vand.u32 2147483647, %v906_v43  ;;  %v908_v49 = vsub.f32 %v4906_v48, %v4835_v7  ;;  %v5095_v61 = vpop.permute.xlu1 %775  ;;  %v1507_v31 = vmul.f32 %v4704_v36, %v1289_v4  ;;  %v1291_v33 = vmax.f32 %v1163_v11, 0.0 }
 0x1b7   : > { %6998 = vst [vmem:[#allocation123_spill] sm:$0xff] %v5095_v61  ;;  %v1167_v4 = vsub.f32 1.0, %v1039_v9  ;;  %v7003_v9 = vld [vmem:[#allocation78_spill] sm:$0xff] }
 0x1b8   : > { %v1162_v59 = vsub.f32 1.0, %v1034_v34  ;;  %v1036_v43 = vand.u32 2147483647, %v908_v49  ;;  %v912_v49 = vsub.f32 %v4906_v48, %v4843_v53  ;;  %v5115_v53 = vpop.permute.xlu0 %795 }
 0x1b9   : > { %7001 = vst [vmem:[#allocation126_spill] sm:$0xff] %v5115_v53 }
 0x1ba   : > { %1658 = vadd.xlane.f32.xlu0 %v1501_v1  ;;  %1660 = vadd.xlane.f32.xlu1 %v1502_v28  ;;  %v910_v1 = vsub.f32 %v4906_v48, %v4839_v55  ;;  %v1290_v21 = vmax.f32 %v1162_v59, 0.0  ;;  %v1506_v28 = vmul.f32 %v4704_v36, %v1288_v17  ;;  %v1164_v3 = vsub.f32 1.0, %v1036_v43 }
 0x1bb   : > { %v1165_v59 = vsub.f32 1.0, %v1037_v40  ;;  %v913_v43 = vsub.f32 %v4906_v48, %v4841_v54  ;;  %v1509_v40 = vmul.f32 %v4704_v36, %v1291_v33  ;;  %v7004_v54 = vld [vmem:[#allocation81_spill] sm:$0xff] }
 0x1bc   : > { %v1038_v34 = vand.u32 2147483647, %v910_v1  ;;  %v1292_v16 = vmax.f32 %v1164_v3, 0.0  ;;  %v1040_v1 = vand.u32 2147483647, %v912_v49  ;;  %v915_v3 = vsub.f32 %v4906_v48, %v4845_v58  ;;  %v5130_v25 = vpop.permute.xlu0 %806 }
 0x1bd   : > { %v1041_v13 = vand.u32 2147483647, %v913_v43  ;;  %v918_v58 = vsub.f32 %v4906_v48, %v7004_v54 }
 0x1be   : > { %1662 = vadd.xlane.f32.xlu0 %v1503_v39  ;;  %1664 = vadd.xlane.f32.xlu1 %v1504_v0  ;;  %v5107_v39 = vpop.permute.xlu1 %783  ;;  %v1508_v0 = vmul.f32 %v4704_v36, %v1290_v21  ;;  %v1166_v17 = vsub.f32 1.0, %v1038_v34  ;;  %v1510_v34 = vmul.f32 %v4704_v36, %v1292_v16  ;;  %v1168_v49 = vsub.f32 1.0, %v1040_v1 }
 0x1bf   : > { %7000 = vst [vmem:[#allocation125_spill] sm:$0xff] %v5107_v39  ;;  %v1043_v43 = vand.u32 2147483647, %v915_v3 }
 0x1c0   : > { %v1294_v21 = vmax.f32 %v1166_v17, 0.0  ;;  %v1169_v17 = vsub.f32 1.0, %v1041_v13  ;;  %v1296_v1 = vmax.f32 %v1168_v49, 0.0 }
 0x1c1   : > { %v1171_v3 = vsub.f32 1.0, %v1043_v43 }
 0x1c2   : > { %1666 = vadd.xlane.f32.xlu0 %v1505_v51  ;;  %1668 = vadd.xlane.f32.xlu1 %v1506_v28  ;;  %v914_v51 = vsub.f32 %v4906_v48, %v4847_v29  ;;  %v1293_v28 = vmax.f32 %v1165_v59, 0.0  ;;  %v5117_v11 = vpop.permute.xlu1 %791  ;;  %v1295_v59 = vmax.f32 %v1167_v4, 0.0  ;;  %v917_v29 = vsub.f32 %v4906_v48, %v7003_v9 }
 0x1c3   : > { %7002 = vst [vmem:[#allocation127_spill] sm:$0xff] %v5117_v11  ;;  %v1512_v16 = vmul.f32 %v4704_v36, %v1294_v21  ;;  %v1297_v13 = vmax.f32 %v1169_v17, 0.0  ;;  %v1046_v9 = vand.u32 2147483647, %v918_v58  ;;  %v920_v21 = vsub.f32 %v4906_v48, %v7007_v56  ;;  %v7008_v58 = vld [vmem:[#allocation82_spill] sm:$0xff]  ;;  %v7009_v56 = vld [vmem:[#allocation85_spill] sm:$0xff] }
 0x1c4   : > { %v1511_v33 = vmul.f32 %v4704_v36, %v1293_v28  ;;  %v1045_v4 = vand.u32 2147483647, %v917_v29  ;;  %v1513_v55 = vmul.f32 %v4704_v36, %v1295_v59  ;;  %v1514_v49 = vmul.f32 %v4704_v36, %v1296_v1 }
 0x1c5   : > { %v1299_v17 = vmax.f32 %v1171_v3, 0.0  ;;  %v1174_v43 = vsub.f32 1.0, %v1046_v9  ;;  %v921_v59 = vsub.f32 %v4906_v48, %v7008_v58  ;;  %v922_v1 = vsub.f32 %v4906_v48, %v7009_v56  ;;  %v7010_v3 = vld [vmem:[#allocation84_spill] sm:$0xff]  ;;  %v7011_v58 = vld [vmem:[#allocation87_spill] sm:$0xff] }
 0x1c6   : > { %1670 = vadd.xlane.f32.xlu0 %v1507_v31  ;;  %1672 = vadd.xlane.f32.xlu1 %v1508_v0  ;;  %v1042_v31 = vand.u32 2147483647, %v914_v51  ;;  %v916_v0 = vsub.f32 %v4906_v48, %v4851_v52  ;;  %v923_v9 = vsub.f32 %v4906_v48, %v7010_v3  ;;  %v924_v56 = vsub.f32 %v4906_v48, %v7011_v58 }
 0x1c8   : > { %v1170_v51 = vsub.f32 1.0, %v1042_v31  ;;  %v1044_v52 = vand.u32 2147483647, %v916_v0  ;;  %v5141_v31 = vpop.permute.xlu0 %814  ;;  %v1173_v0 = vsub.f32 1.0, %v1045_v4  ;;  %v1052_v58 = vand.u32 2147483647, %v924_v56 }
 0x1c9   : > { %v7016_v56 = vld [vmem:[#allocation91_spill] sm:$0xff] }
 0x1ca   : > { %1674 = vadd.xlane.f32.xlu0 %v1509_v40  ;;  %1676 = vadd.xlane.f32.xlu1 %v1510_v34  ;;  %v5133_v40 = vpop.permute.xlu1 %799  ;;  %v7006_v34 = vld [vmem:[#allocation80_spill] sm:$0xff]  ;;  %v1298_v7 = vmax.f32 %v1170_v51, 0.0  ;;  %v1172_v60 = vsub.f32 1.0, %v1044_v52  ;;  %v1515_v52 = vmul.f32 %v4704_v36, %v1297_v13  ;;  %v1048_v51 = vand.u32 2147483647, %v920_v21 }
 0x1cb   : > { %7005 = vst [vmem:[#allocation128_spill] sm:$0xff] %v5133_v40  ;;  %v919_v28 = vsub.f32 %v4906_v48, %v7006_v34  ;;  %v1517_v13 = vmul.f32 %v4704_v36, %v1299_v17  ;;  %v1050_v21 = vand.u32 2147483647, %v922_v1 }
 0x1cc   : > { %v1516_v34 = vmul.f32 %v4704_v36, %v1298_v7  ;;  %v5153_v54 = vpop.permute.xlu0 %822 }
 0x1cd   : > { %v1047_v29 = vand.u32 2147483647, %v919_v28  ;;  %v1302_v28 = vmax.f32 %v1174_v43, 0.0  ;;  %v1178_v3 = vsub.f32 1.0, %v1050_v21 }
 0x1ce   : > { %1678 = vadd.xlane.f32.xlu0 %v1511_v33  ;;  %1680 = vadd.xlane.f32.xlu1 %v1512_v16  ;;  %v5143_v33 = vpop.permute.xlu1 %810  ;;  %v1300_v16 = vmax.f32 %v1172_v60, 0.0  ;;  %v1176_v60 = vsub.f32 1.0, %v1048_v51 }
 0x1cf   : > { %v1175_v4 = vsub.f32 1.0, %v1047_v29  ;;  %v1520_v45 = vmul.f32 %v7014_v23, %v1302_v28  ;;  %v928_v28 = vsub.f32 %v4906_v48, %v7016_v56 }
 0x1d0   : > { %v1518_v7 = vmul.f32 %v4704_v36, %v1300_v16  ;;  %v1304_v1 = vmax.f32 %v1176_v60, 0.0  ;;  %v5167_v46 = vpop.permute.xlu0 %830  ;;  %v1180_v60 = vsub.f32 1.0, %v1052_v58 }
 0x1d1   : > { %v1056_v58 = vand.u32 2147483647, %v928_v28 }
 0x1d2   : > { %1682 = vadd.xlane.f32.xlu0 %v1513_v55  ;;  %1684 = vadd.xlane.f32.xlu1 %v1514_v49  ;;  %v1301_v55 = vmax.f32 %v1173_v0, 0.0  ;;  %v1049_v49 = vand.u32 2147483647, %v921_v59  ;;  %v5158_v57 = vpop.permute.xlu1 %818  ;;  %v7012_v0 = vld [vmem:[#allocation86_spill] sm:$0xff]  ;;  %v1051_v59 = vand.u32 2147483647, %v923_v9  ;;  %v1522_v21 = vmul.f32 %v7014_v23, %v1304_v1 }
 0x1d3   : > { %v925_v29 = vsub.f32 %v4906_v48, %v7012_v0 }
 0x1d4   : > { %v1177_v43 = vsub.f32 1.0, %v1049_v49  ;;  %v1519_v51 = vmul.f32 %v4704_v36, %v1301_v55  ;;  %v1179_v9 = vsub.f32 1.0, %v1051_v59  ;;  %v1306_v55 = vmax.f32 %v1178_v3, 0.0  ;;  %v7019_v59 = vld [vmem:[#allocation93_spill] sm:$0xff] }
 0x1d5   : > { %v1053_v16 = vand.u32 2147483647, %v925_v29  ;;  %v1308_v3 = vmax.f32 %v1180_v60, 0.0  ;;  %v1184_v60 = vsub.f32 1.0, %v1056_v58 }
 0x1d6   : > { %1686 = vadd.xlane.f32.xlu0 %v1515_v52  ;;  %1688 = vadd.xlane.f32.xlu1 %v1516_v34  ;;  %v1303_v34 = vmax.f32 %v1175_v4, 0.0  ;;  %v7013_v52 = vld [vmem:[#allocation89_spill] sm:$0xff]  ;;  %v7015_v4 = vld [vmem:[#allocation88_spill] sm:$0xff]  ;;  %v1305_v49 = vmax.f32 %v1177_v43, 0.0  ;;  %v5179_v43 = vpop.permute.xlu0 %838  ;;  %v1524_v1 = vmul.f32 %v7014_v23, %v1306_v55 }
 0x1d7   : > { %v926_v17 = vsub.f32 %v4906_v48, %v7013_v52  ;;  %v1181_v29 = vsub.f32 1.0, %v1053_v16  ;;  %7018 = vst [vmem:[#allocation20_spill] sm:$0xff] %v5179_v43  ;;  %v7021_v43 = vld [vmem:[#allocation95_spill] sm:$0xff] }
 0x1d8   : > { %v1521_v36 = vmul.f32 %v7014_v23, %v1303_v34  ;;  %v1523_v34 = vmul.f32 %v7014_v23, %v1305_v49 }
 0x1d9   : > { %v1054_v52 = vand.u32 2147483647, %v926_v17  ;;  %v930_v17 = vsub.f32 %v4906_v48, %v7019_v59  ;;  %v1309_v16 = vmax.f32 %v1181_v29, 0.0  ;;  %v932_v59 = vsub.f32 %v4906_v48, %v7021_v43  ;;  %v7023_v29 = vld [vmem:[#allocation94_spill] sm:$0xff] }
 0x1da   : > { %1690 = vadd.xlane.f32.xlu0 %v1517_v13  ;;  %1692 = vadd.xlane.f32.xlu1 %v1518_v7  ;;  %v927_v13 = vsub.f32 %v4906_v48, %v7015_v4  ;;  %v5171_v7 = vpop.permute.xlu1 %826  ;;  %v1307_v4 = vmax.f32 %v1179_v9, 0.0  ;;  %v5193_v22 = vpop.permute.xlu0 %846 }
 0x1db   : > { %v1182_v0 = vsub.f32 1.0, %v1054_v52  ;;  %v1058_v28 = vand.u32 2147483647, %v930_v17  ;;  %7022 = vst [vmem:[#allocation129_spill] sm:$0xff] %v5193_v22  ;;  %v1527_v17 = vmul.f32 %v7014_v23, %v1309_v16 }
 0x1dc   : > { %v1525_v49 = vmul.f32 %v7014_v23, %v1307_v4  ;;  %v7025_v4 = vld [vmem:[#allocation97_spill] sm:$0xff] }
 0x1dd   : > { %v1310_v52 = vmax.f32 %v1182_v0, 0.0  ;;  %v933_v0 = vsub.f32 %v4906_v48, %v7023_v29  ;;  %v934_v58 = vsub.f32 %v4906_v48, %v7025_v4  ;;  %v1186_v43 = vsub.f32 1.0, %v1058_v28 }
 0x1de   : > { %1694 = vadd.xlane.f32.xlu0 %v1519_v51  ;;  %1696 = vadd.xlane.f32.xlu1 %v1520_v45  ;;  %v1055_v51 = vand.u32 2147483647, %v927_v13  ;;  %v929_v45 = vsub.f32 %v4906_v48, %v7017_v20  ;;  %v5184_v56 = vpop.permute.xlu1 %834  ;;  %v1526_v20 = vmul.f32 %v7014_v23, %v1308_v3  ;;  %v1060_v3 = vand.u32 2147483647, %v932_v59 }
 0x1df   : > { %v1528_v22 = vmul.f32 %v7014_v23, %v1310_v52  ;;  %v1314_v4 = vmax.f32 %v1186_v43, 0.0 }
 0x1e0   : > { %v1183_v13 = vsub.f32 1.0, %v1055_v51  ;;  %v1057_v9 = vand.u32 2147483647, %v929_v45  ;;  %v1188_v16 = vsub.f32 1.0, %v1060_v3 }
 0x1e2   : > { %1698 = vadd.xlane.f32.xlu0 %v1521_v36  ;;  %1700 = vadd.xlane.f32.xlu1 %v1522_v21  ;;  %v7020_v36 = vld [vmem:[#allocation92_spill] sm:$0xff]  ;;  %v1311_v55 = vmax.f32 %v1183_v13, 0.0  ;;  %v5197_v51 = vpop.permute.xlu1 %842  ;;  %v1185_v45 = vsub.f32 1.0, %v1057_v9  ;;  %v1061_v13 = vand.u32 2147483647, %v933_v0  ;;  %v1316_v43 = vmax.f32 %v1188_v16, 0.0 }
 0x1e3   : > { %v931_v21 = vsub.f32 %v4906_v48, %v7020_v36  ;;  %7024 = vst [vmem:[#allocation130_spill] sm:$0xff] %v5197_v51  ;;  %v1062_v9 = vand.u32 2147483647, %v934_v58 }
 0x1e4   : > { %v1313_v36 = vmax.f32 %v1185_v45, 0.0  ;;  %v1529_v51 = vmul.f32 %v7014_v23, %v1311_v55  ;;  %v1189_v0 = vsub.f32 1.0, %v1061_v13 }
 0x1e5   : > { %v1190_v45 = vsub.f32 1.0, %v1062_v9  ;;  %v7034_v9 = vld [vmem:[#allocation100_spill] sm:$0xff] }
 0x1e6   : > { %1702 = vadd.xlane.f32.xlu0 %v1523_v34  ;;  %1704 = vadd.xlane.f32.xlu1 %v1524_v1  ;;  %v1059_v34 = vand.u32 2147483647, %v931_v21  ;;  %v1312_v1 = vmax.f32 %v1184_v60, 0.0  ;;  %v5205_v21 = vpop.permute.xlu0 %854  ;;  %v7028_v60 = vld [vmem:[#allocation99_spill] sm:$0xff]  ;;  %v5210_v28 = vpop.permute.xlu1 %850  ;;  %v1531_v55 = vmul.f32 %v7014_v23, %v1313_v36  ;;  %v939_v36 = vsub.f32 %v4906_v48, %v7034_v9 }
 0x1e7   : > { %7027 = vst [vmem:[#allocation131_spill] sm:$0xff] %v5205_v21  ;;  %v936_v59 = vsub.f32 %v4906_v48, %v7028_v60  ;;  %7029 = vst [vmem:[#allocation132_spill] sm:$0xff] %v5210_v28  ;;  %v7031_v21 = vld [vmem:[#allocation101_spill] sm:$0xff]  ;;  %v1532_v28 = vmul.f32 %v7014_v23, %v1314_v4  ;;  %v1318_v13 = vmax.f32 %v1190_v45, 0.0 }
 0x1e8   : > { %v1530_v52 = vmul.f32 %v7014_v23, %v1312_v1  ;;  %v938_v60 = vsub.f32 %v4906_v48, %v7031_v21  ;;  %v7035_v21 = vld [vmem:[#allocation102_spill] sm:$0xff] }
 0x1e9   : > { %v1064_v3 = vand.u32 2147483647, %v936_v59  ;;  %v940_v4 = vsub.f32 %v4906_v48, %v7035_v21 }
 0x1ea   : > { %1706 = vadd.xlane.f32.xlu0 %v1525_v49  ;;  %1708 = vadd.xlane.f32.xlu1 %v1526_v20  ;;  %v7026_v49 = vld [vmem:[#allocation96_spill] sm:$0xff]  ;;  %v1187_v20 = vsub.f32 1.0, %v1059_v34  ;;  %v7030_v34 = vld [vmem:[#allocation98_spill] sm:$0xff]  ;;  %v5221_v1 = vpop.permute.xlu1 %858 }
 0x1eb   : > { %v935_v29 = vsub.f32 %v4906_v48, %v7026_v49  ;;  %v937_v58 = vsub.f32 %v4906_v48, %v7030_v34  ;;  %v5219_v49 = vpop.permute.xlu0 %862  ;;  %7033 = vst [vmem:[#allocation134_spill] sm:$0xff] %v5221_v1  ;;  %v1192_v59 = vsub.f32 1.0, %v1064_v3  ;;  %v7038_v1 = vld [vmem:[#allocation104_spill] sm:$0xff]  ;;  %v1068_v21 = vand.u32 2147483647, %v940_v4 }
 0x1ec   : > { %7032 = vst [vmem:[#allocation133_spill] sm:$0xff] %v5219_v49  ;;  %v1534_v49 = vmul.f32 %v7014_v23, %v1316_v43  ;;  %v7040_v43 = vld [vmem:[#allocation19_spill] sm:$0xff] }
 0x1ed   : > { %v1320_v3 = vmax.f32 %v1192_v59, 0.0  ;;  %v1196_v59 = vsub.f32 1.0, %v1068_v21 }
 0x1ee   : > { %1710 = vadd.xlane.f32.xlu0 %v1527_v17  ;;  %1712 = vadd.xlane.f32.xlu1 %v1528_v22  ;;  %v1063_v17 = vand.u32 2147483647, %v935_v29  ;;  %v1315_v22 = vmax.f32 %v1187_v20, 0.0  ;;  %v1065_v20 = vand.u32 2147483647, %v937_v58  ;;  %v5236_v34 = vpop.permute.xlu1 %866 }
 0x1ef   : > { %v1067_v58 = vand.u32 2147483647, %v939_v36  ;;  %7039 = vst [vmem:[#allocation136_spill] sm:$0xff] %v5236_v34 }
 0x1f0   : > { %v1191_v29 = vsub.f32 1.0, %v1063_v17  ;;  %v1533_v16 = vmul.f32 %v7014_v23, %v1315_v22  ;;  %v1193_v45 = vsub.f32 1.0, %v1065_v20  ;;  %v942_v22 = vsub.f32 %v4906_v48, %v7038_v1 }
 0x1f1   : > { %v1195_v36 = vsub.f32 1.0, %v1067_v58 }
 0x1f2   : > { %1714 = vadd.xlane.f32.xlu0 %v1529_v51  ;;  %1716 = vadd.xlane.f32.xlu1 %v1530_v52  ;;  %v1317_v51 = vmax.f32 %v1189_v0, 0.0  ;;  %v1066_v52 = vand.u32 2147483647, %v938_v60  ;;  %v1319_v17 = vmax.f32 %v1191_v29, 0.0  ;;  %v1321_v20 = vmax.f32 %v1193_v45, 0.0 }
 0x1f3   : > { %v1070_v1 = vand.u32 2147483647, %v942_v22  ;;  %v1323_v45 = vmax.f32 %v1195_v36, 0.0  ;;  %v7046_v22 = vld [vmem:[#allocation109_spill] sm:$0xff] }
 0x1f4   : > { %v1535_v60 = vmul.f32 %v7014_v23, %v1317_v51  ;;  %v1194_v9 = vsub.f32 1.0, %v1066_v52  ;;  %v1537_v23 = vmul.f32 %v7040_v43, %v1319_v17  ;;  %v7043_v52 = vld [vmem:[#allocation107_spill] sm:$0xff]  ;;  %v945_v17 = vsub.f32 %v4906_v48, %v7046_v22 }
 0x1f5   : > { %v944_v4 = vsub.f32 %v4906_v48, %v7043_v52  ;;  %v1198_v58 = vsub.f32 1.0, %v1070_v1  ;;  %v1539_v21 = vmul.f32 %v7040_v43, %v1321_v20  ;;  %v7047_v52 = vld [vmem:[#allocation108_spill] sm:$0xff]  ;;  %v1541_v20 = vmul.f32 %v7040_v43, %v1323_v45 }
 0x1f6   : > { %1718 = vadd.xlane.f32.xlu0 %v1531_v55  ;;  %1720 = vadd.xlane.f32.xlu1 %v1532_v28  ;;  %v7037_v55 = vld [vmem:[#allocation103_spill] sm:$0xff]  ;;  %v1322_v51 = vmax.f32 %v1194_v9, 0.0  ;;  %v1324_v9 = vmax.f32 %v1196_v59, 0.0  ;;  %v1073_v1 = vand.u32 2147483647, %v945_v17  ;;  %v7054_v45 = vld [vmem:[#allocation112_spill] sm:$0xff] }
 0x1f7   : > { %v941_v28 = vsub.f32 %v4906_v48, %v7037_v55  ;;  %v1326_v36 = vmax.f32 %v1198_v58, 0.0 }
 0x1f8   : > { %v1201_v17 = vsub.f32 1.0, %v1073_v1 }
 0x1f9   : > { %v1069_v29 = vand.u32 2147483647, %v941_v28 }
 0x1fa   : > { %1722 = vadd.xlane.f32.xlu0 %v1533_v16  ;;  %1724 = vadd.xlane.f32.xlu1 %v1534_v49  ;;  %v1536_v16 = vmul.f32 %v7040_v43, %v1318_v13  ;;  %v1538_v13 = vmul.f32 %v7040_v43, %v1320_v3  ;;  %v946_v3 = vsub.f32 %v4906_v48, %v7047_v52 }
 0x1fb   : > { %v1197_v28 = vsub.f32 1.0, %v1069_v29 }
 0x1fe   : > { %1726 = vadd.xlane.f32.xlu0 %v1535_v60  ;;  %1728 = vadd.xlane.f32.xlu1 %v1536_v16 }
 0x202   : > { %1730 = vadd.xlane.f32.xlu0 %v1537_v23  ;;  %1732 = vadd.xlane.f32.xlu1 %v1538_v13  ;;  %v7049_v13 = vld [vmem:[#allocation111_spill] sm:$0xff] }
 0x203   : > { %v947_v22 = vsub.f32 %v4906_v48, %v7049_v13 }
 0x206   : > { %1734 = vadd.xlane.f32.xlu0 %v1539_v21  ;;  %v1075_v21 = vand.u32 2147483647, %v947_v22  ;;  %v1329_v22 = vmax.f32 %v1201_v17, 0.0  ;;  %v953_v17 = vsub.f32 %v4906_v48, %v4960_v5 }
 0x207   : > { %v5229_v0 = vpop.xlane.xlu0 %1600 }
 0x208   : > { %7036 = vst [vmem:[#allocation135_spill] sm:$0xff] %v5229_v0  ;;  %v7041_v0 = vld [vmem:[#allocation106_spill] sm:$0xff] }
 0x209   : > { %v943_v55 = vsub.f32 %v4906_v48, %v7041_v0 }
 0x20a   : > { %1738 = vadd.xlane.f32.xlu0 %v1541_v20 }
 0x20b   : > { %v5241_v49 = vpop.xlane.xlu0 %1604  ;;  %v5247_v60 = vpop.xlane.xlu1 %1602  ;;  %v1071_v34 = vand.u32 2147483647, %v943_v55  ;;  %v1325_v55 = vmax.f32 %v1197_v28, 0.0 }
 0x20c   : > { %7042 = vst [vmem:[#allocation19_spill] sm:$0xff] %v5241_v49  ;;  %7044 = vst [vmem:[#allocation137_spill] sm:$0xff] %v5247_v60  ;;  %v1072_v49 = vand.u32 2147483647, %v944_v4  ;;  %v1540_v60 = vmul.f32 %v7040_v43, %v1322_v51  ;;  %v1074_v4 = vand.u32 2147483647, %v946_v3  ;;  %v1542_v51 = vmul.f32 %v7040_v43, %v1324_v9 }
 0x20d   : > { %v1199_v29 = vsub.f32 1.0, %v1071_v34  ;;  %v7052_v34 = vld [vmem:[#allocation113_spill] sm:$0xff]  ;;  %v1543_v3 = vmul.f32 %v7040_v43, %v1325_v55 }
 0x20e   : > { %1736 = vadd.xlane.f32.xlu1 %v1540_v60  ;;  %v1200_v59 = vsub.f32 1.0, %v1072_v49  ;;  %v949_v60 = vsub.f32 %v4906_v48, %v7052_v34  ;;  %v950_v49 = vsub.f32 %v4906_v48, %v7054_v45  ;;  %v1202_v13 = vsub.f32 1.0, %v1074_v4 }
 0x20f   : > { %v5249_v16 = vpop.xlane.xlu0 %1606  ;;  %v5257_v23 = vpop.xlane.xlu1 %1608  ;;  %v1327_v28 = vmax.f32 %v1199_v29, 0.0  ;;  %1742 = vadd.xlane.f32.xlu0 %v1543_v3  ;;  %v1203_v34 = vsub.f32 1.0, %v1075_v21 }
 0x210   : > { %7045 = vst [vmem:[#allocation138_spill] sm:$0xff] %v5249_v16  ;;  %7048 = vst [vmem:[#allocation139_spill] sm:$0xff] %v5257_v23  ;;  %v7050_v16 = vld [vmem:[#allocation110_spill] sm:$0xff]  ;;  %v1077_v29 = vand.u32 2147483647, %v949_v60 }
 0x211   : > { %v948_v52 = vsub.f32 %v4906_v48, %v7050_v16  ;;  %v1328_v16 = vmax.f32 %v1200_v59, 0.0  ;;  %v1545_v55 = vmul.f32 %v7040_v43, %v1327_v28  ;;  %v1330_v59 = vmax.f32 %v1202_v13, 0.0 }
 0x212   : > { %1740 = vadd.xlane.f32.xlu1 %v1542_v51  ;;  %v951_v51 = vsub.f32 %v4906_v48, %v4947_v37  ;;  %v1205_v60 = vsub.f32 1.0, %v1077_v29  ;;  %v1547_v28 = vmul.f32 %v7040_v43, %v1329_v22  ;;  %v955_v22 = vsub.f32 %v4906_v48, %v4970_v6 }
 0x213   : > { %v5265_v0 = vpop.xlane.xlu0 %1610  ;;  %v5269_v58 = vpop.xlane.xlu1 %1612  ;;  %v1076_v9 = vand.u32 2147483647, %v948_v52  ;;  %v7057_v52 = vld [vmem:[#allocation114_spill] sm:$0xff]  ;;  %1746 = vadd.xlane.f32.xlu0 %v1545_v55 }
 0x214   : > { %7051 = vst [vmem:[#allocation140_spill] sm:$0xff] %v5265_v0  ;;  %7053 = vst [vmem:[#allocation141_spill] sm:$0xff] %v5269_v58  ;;  %v1544_v0 = vmul.f32 %v7040_v43, %v1326_v36  ;;  %v1078_v58 = vand.u32 2147483647, %v950_v49  ;;  %v952_v36 = vsub.f32 %v4906_v48, %v7057_v52  ;;  %v1079_v3 = vand.u32 2147483647, %v951_v51 }
 0x215   : > { %v1204_v4 = vsub.f32 1.0, %v1076_v9  ;;  %v1548_v9 = vmul.f32 %v7040_v43, %v1330_v59  ;;  %v1081_v51 = vand.u32 2147483647, %v953_v17  ;;  %v956_v59 = vsub.f32 %v4906_v48, %v4967_v15 }
 0x216   : > { %1744 = vadd.xlane.f32.xlu1 %v1544_v0  ;;  %v1331_v0 = vmax.f32 %v1203_v34, 0.0  ;;  %v1080_v49 = vand.u32 2147483647, %v952_v36  ;;  %v1207_v29 = vsub.f32 1.0, %v1079_v3 }
 0x217   : > { %v5275_v20 = vpop.xlane.xlu0 %1614  ;;  %v5279_v1 = vpop.xlane.xlu1 %1616  ;;  %v1332_v21 = vmax.f32 %v1204_v4, 0.0  ;;  %1750 = vadd.xlane.f32.xlu0 %v1547_v28  ;;  %v1209_v17 = vsub.f32 1.0, %v1081_v51  ;;  %v1083_v28 = vand.u32 2147483647, %v955_v22  ;;  %v959_v51 = vsub.f32 %v4906_v48, %v4995_v10 }
 0x218   : > { %7055 = vst [vmem:[#allocation112_spill] sm:$0xff] %v5275_v20  ;;  %7056 = vst [vmem:[#allocation142_spill] sm:$0xff] %v5279_v1  ;;  %v1546_v20 = vmul.f32 %v7040_v43, %v1328_v16  ;;  %v1206_v1 = vsub.f32 1.0, %v1078_v58  ;;  %v954_v16 = vsub.f32 %v4906_v48, %v4955_v41  ;;  %v1549_v55 = vmul.f32 %v7040_v43, %v1331_v0 }
 0x219   : > { %v1208_v36 = vsub.f32 1.0, %v1080_v49  ;;  %v1335_v3 = vmax.f32 %v1207_v29, 0.0  ;;  %v958_v0 = vsub.f32 %v4906_v48, %v4978_v12  ;;  %v1337_v22 = vmax.f32 %v1209_v17, 0.0 }
 0x21a   : > { %1748 = vadd.xlane.f32.xlu1 %v1546_v20  ;;  %v1333_v20 = vmax.f32 %v1205_v60, 0.0  ;;  %v1334_v58 = vmax.f32 %v1206_v1, 0.0  ;;  %v1550_v60 = vmul.f32 %v7040_v43, %v1332_v21  ;;  %v957_v1 = vsub.f32 %v4906_v48, %v4983_v62 }
 0x21b   : > { %v5285_v23 = vpop.xlane.xlu0 %1618  ;;  %v5290_v13 = vpop.xlane.xlu1 %1620  ;;  %1754 = vadd.xlane.f32.xlu0 %v1549_v55  ;;  %v1086_v12 = vand.u32 2147483647, %v958_v0 }
 0x21c   : > { %7058 = vst [vmem:[#allocation114_spill] sm:$0xff] %v5285_v23  ;;  %7059 = vst [vmem:[#allocation143_spill] sm:$0xff] %v5290_v13  ;;  %v1082_v13 = vand.u32 2147483647, %v954_v16  ;;  %v1336_v16 = vmax.f32 %v1208_v36, 0.0  ;;  %v7063_v23 = vld [vmem:[#allocation21_spill] sm:$0xff] }
 0x21d   : > { %v1552_v21 = vmul.f32 %v7063_v23, %v1334_v58  ;;  %v1085_v29 = vand.u32 2147483647, %v957_v1  ;;  %v960_v58 = vsub.f32 %v4906_v48, %v4991_v19  ;;  %v1555_v0 = vmul.f32 %v7063_v23, %v1337_v22 }
 0x21e   : > { %1752 = vadd.xlane.f32.xlu1 %v1548_v9  ;;  %v1551_v9 = vmul.f32 %v7040_v43, %v1333_v20  ;;  %v1553_v43 = vmul.f32 %v7063_v23, %v1335_v3  ;;  %v961_v3 = vsub.f32 %v4906_v48, %v5009_v8  ;;  %v963_v22 = vsub.f32 %v4906_v48, %v5023_v50 }
 0x21f   : > { %v5295_v34 = vpop.xlane.xlu0 %1622  ;;  %v5300_v4 = vpop.xlane.xlu1 %1624  ;;  %v1213_v1 = vsub.f32 1.0, %v1085_v29 }
 0x220   : > { %7060 = vst [vmem:[#allocation144_spill] sm:$0xff] %v5295_v34  ;;  %7061 = vst [vmem:[#allocation145_spill] sm:$0xff] %v5300_v4  ;;  %v1210_v4 = vsub.f32 1.0, %v1082_v13  ;;  %v1084_v34 = vand.u32 2147483647, %v956_v59  ;;  %1758 = vadd.xlane.f32.xlu0 %v1551_v9  ;;  %v1554_v59 = vmul.f32 %v7063_v23, %v1336_v16 }
 0x222   : > { %1756 = vadd.xlane.f32.xlu1 %v1550_v60  ;;  %v1211_v60 = vsub.f32 1.0, %v1083_v28  ;;  %v1338_v36 = vmax.f32 %v1210_v4, 0.0  ;;  %v1212_v13 = vsub.f32 1.0, %v1084_v34  ;;  %v1214_v28 = vsub.f32 1.0, %v1086_v12 }
 0x223   : > { %v5310_v49 = vpop.xlane.xlu0 %1626  ;;  %v5313_v55 = vpop.xlane.xlu1 %1628  ;;  %v1088_v34 = vand.u32 2147483647, %v960_v58 }
 0x224   : > { %7062 = vst [vmem:[#allocation146_spill] sm:$0xff] %v5310_v49  ;;  %7064 = vst [vmem:[#allocation21_spill] sm:$0xff] %v5313_v55  ;;  %1762 = vadd.xlane.f32.xlu0 %v1553_v43  ;;  %v1087_v55 = vand.u32 2147483647, %v959_v51  ;;  %v1339_v17 = vmax.f32 %v1211_v60, 0.0  ;;  %v1340_v4 = vmax.f32 %v1212_v13, 0.0  ;;  %v1556_v16 = vmul.f32 %v7063_v23, %v1338_v36 }
 0x225   : > { %v1341_v51 = vmax.f32 %v1213_v1, 0.0  ;;  %v1342_v12 = vmax.f32 %v1214_v28, 0.0  ;;  %v1089_v43 = vand.u32 2147483647, %v961_v3  ;;  %v1216_v58 = vsub.f32 1.0, %v1088_v34 }
 0x226   : > { %1760 = vadd.xlane.f32.xlu1 %v1552_v21  ;;  %v962_v21 = vsub.f32 %v4906_v48, %v5003_v24  ;;  %v1215_v60 = vsub.f32 1.0, %v1087_v55  ;;  %v1557_v13 = vmul.f32 %v7063_v23, %v1339_v17  ;;  %v964_v36 = vsub.f32 %v4906_v48, %v5018_v42 }
 0x227   : > { %v5318_v20 = vpop.xlane.xlu0 %1630  ;;  %v5323_v9 = vpop.xlane.xlu1 %1632  ;;  %v1558_v49 = vmul.f32 %v7063_v23, %v1340_v4  ;;  %v965_v28 = vsub.f32 %v4906_v48, %v5035_v27  ;;  %v1217_v3 = vsub.f32 1.0, %v1089_v43  ;;  %v966_v17 = vsub.f32 %v4906_v48, %v5031_v30 }
 0x228   : > { %7065 = vst [vmem:[#allocation147_spill] sm:$0xff] %v5318_v20  ;;  %1766 = vadd.xlane.f32.xlu0 %v1555_v0  ;;  %v1343_v55 = vmax.f32 %v1215_v60, 0.0  ;;  %v1559_v34 = vmul.f32 %v7063_v23, %v1341_v51  ;;  %v1092_v4 = vand.u32 2147483647, %v964_v36  ;;  %v1560_v50 = vmul.f32 %v7063_v23, %v1342_v12 }
 0x229   : > { %v1093_v60 = vand.u32 2147483647, %v965_v28  ;;  %v967_v27 = vsub.f32 %v4906_v48, %v5045_v47  ;;  %v1345_v43 = vmax.f32 %v1217_v3, 0.0  ;;  %v1094_v24 = vand.u32 2147483647, %v966_v17 }
 0x22a   : > { %1764 = vadd.xlane.f32.xlu1 %v1554_v59  ;;  %v1090_v59 = vand.u32 2147483647, %v962_v21  ;;  %v1344_v21 = vmax.f32 %v1216_v58, 0.0  ;;  %v1561_v51 = vmul.f32 %v7063_v23, %v1343_v55  ;;  %v968_v12 = vsub.f32 %v4906_v48, %v5043_v35 }
 0x22b   : > { %v5331_v20 = vpop.xlane.xlu0 %1634  ;;  %v5333_v29 = vpop.xlane.xlu1 %1636  ;;  %v1095_v8 = vand.u32 2147483647, %v967_v27  ;;  %v969_v55 = vsub.f32 %v4906_v48, %v5059_v18 }
 0x22c   : > { %1770 = vadd.xlane.f32.xlu0 %v1557_v13  ;;  %v1218_v42 = vsub.f32 1.0, %v1090_v59  ;;  %v1220_v59 = vsub.f32 1.0, %v1092_v4  ;;  %v1562_v36 = vmul.f32 %v7063_v23, %v1344_v21  ;;  %v1096_v4 = vand.u32 2147483647, %v968_v12 }
 0x22d   : > { %v970_v21 = vsub.f32 %v4906_v48, %v5054_v26  ;;  %v1223_v27 = vsub.f32 1.0, %v1095_v8 }
 0x22e   : > { %1768 = vadd.xlane.f32.xlu1 %v1556_v16  ;;  %v1091_v16 = vand.u32 2147483647, %v963_v22  ;;  %v1346_v58 = vmax.f32 %v1218_v42, 0.0  ;;  %v1563_v42 = vmul.f32 %v7063_v23, %v1345_v43  ;;  %v1348_v17 = vmax.f32 %v1220_v59, 0.0 }
 0x22f   : > { %v5341_v0 = vpop.xlane.xlu0 %1638  ;;  %v5343_v1 = vpop.xlane.xlu1 %1640  ;;  %v1224_v12 = vsub.f32 1.0, %v1096_v4  ;;  %v1351_v8 = vmax.f32 %v1223_v27, 0.0 }
 0x230   : > { %7066 = vst [vmem:[#allocation148_spill] sm:$0xff] %v5343_v1  ;;  %1774 = vadd.xlane.f32.xlu0 %v1559_v34  ;;  %v1219_v22 = vsub.f32 1.0, %v1091_v16  ;;  %v1221_v34 = vsub.f32 1.0, %v1093_v60  ;;  %v1222_v16 = vsub.f32 1.0, %v1094_v24  ;;  %v1097_v24 = vand.u32 2147483647, %v969_v55 }
 0x232   : > { %1772 = vadd.xlane.f32.xlu1 %v1558_v49  ;;  %v1347_v3 = vmax.f32 %v1219_v22, 0.0  ;;  %v1349_v60 = vmax.f32 %v1221_v34, 0.0  ;;  %v1350_v22 = vmax.f32 %v1222_v16, 0.0  ;;  %v1566_v34 = vmul.f32 %v7063_v23, %v1348_v17 }
 0x233   : > { %v5351_v13 = vpop.xlane.xlu0 %1642  ;;  %v5355_v49 = vpop.xlane.xlu1 %1644  ;;  %v973_v16 = vsub.f32 %v4906_v48, %v5081_v14 }
 0x234   : > { %7067 = vst [vmem:[#allocation149_spill] sm:$0xff] %v5351_v13  ;;  %7068 = vst [vmem:[#allocation150_spill] sm:$0xff] %v5355_v49  ;;  %1778 = vadd.xlane.f32.xlu0 %v1561_v51  ;;  %v1564_v51 = vmul.f32 %v7063_v23, %v1346_v58  ;;  %v1565_v43 = vmul.f32 %v7063_v23, %v1347_v3  ;;  %v972_v58 = vsub.f32 %v4906_v48, %v5067_v44 }
 0x235   : > { %v974_v3 = vsub.f32 %v4906_v48, %v5079_v32  ;;  %v1567_v4 = vmul.f32 %v7063_v23, %v1349_v60  ;;  %v1101_v49 = vand.u32 2147483647, %v973_v16 }
 0x236   : > { %1776 = vadd.xlane.f32.xlu1 %v1560_v50  ;;  %v1100_v17 = vand.u32 2147483647, %v972_v58 }
 0x237   : > { %v5361_v28 = vpop.xlane.xlu0 %1646  ;;  %v5363_v50 = vpop.xlane.xlu1 %1648  ;;  %v1229_v58 = vsub.f32 1.0, %v1101_v49 }
 0x238   : > { %7069 = vst [vmem:[#allocation151_spill] sm:$0xff] %v5361_v28  ;;  %7070 = vst [vmem:[#allocation152_spill] sm:$0xff] %v5363_v50  ;;  %1782 = vadd.xlane.f32.xlu0 %v1563_v42  ;;  %v971_v50 = vsub.f32 %v4906_v48, %v5071_v63  ;;  %v1098_v28 = vand.u32 2147483647, %v970_v21  ;;  %v1225_v42 = vsub.f32 1.0, %v1097_v24  ;;  %v1228_v60 = vsub.f32 1.0, %v1100_v17 }
 0x239   : > { %v1357_v49 = vmax.f32 %v1229_v58, 0.0 }
 0x23a   : > { %1780 = vadd.xlane.f32.xlu1 %v1562_v36  ;;  %v1353_v24 = vmax.f32 %v1225_v42, 0.0 }
 0x23b   : > { %v5371_v36 = vpop.xlane.xlu0 %1650  ;;  %v5376_v59 = vpop.xlane.xlu1 %1652 }
 0x23c   : > { %7071 = vst [vmem:[#allocation153_spill] sm:$0xff] %v5371_v36  ;;  %7072 = vst [vmem:[#allocation154_spill] sm:$0xff] %v5376_v59  ;;  %1786 = vadd.xlane.f32.xlu0 %v1565_v43  ;;  %v1352_v59 = vmax.f32 %v1224_v12, 0.0  ;;  %v1226_v36 = vsub.f32 1.0, %v1098_v28  ;;  %v7075_v43 = vld [vmem:[#allocation22_spill] sm:$0xff]  ;;  %v976_v28 = vsub.f32 %v4906_v48, %v5090_v38 }
 0x23d   : > { %v1568_v27 = vmul.f32 %v7075_v43, %v1350_v22  ;;  %v1569_v13 = vmul.f32 %v7075_v43, %v1351_v8  ;;  %v977_v8 = vsub.f32 %v4906_v48, %v5107_v39 }
 0x23e   : > { %1784 = vadd.xlane.f32.xlu1 %v1564_v51  ;;  %v1099_v51 = vand.u32 2147483647, %v971_v50  ;;  %v1354_v23 = vmax.f32 %v1226_v36, 0.0  ;;  %v1570_v22 = vmul.f32 %v7075_v43, %v1352_v59  ;;  %v1104_v17 = vand.u32 2147483647, %v976_v28 }
 0x23f   : > { %v5383_v55 = vpop.xlane.xlu0 %1654  ;;  %v5388_v21 = vpop.xlane.xlu1 %1656  ;;  %v978_v59 = vsub.f32 %v4906_v48, %v5103_v2 }
 0x240   : > { %7073 = vst [vmem:[#allocation155_spill] sm:$0xff] %v5383_v55  ;;  %7074 = vst [vmem:[#allocation156_spill] sm:$0xff] %v5388_v21  ;;  %1790 = vadd.xlane.f32.xlu0 %v1567_v4  ;;  %v1227_v50 = vsub.f32 1.0, %v1099_v51  ;;  %v1102_v55 = vand.u32 2147483647, %v974_v3  ;;  %v1571_v3 = vmul.f32 %v7075_v43, %v1353_v24  ;;  %v1356_v4 = vmax.f32 %v1228_v60, 0.0 }
 0x241   : > { %v979_v24 = vsub.f32 %v4906_v48, %v5117_v11  ;;  %v1232_v60 = vsub.f32 1.0, %v1104_v17  ;;  %v1106_v28 = vand.u32 2147483647, %v978_v59  ;;  %v1575_v17 = vmul.f32 %v7075_v43, %v1357_v49 }
 0x242   : > { %1788 = vadd.xlane.f32.xlu1 %v1566_v34  ;;  %v975_v34 = vsub.f32 %v4906_v48, %v5095_v61  ;;  %v1355_v42 = vmax.f32 %v1227_v50, 0.0  ;;  %v1230_v51 = vsub.f32 1.0, %v1102_v55  ;;  %v1105_v50 = vand.u32 2147483647, %v977_v8 }
 0x243   : > { %v5394_v19 = vpop.xlane.xlu0 %1658  ;;  %v5399_v12 = vpop.xlane.xlu1 %1660  ;;  %v1360_v59 = vmax.f32 %v1232_v60, 0.0 }
 0x244   : > { %7076 = vst [vmem:[#allocation22_spill] sm:$0xff] %v5394_v19  ;;  %7077 = vst [vmem:[#allocation157_spill] sm:$0xff] %v5399_v12  ;;  %1794 = vadd.xlane.f32.xlu0 %v1569_v13  ;;  %v1103_v16 = vand.u32 2147483647, %v975_v34  ;;  %v1358_v55 = vmax.f32 %v1230_v51, 0.0  ;;  %v981_v51 = vsub.f32 %v4906_v48, %v5133_v40  ;;  %v1233_v8 = vsub.f32 1.0, %v1105_v50 }
 0x245   : > { %v983_v50 = vsub.f32 %v4906_v48, %v5143_v33 }
 0x246   : > { %1792 = vadd.xlane.f32.xlu1 %v1568_v27  ;;  %v1572_v27 = vmul.f32 %v7075_v43, %v1354_v23  ;;  %v1231_v34 = vsub.f32 1.0, %v1103_v16  ;;  %v1574_v23 = vmul.f32 %v7075_v43, %v1356_v4  ;;  %v1576_v19 = vmul.f32 %v7075_v43, %v1358_v55 }
 0x247   : > { %v5404_v36 = vpop.xlane.xlu0 %1662  ;;  %v5409_v13 = vpop.xlane.xlu1 %1664  ;;  %v1109_v21 = vand.u32 2147483647, %v981_v51  ;;  %v1578_v55 = vmul.f32 %v7075_v43, %v1360_v59  ;;  %v7082_v51 = vld [vmem:[#allocation17_spill] sm:$0xff]  ;;  %v1111_v2 = vand.u32 2147483647, %v983_v50  ;;  %v986_v59 = vsub.f32 %v4906_v48, %v5153_v54 }
 0x248   : > { %7078 = vst [vmem:[#allocation158_spill] sm:$0xff] %v5404_v36  ;;  %1798 = vadd.xlane.f32.xlu0 %v1571_v3  ;;  %v980_v36 = vsub.f32 %v4906_v48, %v5115_v53  ;;  %v1359_v16 = vmax.f32 %v1231_v34, 0.0  ;;  %v1107_v3 = vand.u32 2147483647, %v979_v24  ;;  %v1361_v24 = vmax.f32 %v1233_v8, 0.0 }
 0x249   : > { %v1985_v53 = vadd.s32 128, %v7082_v51  ;;  %v1237_v11 = vsub.f32 1.0, %v1109_v21  ;;  %v1114_v38 = vand.u32 2147483647, %v986_v59 }
 0x24a   : > { %1796 = vadd.xlane.f32.xlu1 %v1570_v22  ;;  %v1573_v22 = vmul.f32 %v7075_v43, %v1355_v42  ;;  %v982_v42 = vsub.f32 %v4906_v48, %v5130_v25  ;;  %v1108_v4 = vand.u32 2147483647, %v980_v36  ;;  %v1577_v49 = vmul.f32 %v7075_v43, %v1359_v16 }
 0x24b   : > { %v5417_v12 = vpop.xlane.xlu0 %1666  ;;  %v5419_v58 = vpop.xlane.xlu1 %1668  ;;  %v984_v36 = vsub.f32 %v4906_v48, %v5141_v31  ;;  %v985_v16 = vsub.f32 %v4906_v48, %v5158_v57  ;;  %v5450_v50 = vcvt.s32.f32 %v1985_v53 }
 0x24c   : > { %1802 = vadd.xlane.f32.xlu0 %v1573_v22  ;;  %v1110_v40 = vand.u32 2147483647, %v982_v42  ;;  %v1579_v42 = vmul.f32 %v7075_v43, %v1361_v24  ;;  %v987_v24 = vsub.f32 %v4906_v48, %v5171_v7 }
 0x24d   : > { %v1113_v39 = vand.u32 2147483647, %v985_v16 }
 0x24e   : > { %1800 = vadd.xlane.f32.xlu1 %v1572_v27  ;;  %v1234_v27 = vsub.f32 1.0, %v1106_v28  ;;  %v1236_v28 = vsub.f32 1.0, %v1108_v4  ;;  %v1112_v4 = vand.u32 2147483647, %v984_v36 }
 0x24f   : > { %v5427_v22 = vpop.xlane.xlu0 %1670  ;;  %v5429_v34 = vpop.xlane.xlu1 %1672  ;;  %v1241_v16 = vsub.f32 1.0, %v1113_v39 }
 0x250   : > { %7079 = vst [vmem:[#allocation159_spill] sm:$0xff] %v5427_v22  ;;  %1806 = vadd.xlane.f32.xlu0 %v1575_v17  ;;  %7080 = vst [vmem:[#allocation160_spill] sm:$0xff] %v5429_v34  ;;  %v1362_v60 = vmax.f32 %v1234_v27, 0.0  ;;  %v1364_v27 = vmax.f32 %v1236_v28, 0.0  ;;  %v1240_v36 = vsub.f32 1.0, %v1112_v4 }
 0x252   : > { %1804 = vadd.xlane.f32.xlu1 %v1574_v23  ;;  %v1235_v23 = vsub.f32 1.0, %v1107_v3  ;;  %v1238_v3 = vsub.f32 1.0, %v1110_v40  ;;  %v1582_v53 = vmul.f32 %v7075_v43, %v1364_v27 }
 0x253   : > { %v5437_v17 = vpop.xlane.xlu0 %1674 }
 0x254   : > { %1810 = vadd.xlane.f32.xlu0 %v1577_v49  ;;  %7081 = vst [vmem:[#allocation161_spill] sm:$0xff] %v5437_v17  ;;  %v1363_v8 = vmax.f32 %v1235_v23, 0.0  ;;  %v1580_v49 = vmul.f32 %v7075_v43, %v1362_v60  ;;  %v1239_v23 = vsub.f32 1.0, %v1111_v2  ;;  %v988_v60 = vsub.f32 %v4906_v48, %v5167_v46 }
 0x256   : > { %1808 = vadd.xlane.f32.xlu1 %v1576_v19  ;;  %v5440_v19 = vpop.xlane.xlu1 %1676  ;;  %v1581_v28 = vmul.f32 %v7075_v43, %v1363_v8  ;;  %v989_v8 = vsub.f32 %v4906_v48, %v5184_v56  ;;  %v1116_v27 = vand.u32 2147483647, %v988_v60 }
 0x257   : > { %7083 = vst [vmem:[#allocation17_spill] sm:$0xff] %v5440_v19  ;;  %v5448_v21 = vpop.xlane.xlu0 %1678  ;;  %v1366_v19 = vmax.f32 %v1238_v3, 0.0 }
 0x258   : > { %1814 = vadd.xlane.f32.xlu0 %v1579_v42  ;;  %7084 = vst [vmem:[#allocation162_spill] sm:$0xff] %v5448_v21  ;;  %v1367_v42 = vmax.f32 %v1239_v23, 0.0  ;;  %v1242_v21 = vsub.f32 1.0, %v1114_v38  ;;  %v7090_v23 = vld [vmem:[#allocation35_spill] sm:$0xff]  ;;  %v1117_v34 = vand.u32 2147483647, %v989_v8 }
 0x25a   : > { %1812 = vadd.xlane.f32.xlu1 %v1578_v55  ;;  %v1365_v55 = vmax.f32 %v1237_v11, 0.0  ;;  %v5452_v40 = vpop.xlane.xlu1 %1680  ;;  %v7086_v11 = vld [vmem:[#allocation33_spill] sm:$0xff] }
 0x25b   : > { %7085 = vst [vmem:[#allocation163_spill] sm:$0xff] %v5452_v40  ;;  %v1987_v2 = vsub.f32 %v5450_v50, %v7086_v11  ;;  %v5462_v3 = vpop.xlane.xlu0 %1682  ;;  %v1368_v40 = vmax.f32 %v1240_v36, 0.0  ;;  %v1370_v36 = vmax.f32 %v1242_v21, 0.0 }
 0x25c   : > { %1818 = vadd.xlane.f32.xlu0 %v1581_v28  ;;  %7087 = vst [vmem:[#allocation33_spill] sm:$0xff] %v5462_v3  ;;  %v1583_v59 = vmul.f32 %v7075_v43, %v1365_v55  ;;  %v7089_v28 = vld [vmem:[#allocation24_spill] sm:$0xff]  ;;  %v7093_v55 = vld [vmem:[#allocation49_spill] sm:$0xff] }
 0x25d   : > { %v1584_v17 = vmul.f32 %v7089_v28, %v1366_v19  ;;  %v2115_v11 = vand.u32 2147483647, %v1987_v2  ;;  %v1585_v43 = vmul.f32 %v7089_v28, %v1367_v42  ;;  %v2003_v38 = vsub.f32 %v5450_v50, %v7093_v55  ;;  %v7094_v2 = vld [vmem:[#allocation32_spill] sm:$0xff] }
 0x25e   : > { %1816 = vadd.xlane.f32.xlu1 %v1580_v49  ;;  %v1115_v49 = vand.u32 2147483647, %v987_v24  ;;  %v5466_v4 = vpop.xlane.xlu1 %1684  ;;  %v1369_v24 = vmax.f32 %v1241_v16, 0.0  ;;  %v1244_v19 = vsub.f32 1.0, %v1116_v27  ;;  %v1586_v60 = vmul.f32 %v7089_v28, %v1368_v40 }
 0x25f   : > { %7088 = vst [vmem:[#allocation164_spill] sm:$0xff] %v5466_v4  ;;  %v5472_v39 = vpop.xlane.xlu0 %1686  ;;  %v1245_v42 = vsub.f32 1.0, %v1117_v34  ;;  %v2243_v27 = vsub.f32 1.0, %v2115_v11  ;;  %v2131_v55 = vand.u32 2147483647, %v2003_v38 }
 0x260   : > { %1822 = vadd.xlane.f32.xlu0 %v1583_v59  ;;  %7091 = vst [vmem:[#allocation35_spill] sm:$0xff] %v5472_v39  ;;  %v1243_v3 = vsub.f32 1.0, %v1115_v49  ;;  %v7096_v49 = vld [vmem:[#allocation48_spill] sm:$0xff]  ;;  %v1587_v21 = vmul.f32 %v7089_v28, %v1369_v24  ;;  %v1372_v40 = vmax.f32 %v1244_v19, 0.0  ;;  %v7099_v39 = vld [vmem:[#allocation51_spill] sm:$0xff]  ;;  %v7100_v19 = vld [vmem:[#allocation65_spill] sm:$0xff] }
 0x261   : > { %v2004_v8 = vsub.f32 %v5450_v50, %v7096_v49  ;;  %v1373_v34 = vmax.f32 %v1245_v42, 0.0  ;;  %v2371_v11 = vmax.f32 %v2243_v27, 0.0  ;;  %v2259_v38 = vsub.f32 1.0, %v2131_v55 }
 0x262   : > { %1820 = vadd.xlane.f32.xlu1 %v1582_v53  ;;  %v1988_v53 = vsub.f32 %v5450_v50, %v7090_v23  ;;  %v5474_v61 = vpop.xlane.xlu1 %1688  ;;  %v1371_v23 = vmax.f32 %v1243_v3, 0.0  ;;  %v2005_v3 = vsub.f32 %v5450_v50, %v7099_v39 }
 0x263   : > { %7092 = vst [vmem:[#allocation165_spill] sm:$0xff] %v5474_v61  ;;  %v5482_v16 = vpop.xlane.xlu0 %1690  ;;  %v1591_v55 = vmul.f32 %v7089_v28, %v1373_v34 }
 0x264   : > { %1826 = vadd.xlane.f32.xlu0 %v1585_v43  ;;  %v2116_v59 = vand.u32 2147483647, %v1988_v53  ;;  %7095 = vst [vmem:[#allocation49_spill] sm:$0xff] %v5482_v16  ;;  %v1588_v43 = vmul.f32 %v7089_v28, %v1370_v36  ;;  %v2132_v16 = vand.u32 2147483647, %v2004_v8  ;;  %v1589_v24 = vmul.f32 %v7089_v28, %v1371_v23 }
 0x265   : > { %v2019_v36 = vsub.f32 %v5450_v50, %v7100_v19  ;;  %v2133_v42 = vand.u32 2147483647, %v2005_v3 }
 0x266   : > { %1824 = vadd.xlane.f32.xlu1 %v1584_v17  ;;  %v1989_v17 = vsub.f32 %v5450_v50, %v7094_v2  ;;  %v5486_v61 = vpop.xlane.xlu1 %1692  ;;  %v2244_v53 = vsub.f32 1.0, %v2116_v59  ;;  %v2260_v39 = vsub.f32 1.0, %v2132_v16 }
 0x267   : > { %7097 = vst [vmem:[#allocation32_spill] sm:$0xff] %v5486_v61  ;;  %v2387_v61 = vmax.f32 %v2259_v38, 0.0  ;;  %v2261_v22 = vsub.f32 1.0, %v2133_v42 }
 0x268   : > { %1830 = vadd.xlane.f32.xlu0 %v1587_v21  ;;  %v2117_v2 = vand.u32 2147483647, %v1989_v17  ;;  %v1590_v17 = vmul.f32 %v7089_v28, %v1372_v40  ;;  %v2372_v59 = vmax.f32 %v2244_v53, 0.0  ;;  %v7101_v21 = vld [vmem:[#allocation34_spill] sm:$0xff]  ;;  %v2147_v40 = vand.u32 2147483647, %v2019_v36 }
 0x269   : > { %v1990_v8 = vsub.f32 %v5450_v50, %v7101_v21  ;;  %v7106_v21 = vld [vmem:[#allocation50_spill] sm:$0xff]  ;;  %v2388_v3 = vmax.f32 %v2260_v39, 0.0  ;;  %v7109_v36 = vld [vmem:[#allocation67_spill] sm:$0xff]  ;;  %v2389_v39 = vmax.f32 %v2261_v22, 0.0  ;;  %v7116_v22 = vld [vmem:[#allocation53_spill] sm:$0xff] }
 0x26a   : > { %1828 = vadd.xlane.f32.xlu1 %v1586_v60  ;;  %v5490_v60 = vpop.xlane.xlu0 %1694  ;;  %v5494_v49 = vpop.xlane.xlu1 %1696  ;;  %v2245_v19 = vsub.f32 1.0, %v2117_v2  ;;  %v2275_v38 = vsub.f32 1.0, %v2147_v40 }
 0x26b   : > { %7098 = vst [vmem:[#allocation48_spill] sm:$0xff] %v5490_v60  ;;  %v7103_v60 = vld [vmem:[#allocation64_spill] sm:$0xff]  ;;  %v2118_v4 = vand.u32 2147483647, %v1990_v8 }
 0x26c   : > { %1834 = vadd.xlane.f32.xlu0 %v1589_v24  ;;  %v2020_v23 = vsub.f32 %v5450_v50, %v7103_v60  ;;  %v7105_v24 = vld [vmem:[#allocation23_spill] sm:$0xff]  ;;  %v2373_v2 = vmax.f32 %v2245_v19, 0.0  ;;  %v2403_v19 = vmax.f32 %v2275_v38, 0.0 }
 0x26d   : > { %v2589_v53 = vmul.f32 %v7105_v24, %v2371_v11  ;;  %v2590_v34 = vmul.f32 %v7105_v24, %v2372_v59  ;;  %v2021_v11 = vsub.f32 %v5450_v50, %v7109_v36  ;;  %v2246_v28 = vsub.f32 1.0, %v2118_v4  ;;  %v7114_v36 = vld [vmem:[#allocation80_spill] sm:$0xff] }
 0x26e   : > { %1832 = vadd.xlane.f32.xlu1 %v1588_v43  ;;  %v5502_v43 = vpop.xlane.xlu0 %1698  ;;  %v5506_v27 = vpop.xlane.xlu1 %1700  ;;  %v2148_v60 = vand.u32 2147483647, %v2020_v23  ;;  %v7112_v23 = vld [vmem:[#allocation81_spill] sm:$0xff]  ;;  %v2591_v4 = vmul.f32 %v7105_v24, %v2373_v2 }
 0x26f   : > { %7102 = vst [vmem:[#allocation51_spill] sm:$0xff] %v5502_v43  ;;  %7104 = vst [vmem:[#allocation65_spill] sm:$0xff] %v5506_v27  ;;  %v2149_v40 = vand.u32 2147483647, %v2021_v11 }
 0x270   : > { %1838 = vadd.xlane.f32.xlu0 %v1591_v55  ;;  %v7110_v55 = vld [vmem:[#allocation25_spill] sm:$0xff]  ;;  %v2276_v42 = vsub.f32 1.0, %v2148_v60  ;;  %v2007_v60 = vsub.f32 %v5450_v50, %v7116_v22 }
 0x271   : > { %v2605_v8 = vmul.f32 %v7110_v55, %v2387_v61  ;;  %v2606_v59 = vmul.f32 %v7110_v55, %v2388_v3  ;;  %v2036_v61 = vsub.f32 %v5450_v50, %v7114_v36  ;;  %v2607_v11 = vmul.f32 %v7110_v55, %v2389_v39 }
 0x272   : > { %1836 = vadd.xlane.f32.xlu1 %v1590_v17  ;;  %v2006_v17 = vsub.f32 %v5450_v50, %v7106_v21  ;;  %v5512_v16 = vpop.xlane.xlu0 %1702  ;;  %v5514_v1 = vpop.xlane.xlu1 %1704  ;;  %v2374_v36 = vmax.f32 %v2246_v28, 0.0  ;;  %v2135_v48 = vand.u32 2147483647, %v2007_v60 }
 0x273   : > { %7107 = vst [vmem:[#allocation34_spill] sm:$0xff] %v5512_v16  ;;  %7108 = vst [vmem:[#allocation64_spill] sm:$0xff] %v5514_v1  ;;  %v2035_v1 = vsub.f32 %v5450_v50, %v7112_v23  ;;  %v2164_v2 = vand.u32 2147483647, %v2036_v61  ;;  %v7123_v61 = vld [vmem:[#allocation83_spill] sm:$0xff] }
 0x274   : > { %2719 = vadd.xlane.f32.xlu0 %v2590_v34  ;;  %v2134_v21 = vand.u32 2147483647, %v2006_v17  ;;  %v7115_v17 = vld [vmem:[#allocation37_spill] sm:$0xff]  ;;  %v2263_v60 = vsub.f32 1.0, %v2135_v48  ;;  %v7128_v48 = vld [vmem:[#allocation36_spill] sm:$0xff] }
 0x275   : > { %v1991_v34 = vsub.f32 %v5450_v50, %v7115_v17  ;;  %v2163_v3 = vand.u32 2147483647, %v2035_v1 }
 0x276   : > { %2717 = vadd.xlane.f32.xlu1 %v2589_v53  ;;  %v5520_v53 = vpop.xlane.xlu0 %1706  ;;  %v5524_v16 = vpop.xlane.xlu1 %1708  ;;  %v2262_v23 = vsub.f32 1.0, %v2134_v21 }
 0x277   : > { %7111 = vst [vmem:[#allocation23_spill] sm:$0xff] %v5520_v53  ;;  %7113 = vst [vmem:[#allocation50_spill] sm:$0xff] %v5524_v16  ;;  %v2404_v16 = vmax.f32 %v2276_v42, 0.0  ;;  %v2277_v53 = vsub.f32 1.0, %v2149_v40  ;;  %v2119_v17 = vand.u32 2147483647, %v1991_v34  ;;  %v2592_v34 = vmul.f32 %v7105_v24, %v2374_v36 }
 0x278   : > { %2751 = vadd.xlane.f32.xlu0 %v2606_v59  ;;  %v7119_v59 = vld [vmem:[#allocation26_spill] sm:$0xff]  ;;  %v2291_v1 = vsub.f32 1.0, %v2163_v3  ;;  %v2292_v40 = vsub.f32 1.0, %v2164_v2  ;;  %v7125_v3 = vld [vmem:[#allocation97_spill] sm:$0xff] }
 0x279   : > { %v2621_v27 = vmul.f32 %v7119_v59, %v2403_v19  ;;  %v2622_v39 = vmul.f32 %v7119_v59, %v2404_v16  ;;  %v2405_v28 = vmax.f32 %v2277_v53, 0.0  ;;  %v2037_v19 = vsub.f32 %v5450_v50, %v7123_v61  ;;  %v7127_v61 = vld [vmem:[#allocation96_spill] sm:$0xff] }
 0x27a   : > { %2749 = vadd.xlane.f32.xlu1 %v2605_v8  ;;  %v5534_v8 = vpop.xlane.xlu0 %1710  ;;  %v5536_v38 = vpop.xlane.xlu1 %1712  ;;  %v2420_v53 = vmax.f32 %v2292_v40, 0.0  ;;  %v2052_v36 = vsub.f32 %v5450_v50, %v7127_v61  ;;  %v2391_v61 = vmax.f32 %v2263_v60, 0.0 }
 0x27b   : > { %7117 = vst [vmem:[#allocation67_spill] sm:$0xff] %v5534_v8  ;;  %7118 = vst [vmem:[#allocation25_spill] sm:$0xff] %v5536_v38  ;;  %v7121_v8 = vld [vmem:[#allocation66_spill] sm:$0xff]  ;;  %v2165_v2 = vand.u32 2147483647, %v2037_v19  ;;  %v7132_v19 = vld [vmem:[#allocation28_spill] sm:$0xff] }
 0x27c   : > { %2753 = vadd.xlane.f32.xlu0 %v2607_v11  ;;  %v2022_v21 = vsub.f32 %v5450_v50, %v7121_v8  ;;  %v2419_v8 = vmax.f32 %v2291_v1, 0.0 }
 0x27d   : > { %v2293_v38 = vsub.f32 1.0, %v2165_v2  ;;  %v7135_v2 = vld [vmem:[#allocation82_spill] sm:$0xff] }
 0x27e   : > { %2721 = vadd.xlane.f32.xlu1 %v2591_v4  ;;  %v5540_v22 = vpop.xlane.xlu0 %1714  ;;  %v2390_v4 = vmax.f32 %v2262_v23, 0.0  ;;  %v5544_v42 = vpop.xlane.xlu1 %1716  ;;  %v2150_v11 = vand.u32 2147483647, %v2022_v21  ;;  %v7129_v21 = vld [vmem:[#allocation52_spill] sm:$0xff] }
 0x27f   : > { %7120 = vst [vmem:[#allocation81_spill] sm:$0xff] %v5540_v22  ;;  %7122 = vst [vmem:[#allocation80_spill] sm:$0xff] %v5544_v42  ;;  %v2051_v42 = vsub.f32 %v5450_v50, %v7125_v3  ;;  %v2008_v1 = vsub.f32 %v5450_v50, %v7129_v21  ;;  %v2421_v60 = vmax.f32 %v2293_v38, 0.0 }
 0x280   : > { %2783 = vadd.xlane.f32.xlu0 %v2622_v39  ;;  %v2608_v16 = vmul.f32 %v7110_v55, %v2390_v4  ;;  %v1992_v39 = vsub.f32 %v5450_v50, %v7128_v48 }
 0x281   : > { %v2179_v4 = vand.u32 2147483647, %v2051_v42  ;;  %v2136_v43 = vand.u32 2147483647, %v2008_v1 }
 0x282   : > { %2781 = vadd.xlane.f32.xlu1 %v2621_v27  ;;  %v2247_v27 = vsub.f32 1.0, %v2119_v17  ;;  %v5550_v23 = vpop.xlane.xlu0 %1718  ;;  %v5554_v22 = vpop.xlane.xlu1 %1720  ;;  %v2623_v17 = vmul.f32 %v7119_v59, %v2405_v28  ;;  %v2180_v28 = vand.u32 2147483647, %v2052_v36  ;;  %v2120_v48 = vand.u32 2147483647, %v1992_v39 }
 0x283   : > { %7124 = vst [vmem:[#allocation37_spill] sm:$0xff] %v5550_v23  ;;  %7126 = vst [vmem:[#allocation53_spill] sm:$0xff] %v5554_v22  ;;  %v2278_v22 = vsub.f32 1.0, %v2150_v11  ;;  %v2637_v23 = vmul.f32 %v7132_v19, %v2419_v8  ;;  %v2307_v42 = vsub.f32 1.0, %v2179_v4  ;;  %v2038_v36 = vsub.f32 %v5450_v50, %v7135_v2  ;;  %v7137_v4 = vld [vmem:[#allocation99_spill] sm:$0xff] }
 0x284   : > { %2755 = vadd.xlane.f32.xlu0 %v2608_v16  ;;  %v2375_v3 = vmax.f32 %v2247_v27, 0.0  ;;  %v2638_v16 = vmul.f32 %v7132_v19, %v2420_v53  ;;  %v2308_v53 = vsub.f32 1.0, %v2180_v28  ;;  %v2248_v39 = vsub.f32 1.0, %v2120_v48  ;;  %v7139_v48 = vld [vmem:[#allocation39_spill] sm:$0xff] }
 0x285   : > { %v2264_v1 = vsub.f32 1.0, %v2136_v43  ;;  %v2639_v28 = vmul.f32 %v7132_v19, %v2421_v60 }
 0x286   : > { %2723 = vadd.xlane.f32.xlu1 %v2592_v34  ;;  %v5564_v34 = vpop.xlane.xlu0 %1722  ;;  %v5566_v40 = vpop.xlane.xlu1 %1724  ;;  %v2593_v8 = vmul.f32 %v7105_v24, %v2375_v3  ;;  %v2166_v3 = vand.u32 2147483647, %v2038_v36  ;;  %v2436_v2 = vmax.f32 %v2308_v53, 0.0  ;;  %v2376_v43 = vmax.f32 %v2248_v39, 0.0  ;;  %v7142_v53 = vld [vmem:[#allocation27_spill] sm:$0xff] }
 0x287   : > { %7130 = vst [vmem:[#allocation26_spill] sm:$0xff] %v5564_v34  ;;  %7131 = vst [vmem:[#allocation66_spill] sm:$0xff] %v5566_v40  ;;  %v7134_v34 = vld [vmem:[#allocation69_spill] sm:$0xff] }
 0x288   : > { %2813 = vadd.xlane.f32.xlu0 %v2637_v23  ;;  %v2023_v27 = vsub.f32 %v5450_v50, %v7134_v34  ;;  %v2609_v23 = vmul.f32 %v7110_v55, %v2391_v61  ;;  %v2435_v34 = vmax.f32 %v2307_v42, 0.0  ;;  %v2067_v61 = vsub.f32 %v5450_v50, %v7054_v45 }
 0x289   : > { %v2392_v45 = vmax.f32 %v2264_v1, 0.0  ;;  %v2654_v39 = vmul.f32 %v7142_v53, %v2436_v2  ;;  %v7146_v1 = vld [vmem:[#allocation68_spill] sm:$0xff] }
 0x28a   : > { %2785 = vadd.xlane.f32.xlu1 %v2623_v17  ;;  %v5570_v21 = vpop.xlane.xlu0 %1726  ;;  %v2406_v17 = vmax.f32 %v2278_v22, 0.0  ;;  %v5574_v11 = vpop.xlane.xlu1 %1728  ;;  %v2195_v60 = vand.u32 2147483647, %v2067_v61 }
 0x28b   : > { %7133 = vst [vmem:[#allocation83_spill] sm:$0xff] %v5570_v21  ;;  %v2053_v21 = vsub.f32 %v5450_v50, %v7137_v4  ;;  %v2653_v4 = vmul.f32 %v7142_v53, %v2435_v34  ;;  %v2594_v34 = vmul.f32 %v7105_v24, %v2376_v43 }
 0x28c   : > { %2725 = vadd.xlane.f32.xlu0 %v2593_v8  ;;  %v2624_v38 = vmul.f32 %v7119_v59, %v2406_v17  ;;  %v2068_v17 = vsub.f32 %v5450_v50, %v4947_v37  ;;  %v2323_v2 = vsub.f32 1.0, %v2195_v60 }
 0x28e   : > { %2815 = vadd.xlane.f32.xlu1 %v2638_v16  ;;  %v5580_v22 = vpop.xlane.xlu0 %1730  ;;  %v2151_v16 = vand.u32 2147483647, %v2023_v27  ;;  %v5584_v40 = vpop.xlane.xlu1 %1732  ;;  %v1993_v27 = vsub.f32 %v5450_v50, %v7139_v48  ;;  %v7143_v48 = vld [vmem:[#allocation55_spill] sm:$0xff]  ;;  %v2196_v37 = vand.u32 2147483647, %v2068_v17 }
 0x28f   : > { %7136 = vst [vmem:[#allocation97_spill] sm:$0xff] %v5580_v22  ;;  %7138 = vst [vmem:[#allocation96_spill] sm:$0xff] %v5584_v40  ;;  %v2294_v40 = vsub.f32 1.0, %v2166_v3  ;;  %v2024_v3 = vsub.f32 %v5450_v50, %v7146_v1 }
 0x290   : > { %2787 = vadd.xlane.f32.xlu0 %v2624_v38  ;;  %v2279_v8 = vsub.f32 1.0, %v2151_v16  ;;  %v2121_v38 = vand.u32 2147483647, %v1993_v27  ;;  %v2610_v27 = vmul.f32 %v7110_v55, %v2392_v45  ;;  %v2451_v45 = vmax.f32 %v2323_v2, 0.0  ;;  %v7153_v2 = vld [vmem:[#allocation29_spill] sm:$0xff] }
 0x291   : > { %v2422_v61 = vmax.f32 %v2294_v40, 0.0  ;;  %v2152_v1 = vand.u32 2147483647, %v2024_v3  ;;  %v7150_v40 = vld [vmem:[#allocation98_spill] sm:$0xff] }
 0x292   : > { %2757 = vadd.xlane.f32.xlu1 %v2609_v23  ;;  %v5592_v42 = vpop.xlane.xlu0 %1734  ;;  %v2181_v23 = vand.u32 2147483647, %v2053_v21  ;;  %v2407_v21 = vmax.f32 %v2279_v8, 0.0  ;;  %v7148_v8 = vld [vmem:[#allocation85_spill] sm:$0xff]  ;;  %v2054_v60 = vsub.f32 %v5450_v50, %v7150_v40 }
 0x293   : > { %7140 = vst [vmem:[#allocation36_spill] sm:$0xff] %v5592_v42  ;;  %v2280_v3 = vsub.f32 1.0, %v2152_v1 }
 0x294   : > { %2845 = vadd.xlane.f32.xlu0 %v2653_v4  ;;  %v2309_v42 = vsub.f32 1.0, %v2181_v23  ;;  %v2249_v4 = vsub.f32 1.0, %v2121_v38  ;;  %v2039_v23 = vsub.f32 %v5450_v50, %v7148_v8  ;;  %v2625_v43 = vmul.f32 %v7119_v59, %v2407_v21 }
 0x295   : > { %v2640_v38 = vmul.f32 %v7132_v19, %v2422_v61  ;;  %v2182_v40 = vand.u32 2147483647, %v2054_v60  ;;  %v2083_v61 = vsub.f32 %v5450_v50, %v5031_v30  ;;  %v2408_v30 = vmax.f32 %v2280_v3, 0.0 }
 0x296   : > { %2817 = vadd.xlane.f32.xlu1 %v2639_v28  ;;  %v2009_v28 = vsub.f32 %v5450_v50, %v7143_v48  ;;  %v5602_v16 = vpop.xlane.xlu0 %1738  ;;  %v2437_v17 = vmax.f32 %v2309_v42, 0.0  ;;  %v2167_v8 = vand.u32 2147483647, %v2039_v23 }
 0x297   : > { %v5596_v36 = vpop.xlane.xlu1 %1736  ;;  %7144 = vst [vmem:[#allocation28_spill] sm:$0xff] %v5602_v16 }
 0x298   : > { %7141 = vst [vmem:[#allocation52_spill] sm:$0xff] %v5596_v36  ;;  %2727 = vadd.xlane.f32.xlu0 %v2594_v34  ;;  %v2137_v48 = vand.u32 2147483647, %v2009_v28  ;;  %v2377_v28 = vmax.f32 %v2249_v4, 0.0  ;;  %v2655_v21 = vmul.f32 %v7142_v53, %v2437_v17  ;;  %v2669_v4 = vmul.f32 %v7153_v2, %v2451_v45 }
 0x299   : > { %v2084_v17 = vsub.f32 %v5450_v50, %v5045_v47  ;;  %v2211_v45 = vand.u32 2147483647, %v2083_v61  ;;  %v2626_v61 = vmul.f32 %v7119_v59, %v2408_v30 }
 0x29a   : > { %2847 = vadd.xlane.f32.xlu1 %v2654_v39  ;;  %v5610_v39 = vpop.xlane.xlu0 %1742  ;;  %v2265_v34 = vsub.f32 1.0, %v2137_v48  ;;  %v7154_v48 = vld [vmem:[#allocation38_spill] sm:$0xff] }
 0x29b   : > { %v5604_v22 = vpop.xlane.xlu1 %1740  ;;  %7147 = vst [vmem:[#allocation82_spill] sm:$0xff] %v5610_v39 }
 0x29c   : > { %7145 = vst [vmem:[#allocation69_spill] sm:$0xff] %v5604_v22  ;;  %v2324_v22 = vsub.f32 1.0, %v2196_v37  ;;  %2789 = vadd.xlane.f32.xlu0 %v2625_v43  ;;  %v2069_v37 = vsub.f32 %v5450_v50, %v7057_v52  ;;  %v1994_v43 = vsub.f32 %v5450_v50, %v7154_v48  ;;  %v2393_v23 = vmax.f32 %v2265_v34, 0.0  ;;  %v7157_v48 = vld [vmem:[#allocation54_spill] sm:$0xff] }
 0x29d   : > { %v2295_v52 = vsub.f32 1.0, %v2167_v8  ;;  %v2010_v34 = vsub.f32 %v5450_v50, %v7157_v48 }
 0x29e   : > { %2759 = vadd.xlane.f32.xlu1 %v2610_v27  ;;  %v5620_v27 = vpop.xlane.xlu0 %1746  ;;  %v2452_v42 = vmax.f32 %v2324_v22, 0.0  ;;  %v2122_v3 = vand.u32 2147483647, %v1994_v43 }
 0x29f   : > { %v5614_v16 = vpop.xlane.xlu1 %1744  ;;  %7151 = vst [vmem:[#allocation39_spill] sm:$0xff] %v5620_v27  ;;  %v2423_v47 = vmax.f32 %v2295_v52, 0.0 }
 0x2a0   : > { %7149 = vst [vmem:[#allocation99_spill] sm:$0xff] %v5614_v16  ;;  %2849 = vadd.xlane.f32.xlu0 %v2655_v21  ;;  %v2670_v60 = vmul.f32 %v7153_v2, %v2452_v42  ;;  %v2595_v21 = vmul.f32 %v7105_v24, %v2377_v28  ;;  %v2611_v42 = vmul.f32 %v7110_v55, %v2393_v23  ;;  %v2339_v28 = vsub.f32 1.0, %v2211_v45 }
 0x2a1   : > { %v2641_v23 = vmul.f32 %v7132_v19, %v2423_v47  ;;  %v2250_v43 = vsub.f32 1.0, %v2122_v3 }
 0x2a2   : > { %2819 = vadd.xlane.f32.xlu1 %v2640_v38  ;;  %v5632_v22 = vpop.xlane.xlu0 %1750  ;;  %v2197_v38 = vand.u32 2147483647, %v2069_v37  ;;  %v2467_v30 = vmax.f32 %v2339_v28, 0.0  ;;  %v7164_v28 = vld [vmem:[#allocation30_spill] sm:$0xff] }
 0x2a3   : > { %v5624_v16 = vpop.xlane.xlu1 %1748  ;;  %7155 = vst [vmem:[#allocation55_spill] sm:$0xff] %v5632_v22  ;;  %v2378_v3 = vmax.f32 %v2250_v43, 0.0 }
 0x2a4   : > { %7152 = vst [vmem:[#allocation27_spill] sm:$0xff] %v5624_v16  ;;  %v2310_v16 = vsub.f32 1.0, %v2182_v40  ;;  %2879 = vadd.xlane.f32.xlu0 %v2670_v60  ;;  %v2325_v22 = vsub.f32 1.0, %v2197_v38  ;;  %v2138_v60 = vand.u32 2147483647, %v2010_v34 }
 0x2a6   : > { %2877 = vadd.xlane.f32.xlu1 %v2669_v4  ;;  %v7158_v4 = vld [vmem:[#allocation71_spill] sm:$0xff]  ;;  %v5644_v37 = vpop.xlane.xlu0 %1754  ;;  %v2438_v40 = vmax.f32 %v2310_v16, 0.0  ;;  %v2453_v38 = vmax.f32 %v2325_v22, 0.0  ;;  %v7163_v16 = vld [vmem:[#allocation101_spill] sm:$0xff]  ;;  %v2070_v22 = vsub.f32 %v5450_v50, %v4960_v5 }
 0x2a7   : > { %v5636_v1 = vpop.xlane.xlu1 %1752  ;;  %v2025_v8 = vsub.f32 %v5450_v50, %v7158_v4  ;;  %7159 = vst [vmem:[#allocation85_spill] sm:$0xff] %v5644_v37  ;;  %v2055_v45 = vsub.f32 %v5450_v50, %v7163_v16 }
 0x2a8   : > { %7156 = vst [vmem:[#allocation68_spill] sm:$0xff] %v5636_v1  ;;  %v2212_v1 = vand.u32 2147483647, %v2084_v17  ;;  %2761 = vadd.xlane.f32.xlu0 %v2611_v42  ;;  %v2656_v34 = vmul.f32 %v7142_v53, %v2438_v40  ;;  %v2671_v47 = vmul.f32 %v7153_v2, %v2453_v38  ;;  %v2085_v40 = vsub.f32 %v5450_v50, %v5043_v35 }
 0x2a9   : > { %v2153_v48 = vand.u32 2147483647, %v2025_v8  ;;  %v2266_v8 = vsub.f32 1.0, %v2138_v60  ;;  %v2183_v16 = vand.u32 2147483647, %v2055_v45  ;;  %v2685_v60 = vmul.f32 %v7164_v28, %v2467_v30 }
 0x2aa   : > { %2729 = vadd.xlane.f32.xlu1 %v2595_v21  ;;  %v5650_v4 = vpop.xlane.xlu0 %1758  ;;  %v7162_v21 = vld [vmem:[#allocation84_spill] sm:$0xff]  ;;  %v2340_v17 = vsub.f32 1.0, %v2212_v1  ;;  %v2198_v5 = vand.u32 2147483647, %v2070_v22  ;;  %v2213_v45 = vand.u32 2147483647, %v2085_v40  ;;  %v2100_v35 = vsub.f32 %v5450_v50, %v5143_v33 }
 0x2ab   : > { %v5646_v27 = vpop.xlane.xlu1 %1756  ;;  %7161 = vst [vmem:[#allocation29_spill] sm:$0xff] %v5650_v4  ;;  %v2040_v52 = vsub.f32 %v5450_v50, %v7162_v21  ;;  %v2281_v42 = vsub.f32 1.0, %v2153_v48  ;;  %v2394_v48 = vmax.f32 %v2266_v8, 0.0  ;;  %v2311_v43 = vsub.f32 1.0, %v2183_v16  ;;  %v7167_v8 = vld [vmem:[#allocation41_spill] sm:$0xff] }
 0x2ac   : > { %7160 = vst [vmem:[#allocation98_spill] sm:$0xff] %v5646_v27  ;;  %2821 = vadd.xlane.f32.xlu0 %v2641_v23  ;;  %v2468_v1 = vmax.f32 %v2340_v17, 0.0  ;;  %v2099_v17 = vsub.f32 %v5450_v50, %v5130_v25  ;;  %v2596_v30 = vmul.f32 %v7105_v24, %v2378_v3  ;;  %v2341_v39 = vsub.f32 1.0, %v2213_v45 }
 0x2ad   : > { %v2168_v21 = vand.u32 2147483647, %v2040_v52  ;;  %v2409_v23 = vmax.f32 %v2281_v42, 0.0  ;;  %v1995_v42 = vsub.f32 %v5450_v50, %v7167_v8  ;;  %v2612_v40 = vmul.f32 %v7110_v55, %v2394_v48 }
 0x2ae   : > { %2791 = vadd.xlane.f32.xlu1 %v2626_v61  ;;  %v5660_v61 = vpop.xlane.xlu0 %1762  ;;  %v2686_v38 = vmul.f32 %v7164_v28, %v2468_v1  ;;  %v2227_v1 = vand.u32 2147483647, %v2099_v17  ;;  %v2439_v33 = vmax.f32 %v2311_v43, 0.0  ;;  %v2228_v3 = vand.u32 2147483647, %v2100_v35  ;;  %v7174_v43 = vld [vmem:[#allocation87_spill] sm:$0xff] }
 0x2af   : > { %v5654_v37 = vpop.xlane.xlu1 %1760  ;;  %v2123_v8 = vand.u32 2147483647, %v1995_v42  ;;  %v2041_v45 = vsub.f32 %v5450_v50, %v7174_v43  ;;  %v2469_v35 = vmax.f32 %v2341_v39, 0.0  ;;  %v2071_v39 = vsub.f32 %v5450_v50, %v4955_v41 }
 0x2b0   : > { %2881 = vadd.xlane.f32.xlu0 %v2671_v47  ;;  %v2355_v17 = vsub.f32 1.0, %v2227_v1  ;;  %v2657_v42 = vmul.f32 %v7142_v53, %v2439_v33 }
 0x2b1   : > { %v2169_v43 = vand.u32 2147483647, %v2041_v45  ;;  %v2199_v41 = vand.u32 2147483647, %v2071_v39 }
 0x2b2   : > { %2851 = vadd.xlane.f32.xlu1 %v2656_v34  ;;  %v5670_v52 = vpop.xlane.xlu0 %1766  ;;  %v2296_v34 = vsub.f32 1.0, %v2168_v21  ;;  %v7168_v21 = vld [vmem:[#allocation57_spill] sm:$0xff] }
 0x2b3   : > { %v5664_v4 = vpop.xlane.xlu1 %1764  ;;  %7165 = vst [vmem:[#allocation38_spill] sm:$0xff] %v5670_v52  ;;  %v2011_v22 = vsub.f32 %v5450_v50, %v7168_v21 }
 0x2b4   : > { %2911 = vadd.xlane.f32.xlu0 %v2686_v38  ;;  %v2424_v47 = vmax.f32 %v2296_v34, 0.0  ;;  %v2627_v38 = vmul.f32 %v7119_v59, %v2409_v23  ;;  %v2356_v23 = vsub.f32 1.0, %v2228_v3  ;;  %v2687_v3 = vmul.f32 %v7164_v28, %v2469_v35 }
 0x2b5   : > { %v2101_v35 = vsub.f32 %v5450_v50, %v5141_v31 }
 0x2b6   : > { %2909 = vadd.xlane.f32.xlu1 %v2685_v60  ;;  %v5684_v25 = vpop.xlane.xlu0 %1770  ;;  %v2326_v60 = vsub.f32 1.0, %v2198_v5  ;;  %v2642_v48 = vmul.f32 %v7132_v19, %v2424_v47  ;;  %v2484_v33 = vmax.f32 %v2356_v23, 0.0 }
 0x2b7   : > { %v5674_v27 = vpop.xlane.xlu1 %1768  ;;  %7169 = vst [vmem:[#allocation71_spill] sm:$0xff] %v5684_v25 }
 0x2b8   : > { %7166 = vst [vmem:[#allocation54_spill] sm:$0xff] %v5674_v27  ;;  %2763 = vadd.xlane.f32.xlu0 %v2612_v40  ;;  %v2139_v27 = vand.u32 2147483647, %v2011_v22  ;;  %v2454_v5 = vmax.f32 %v2326_v60, 0.0  ;;  %v2251_v22 = vsub.f32 1.0, %v2123_v8  ;;  %v7176_v60 = vld [vmem:[#allocation100_spill] sm:$0xff] }
 0x2b9   : > { %v2056_v1 = vsub.f32 %v5450_v50, %v7176_v60 }
 0x2ba   : > { %2731 = vadd.xlane.f32.xlu1 %v2596_v30  ;;  %v5690_v21 = vpop.xlane.xlu0 %1774  ;;  %v7172_v30 = vld [vmem:[#allocation70_spill] sm:$0xff]  ;;  %v2267_v40 = vsub.f32 1.0, %v2139_v27  ;;  %v2672_v47 = vmul.f32 %v7153_v2, %v2454_v5  ;;  %v2379_v27 = vmax.f32 %v2251_v22, 0.0  ;;  %v7180_v5 = vld [vmem:[#allocation31_spill] sm:$0xff]  ;;  %v7181_v22 = vld [vmem:[#allocation40_spill] sm:$0xff] }
 0x2bb   : > { %v5686_v16 = vpop.xlane.xlu1 %1772  ;;  %7171 = vst [vmem:[#allocation101_spill] sm:$0xff] %v5690_v21  ;;  %v2026_v34 = vsub.f32 %v5450_v50, %v7172_v30  ;;  %v2702_v23 = vmul.f32 %v7180_v5, %v2484_v33  ;;  %v2229_v33 = vand.u32 2147483647, %v2101_v35 }
 0x2bc   : > { %7170 = vst [vmem:[#allocation84_spill] sm:$0xff] %v5686_v16  ;;  %2823 = vadd.xlane.f32.xlu0 %v2642_v48  ;;  %v2395_v8 = vmax.f32 %v2267_v40, 0.0  ;;  %v1996_v40 = vsub.f32 %v5450_v50, %v7181_v22  ;;  %v2597_v39 = vmul.f32 %v7105_v24, %v2379_v27 }
 0x2bd   : > { %v2154_v30 = vand.u32 2147483647, %v2026_v34 }
 0x2be   : > { %2793 = vadd.xlane.f32.xlu1 %v2627_v38  ;;  %v5700_v38 = vpop.xlane.xlu0 %1778  ;;  %v2124_v22 = vand.u32 2147483647, %v1996_v40 }
 0x2bf   : > { %v5694_v25 = vpop.xlane.xlu1 %1776  ;;  %7175 = vst [vmem:[#allocation41_spill] sm:$0xff] %v5700_v38  ;;  %v2282_v48 = vsub.f32 1.0, %v2154_v30  ;;  %v7182_v30 = vld [vmem:[#allocation56_spill] sm:$0xff] }
 0x2c0   : > { %7173 = vst [vmem:[#allocation30_spill] sm:$0xff] %v5694_v25  ;;  %v2483_v25 = vmax.f32 %v2355_v17, 0.0  ;;  %2883 = vadd.xlane.f32.xlu0 %v2672_v47  ;;  %v2086_v17 = vsub.f32 %v5450_v50, %v5059_v18 }
 0x2c1   : > { %v2410_v47 = vmax.f32 %v2282_v48, 0.0 }
 0x2c2   : > { %2853 = vadd.xlane.f32.xlu1 %v2657_v42  ;;  %v5710_v34 = vpop.xlane.xlu0 %1782  ;;  %v2184_v42 = vand.u32 2147483647, %v2056_v1  ;;  %v2701_v45 = vmul.f32 %v7180_v5, %v2483_v25  ;;  %v2012_v1 = vsub.f32 %v5450_v50, %v7182_v30  ;;  %v2214_v25 = vand.u32 2147483647, %v2086_v17 }
 0x2c3   : > { %v5704_v21 = vpop.xlane.xlu1 %1780  ;;  %7178 = vst [vmem:[#allocation70_spill] sm:$0xff] %v5710_v34  ;;  %v2628_v27 = vmul.f32 %v7119_v59, %v2410_v47 }
 0x2c4   : > { %7177 = vst [vmem:[#allocation57_spill] sm:$0xff] %v5704_v21  ;;  %v2297_v21 = vsub.f32 1.0, %v2169_v43  ;;  %2941 = vadd.xlane.f32.xlu0 %v2701_v45  ;;  %v2613_v45 = vmul.f32 %v7110_v55, %v2395_v8  ;;  %v2140_v34 = vand.u32 2147483647, %v2012_v1  ;;  %v2342_v17 = vsub.f32 1.0, %v2214_v25 }
 0x2c5   : > { %v2357_v8 = vsub.f32 1.0, %v2229_v33  ;;  %v2252_v1 = vsub.f32 1.0, %v2124_v22 }
 0x2c6   : > { %2913 = vadd.xlane.f32.xlu1 %v2687_v3  ;;  %v5724_v18 = vpop.xlane.xlu0 %1786  ;;  %v2312_v3 = vsub.f32 1.0, %v2184_v42  ;;  %v2425_v31 = vmax.f32 %v2297_v21, 0.0  ;;  %v7187_v21 = vld [vmem:[#allocation86_spill] sm:$0xff] }
 0x2c7   : > { %v5714_v60 = vpop.xlane.xlu1 %1784  ;;  %7183 = vst [vmem:[#allocation100_spill] sm:$0xff] %v5724_v18 }
 0x2c8   : > { %7179 = vst [vmem:[#allocation87_spill] sm:$0xff] %v5714_v60  ;;  %v2327_v60 = vsub.f32 1.0, %v2199_v41  ;;  %2733 = vadd.xlane.f32.xlu0 %v2597_v39  ;;  %v2440_v42 = vmax.f32 %v2312_v3, 0.0  ;;  %v2042_v41 = vsub.f32 %v5450_v50, %v7187_v21  ;;  %v2643_v40 = vmul.f32 %v7132_v19, %v2425_v31  ;;  %v7188_v3 = vld [vmem:[#allocation102_spill] sm:$0xff] }
 0x2c9   : > { %v2268_v39 = vsub.f32 1.0, %v2140_v34  ;;  %v2057_v25 = vsub.f32 %v5450_v50, %v7188_v3  ;;  %v2485_v31 = vmax.f32 %v2357_v8, 0.0  ;;  %v2380_v34 = vmax.f32 %v2252_v1, 0.0  ;;  %v7192_v1 = vld [vmem:[#allocation43_spill] sm:$0xff] }
 0x2ca   : > { %2943 = vadd.xlane.f32.xlu1 %v2702_v23  ;;  %v5730_v30 = vpop.xlane.xlu0 %1790  ;;  %v7186_v23 = vld [vmem:[#allocation73_spill] sm:$0xff]  ;;  %v2455_v35 = vmax.f32 %v2327_v60, 0.0  ;;  %v2658_v47 = vmul.f32 %v7142_v53, %v2440_v42  ;;  %v2170_v21 = vand.u32 2147483647, %v2042_v41  ;;  %v2072_v60 = vsub.f32 %v5450_v50, %v4970_v6 }
 0x2cb   : > { %v5726_v43 = vpop.xlane.xlu1 %1788  ;;  %7185 = vst [vmem:[#allocation40_spill] sm:$0xff] %v5730_v30  ;;  %v2027_v48 = vsub.f32 %v5450_v50, %v7186_v23  ;;  %v2470_v30 = vmax.f32 %v2342_v17, 0.0  ;;  %v2396_v22 = vmax.f32 %v2268_v39, 0.0  ;;  %v2087_v17 = vsub.f32 %v5450_v50, %v5054_v26 }
 0x2cc   : > { %7184 = vst [vmem:[#allocation31_spill] sm:$0xff] %v5726_v43  ;;  %2795 = vadd.xlane.f32.xlu0 %v2628_v27  ;;  %v2673_v33 = vmul.f32 %v7153_v2, %v2455_v35  ;;  %v2298_v41 = vsub.f32 1.0, %v2170_v21  ;;  %v2200_v6 = vand.u32 2147483647, %v2072_v60  ;;  %v2102_v35 = vsub.f32 %v5450_v50, %v5158_v57 }
 0x2cd   : > { %v2155_v23 = vand.u32 2147483647, %v2027_v48  ;;  %v2688_v42 = vmul.f32 %v7164_v28, %v2470_v30  ;;  %v2703_v8 = vmul.f32 %v7180_v5, %v2485_v31  ;;  %v1997_v39 = vsub.f32 %v5450_v50, %v7192_v1 }
 0x2ce   : > { %2765 = vadd.xlane.f32.xlu1 %v2613_v45  ;;  %v5740_v45 = vpop.xlane.xlu0 %1794  ;;  %v2215_v30 = vand.u32 2147483647, %v2087_v17  ;;  %v2598_v60 = vmul.f32 %v7105_v24, %v2380_v34  ;;  %v2426_v57 = vmax.f32 %v2298_v41, 0.0  ;;  %v2328_v38 = vsub.f32 1.0, %v2200_v6  ;;  %v7199_v41 = vld [vmem:[#allocation89_spill] sm:$0xff] }
 0x2cf   : > { %v5734_v18 = vpop.xlane.xlu1 %1792  ;;  %v2283_v27 = vsub.f32 1.0, %v2155_v23  ;;  %v7193_v23 = vld [vmem:[#allocation59_spill] sm:$0xff]  ;;  %v2230_v31 = vand.u32 2147483647, %v2102_v35  ;;  %v2125_v1 = vand.u32 2147483647, %v1997_v39  ;;  %v2043_v6 = vsub.f32 %v5450_v50, %v7199_v41 }
 0x2d0   : > { %2855 = vadd.xlane.f32.xlu0 %v2658_v47  ;;  %v2343_v17 = vsub.f32 1.0, %v2215_v30  ;;  %v2456_v35 = vmax.f32 %v2328_v38, 0.0  ;;  %v2644_v39 = vmul.f32 %v7132_v19, %v2426_v57  ;;  %v2073_v38 = vsub.f32 %v5450_v50, %v4967_v15 }
 0x2d1   : > { %v2411_v47 = vmax.f32 %v2283_v27, 0.0  ;;  %v2171_v41 = vand.u32 2147483647, %v2043_v6 }
 0x2d2   : > { %2825 = vadd.xlane.f32.xlu1 %v2643_v40  ;;  %v5750_v48 = vpop.xlane.xlu0 %1798  ;;  %v2185_v40 = vand.u32 2147483647, %v2057_v25  ;;  %v2013_v25 = vsub.f32 %v5450_v50, %v7193_v23  ;;  %v2201_v15 = vand.u32 2147483647, %v2073_v38 }
 0x2d3   : > { %v5744_v43 = vpop.xlane.xlu1 %1796  ;;  %7190 = vst [vmem:[#allocation73_spill] sm:$0xff] %v5750_v48  ;;  %v2629_v34 = vmul.f32 %v7119_v59, %v2411_v47  ;;  %v2299_v6 = vsub.f32 1.0, %v2171_v41  ;;  %v7220_v48 = vld [vmem:[#allocation61_spill] sm:$0xff] }
 0x2d4   : > { %7189 = vst [vmem:[#allocation56_spill] sm:$0xff] %v5744_v43  ;;  %2915 = vadd.xlane.f32.xlu0 %v2688_v42  ;;  %v2614_v42 = vmul.f32 %v7110_v55, %v2396_v22  ;;  %v2141_v16 = vand.u32 2147483647, %v2013_v25  ;;  %v2358_v22 = vsub.f32 1.0, %v2230_v31  ;;  %v2253_v25 = vsub.f32 1.0, %v2125_v1 }
 0x2d5   : > { %v2674_v31 = vmul.f32 %v7153_v2, %v2456_v35  ;;  %v2103_v35 = vsub.f32 %v5450_v50, %v5153_v54  ;;  %v2427_v54 = vmax.f32 %v2299_v6, 0.0 }
 0x2d6   : > { %2885 = vadd.xlane.f32.xlu1 %v2673_v33  ;;  %v5764_v26 = vpop.xlane.xlu0 %1802  ;;  %v2313_v33 = vsub.f32 1.0, %v2185_v40  ;;  %v2486_v57 = vmax.f32 %v2358_v22, 0.0 }
 0x2d7   : > { %v5754_v3 = vpop.xlane.xlu1 %1800  ;;  %7194 = vst [vmem:[#allocation102_spill] sm:$0xff] %v5764_v26 }
 0x2d8   : > { %7191 = vst [vmem:[#allocation86_spill] sm:$0xff] %v5754_v3  ;;  %2735 = vadd.xlane.f32.xlu0 %v2598_v60  ;;  %v2441_v40 = vmax.f32 %v2313_v33, 0.0  ;;  %v2269_v60 = vsub.f32 1.0, %v2141_v16  ;;  %v7201_v33 = vld [vmem:[#allocation103_spill] sm:$0xff]  ;;  %v2381_v16 = vmax.f32 %v2253_v25, 0.0  ;;  %v2704_v22 = vmul.f32 %v7180_v5, %v2486_v57  ;;  %v7205_v25 = vld [vmem:[#allocation42_spill] sm:$0xff] }
 0x2d9   : > { %v2058_v30 = vsub.f32 %v5450_v50, %v7201_v33  ;;  %v2231_v57 = vand.u32 2147483647, %v2103_v35 }
 0x2da   : > { %2945 = vadd.xlane.f32.xlu1 %v2703_v8  ;;  %v5770_v23 = vpop.xlane.xlu0 %1806  ;;  %v7197_v8 = vld [vmem:[#allocation72_spill] sm:$0xff]  ;;  %v2659_v47 = vmul.f32 %v7142_v53, %v2441_v40  ;;  %v2397_v1 = vmax.f32 %v2269_v60, 0.0  ;;  %v1998_v60 = vsub.f32 %v5450_v50, %v7205_v25  ;;  %v2599_v38 = vmul.f32 %v7105_v24, %v2381_v16 }
 0x2db   : > { %v5766_v21 = vpop.xlane.xlu1 %1804  ;;  %7196 = vst [vmem:[#allocation59_spill] sm:$0xff] %v5770_v23  ;;  %v2028_v27 = vsub.f32 %v5450_v50, %v7197_v8 }
 0x2dc   : > { %7195 = vst [vmem:[#allocation43_spill] sm:$0xff] %v5766_v21  ;;  %2797 = vadd.xlane.f32.xlu0 %v2629_v34  ;;  %v2126_v25 = vand.u32 2147483647, %v1998_v60  ;;  %v2359_v60 = vsub.f32 1.0, %v2231_v57  ;;  %v7218_v57 = vld [vmem:[#allocation104_spill] sm:$0xff] }
 0x2dd   : > { %v2156_v8 = vand.u32 2147483647, %v2028_v27 }
 0x2de   : > { %2767 = vadd.xlane.f32.xlu1 %v2614_v42  ;;  %v5780_v42 = vpop.xlane.xlu0 %1810 }
 0x2df   : > { %v5774_v26 = vpop.xlane.xlu1 %1808  ;;  %7200 = vst [vmem:[#allocation89_spill] sm:$0xff] %v5780_v42  ;;  %v2284_v34 = vsub.f32 1.0, %v2156_v8  ;;  %v7206_v8 = vld [vmem:[#allocation58_spill] sm:$0xff] }
 0x2e0   : > { %7198 = vst [vmem:[#allocation72_spill] sm:$0xff] %v5774_v26  ;;  %v2471_v26 = vmax.f32 %v2343_v17, 0.0  ;;  %2857 = vadd.xlane.f32.xlu0 %v2659_v47  ;;  %v2088_v17 = vsub.f32 %v5450_v50, %v5071_v63 }
 0x2e1   : > { %v2412_v47 = vmax.f32 %v2284_v34, 0.0  ;;  %v7211_v34 = vld [vmem:[#allocation75_spill] sm:$0xff] }
 0x2e2   : > { %2827 = vadd.xlane.f32.xlu1 %v2644_v39  ;;  %v5790_v27 = vpop.xlane.xlu0 %1814  ;;  %v2186_v39 = vand.u32 2147483647, %v2058_v30  ;;  %v2689_v40 = vmul.f32 %v7164_v28, %v2471_v26  ;;  %v2014_v30 = vsub.f32 %v5450_v50, %v7206_v8  ;;  %v2216_v26 = vand.u32 2147483647, %v2088_v17 }
 0x2e3   : > { %v5784_v23 = vpop.xlane.xlu1 %1812  ;;  %7203 = vst [vmem:[#allocation166_spill] sm:$0xff] %v5790_v27  ;;  %v2615_v27 = vmul.f32 %v7110_v55, %v2397_v1  ;;  %v2630_v6 = vmul.f32 %v7119_v59, %v2412_v47 }
 0x2e4   : > { %7202 = vst [vmem:[#allocation103_spill] sm:$0xff] %v5784_v23  ;;  %2917 = vadd.xlane.f32.xlu0 %v2689_v40  ;;  %v7209_v40 = vld [vmem:[#allocation45_spill] sm:$0xff] }
 0x2e5   : > { %v1999_v8 = vsub.f32 %v5450_v50, %v7209_v40 }
 0x2e6   : > { %2887 = vadd.xlane.f32.xlu1 %v2674_v31  ;;  %v5804_v63 = vpop.xlane.xlu0 %1818  ;;  %v2314_v31 = vsub.f32 1.0, %v2186_v39  ;;  %v2029_v39 = vsub.f32 %v5450_v50, %v7211_v34 }
 0x2e7   : > { %v5794_v33 = vpop.xlane.xlu1 %1816  ;;  %7207 = vst [vmem:[#allocation42_spill] sm:$0xff] %v5804_v63 }
 0x2e8   : > { %7204 = vst [vmem:[#allocation167_spill] sm:$0xff] %v5794_v33  ;;  %v2329_v33 = vsub.f32 1.0, %v2201_v15  ;;  %2737 = vadd.xlane.f32.xlu0 %v2599_v38  ;;  %v2442_v17 = vmax.f32 %v2314_v31, 0.0  ;;  %v7213_v15 = vld [vmem:[#allocation88_spill] sm:$0xff]  ;;  %v2645_v38 = vmul.f32 %v7132_v19, %v2427_v54  ;;  %v2127_v31 = vand.u32 2147483647, %v1999_v8 }
 0x2e9   : > { %v2044_v1 = vsub.f32 %v5450_v50, %v7213_v15  ;;  %v2059_v54 = vsub.f32 %v5450_v50, %v7218_v57  ;;  %v2487_v8 = vmax.f32 %v2359_v60, 0.0  ;;  %v7221_v57 = vld [vmem:[#allocation60_spill] sm:$0xff] }
 0x2ea   : > { %2947 = vadd.xlane.f32.xlu1 %v2704_v22  ;;  %v2142_v22 = vand.u32 2147483647, %v2014_v30  ;;  %v5812_v63 = vpop.xlane.xlu0 %1822  ;;  %v2457_v35 = vmax.f32 %v2329_v33, 0.0  ;;  %v2254_v30 = vsub.f32 1.0, %v2126_v25  ;;  %v2157_v33 = vand.u32 2147483647, %v2029_v39 }
 0x2eb   : > { %v5806_v41 = vpop.xlane.xlu1 %1820  ;;  %7210 = vst [vmem:[#allocation45_spill] sm:$0xff] %v5812_v63  ;;  %v7215_v63 = vld [vmem:[#allocation47_spill] sm:$0xff]  ;;  %v2172_v21 = vand.u32 2147483647, %v2044_v1 }
 0x2ec   : > { %7208 = vst [vmem:[#allocation58_spill] sm:$0xff] %v5806_v41  ;;  %v2344_v41 = vsub.f32 1.0, %v2216_v26  ;;  %v2001_v34 = vsub.f32 %v5450_v50, %v7215_v63  ;;  %2799 = vadd.xlane.f32.xlu0 %v2630_v6  ;;  %v7216_v26 = vld [vmem:[#allocation46_spill] sm:$0xff]  ;;  %v2270_v47 = vsub.f32 1.0, %v2142_v22  ;;  %v2074_v63 = vsub.f32 %v5450_v50, %v4983_v62 }
 0x2ed   : > { %v2002_v23 = vsub.f32 %v5450_v50, %v7216_v26  ;;  %v2675_v6 = vmul.f32 %v7153_v2, %v2457_v35  ;;  %v2382_v22 = vmax.f32 %v2254_v30, 0.0  ;;  %v2285_v1 = vsub.f32 1.0, %v2157_v33 }
 0x2ee   : > { %2769 = vadd.xlane.f32.xlu1 %v2615_v27  ;;  %v7214_v27 = vld [vmem:[#allocation44_spill] sm:$0xff]  ;;  %v5828_v42 = vpop.xlane.xlu0 %1826  ;;  %v2472_v25 = vmax.f32 %v2344_v41, 0.0  ;;  %v2129_v26 = vand.u32 2147483647, %v2001_v34  ;;  %v2398_v3 = vmax.f32 %v2270_v47, 0.0  ;;  %v2015_v41 = vsub.f32 %v5450_v50, %v7220_v48 }
 0x2ef   : > { %v5816_v16 = vpop.xlane.xlu1 %1824  ;;  %v2000_v40 = vsub.f32 %v5450_v50, %v7214_v27  ;;  %7217 = vst [vmem:[#allocation88_spill] sm:$0xff] %v5828_v42  ;;  %v2660_v27 = vmul.f32 %v7142_v53, %v2442_v17  ;;  %v2130_v39 = vand.u32 2147483647, %v2002_v23  ;;  %v2187_v62 = vand.u32 2147483647, %v2059_v54  ;;  %v7234_v42 = vld [vmem:[#allocation137_spill] sm:$0xff] }
 0x2f0   : > { %7212 = vst [vmem:[#allocation75_spill] sm:$0xff] %v5816_v16  ;;  %v2089_v35 = vsub.f32 %v5450_v50, %v5067_v44  ;;  %v2690_v30 = vmul.f32 %v7164_v28, %v2472_v25  ;;  %v2300_v23 = vsub.f32 1.0, %v2172_v21  ;;  %v2104_v48 = vsub.f32 %v5450_v50, %v5171_v7 }
 0x2f1   : > { %2859 = vadd.xlane.f32.xlu0 %v2660_v27  ;;  %v2705_v34 = vmul.f32 %v7180_v5, %v2487_v8  ;;  %v2255_v47 = vsub.f32 1.0, %v2127_v31  ;;  %v2258_v33 = vsub.f32 1.0, %v2130_v39  ;;  %v2143_v54 = vand.u32 2147483647, %v2015_v41 }
 0x2f2   : > { %2829 = vadd.xlane.f32.xlu1 %v2645_v38  ;;  %v2128_v38 = vand.u32 2147483647, %v2000_v40  ;;  %v5842_v17 = vpop.xlane.xlu0 %1830  ;;  %v2202_v40 = vand.u32 2147483647, %v2074_v63  ;;  %v2315_v25 = vsub.f32 1.0, %v2187_v62  ;;  %v2600_v7 = vmul.f32 %v7105_v24, %v2382_v22 }
 0x2f3   : > { %v5832_v15 = vpop.xlane.xlu1 %1828  ;;  %7222 = vst [vmem:[#allocation47_spill] sm:$0xff] %v5842_v17  ;;  %v2217_v21 = vand.u32 2147483647, %v2089_v35  ;;  %v2428_v17 = vmax.f32 %v2300_v23, 0.0  ;;  %v2232_v31 = vand.u32 2147483647, %v2104_v48 }
 0x2f4   : > { %7219 = vst [vmem:[#allocation44_spill] sm:$0xff] %v5832_v15  ;;  %v2016_v15 = vsub.f32 %v5450_v50, %v7221_v57  ;;  %v2256_v27 = vsub.f32 1.0, %v2128_v38  ;;  %v2330_v8 = vsub.f32 1.0, %v2202_v40  ;;  %v2616_v38 = vmul.f32 %v7110_v55, %v2398_v3  ;;  %v7229_v40 = vld [vmem:[#allocation63_spill] sm:$0xff] }
 0x2f5   : > { %2919 = vadd.xlane.f32.xlu0 %v2690_v30  ;;  %v5869_v35 = vmax.f32 %v2258_v33, 0.0  ;;  %v2271_v22 = vsub.f32 1.0, %v2143_v54  ;;  %v7227_v30 = vld [vmem:[#allocation91_spill] sm:$0xff]  ;;  %v2360_v33 = vsub.f32 1.0, %v2232_v31  ;;  %v2646_v54 = vmul.f32 %v7132_v19, %v2428_v17 }
 0x2f6   : > { %2889 = vadd.xlane.f32.xlu1 %v2675_v6  ;;  %v2257_v6 = vsub.f32 1.0, %v2129_v26  ;;  %v5852_v57 = vand.u32 2147483647, %v2016_v15  ;;  %v5854_v44 = vpop.xlane.xlu0 %1834  ;;  %v5860_v26 = vmax.f32 %v2255_v47, 0.0  ;;  %v5862_v39 = vmax.f32 %v2256_v27, 0.0  ;;  %v7226_v15 = vld [vmem:[#allocation74_spill] sm:$0xff] }
 0x2f7   : > { %v5846_v60 = vpop.xlane.xlu1 %1832  ;;  %7224 = vst [vmem:[#allocation104_spill] sm:$0xff] %v5854_v44  ;;  %v2030_v41 = vsub.f32 %v5450_v50, %v7226_v15  ;;  %v2045_v23 = vsub.f32 %v5450_v50, %v7227_v30  ;;  %v2345_v47 = vsub.f32 1.0, %v2217_v21  ;;  %v2458_v15 = vmax.f32 %v2330_v8, 0.0  ;;  %v7230_v44 = vld [vmem:[#allocation18_spill] sm:$0xff]  ;;  %v7231_v30 = vld [vmem:[#allocation135_spill] sm:$0xff] }
 0x2f8   : > { %7223 = vst [vmem:[#allocation46_spill] sm:$0xff] %v5846_v60  ;;  %v2413_v60 = vmax.f32 %v2285_v1, 0.0  ;;  %v3234_v1 = vadd.s32 4294967288, %v7082_v51  ;;  %v5867_v62 = vmax.f32 %v2257_v6, 0.0  ;;  %v7232_v21 = vld [vmem:[#allocation62_spill] sm:$0xff]  ;;  %v3241_v31 = vadd.s32 4294967280, %v7082_v51 }
 0x2f9   : > { %2739 = vadd.xlane.f32.xlu0 %v2600_v7  ;;  %v2173_v48 = vand.u32 2147483647, %v2045_v23  ;;  %v7233_v6 = vld [vmem:[#allocation106_spill] sm:$0xff]  ;;  %v2473_v36 = vmax.f32 %v2345_v47, 0.0  ;;  %v2488_v43 = vmax.f32 %v2360_v33, 0.0  ;;  %v2676_v23 = vmul.f32 %v7153_v2, %v2458_v15  ;;  %v7236_v47 = vld [vmem:[#allocation77_spill] sm:$0xff] }
 0x2fa   : > { %2949 = vadd.xlane.f32.xlu1 %v2705_v34  ;;  %v5873_v3 = vpop.xlane.xlu0 %1838  ;;  %v2443_v34 = vmax.f32 %v2315_v25, 0.0  ;;  %v2631_v7 = vmul.f32 %v7119_v59, %v2413_v60  ;;  %v5886_v25 = vsub.s32 %v3234_v1, %v7230_v44  ;;  %v2060_v8 = vsub.f32 %v5450_v50, %v7233_v6  ;;  %v7235_v1 = vld [vmem:[#allocation115_spill] sm:$0xff] }
 0x2fb   : > { %v5856_v63 = vpop.xlane.xlu1 %1836  ;;  %7228 = vst [vmem:[#allocation60_spill] sm:$0xff] %v5873_v3  ;;  %v5904_v33 = vsub.s32 %v3241_v31, %v7230_v44 }
 0x2fc   : > { %7225 = vst [vmem:[#allocation61_spill] sm:$0xff] %v5856_v63  ;;  %v2158_v63 = vand.u32 2147483647, %v2030_v41  ;;  %v2399_v41 = vmax.f32 %v2271_v22, 0.0 }
 0x2fd   : > { %2801 = vadd.xlane.f32.xlu0 %v2631_v7  ;;  %v2661_v7 = vmul.f32 %v7142_v53, %v2443_v34  ;;  %v2188_v34 = vand.u32 2147483647, %v2060_v8  ;;  %v7237_v8 = vld [vmem:[#allocation19_spill] sm:$0xff] }
 0x2fe   : > { %2771 = vadd.xlane.f32.xlu1 %v2616_v38  ;;  %v5882_v38 = vsub.s32 %v7082_v51, %v7230_v44  ;;  %v2720_v17 = vpop.xlane.xlu0 %2719  ;;  %v2286_v60 = vsub.f32 1.0, %v2158_v63  ;;  %v2090_v63 = vsub.f32 %v5450_v50, %v5081_v14 }
 0x2ff   : > { %v2718_v27 = vpop.xlane.xlu1 %2717  ;;  %v2974_v16 = vadd.f32 %v2720_v17, %v7234_v42  ;;  %v2031_v42 = vsub.f32 %v5450_v50, %v7236_v47  ;;  %v2301_v17 = vsub.f32 1.0, %v2173_v48  ;;  %v2105_v48 = vsub.f32 %v5450_v50, %v5167_v46 }
 0x300   : > { %v2973_v3 = vadd.f32 %v2718_v27, %v7231_v30  ;;  %v2075_v30 = vsub.f32 %v5450_v50, %v7235_v1  ;;  %v2706_v1 = vmul.f32 %v7180_v5, %v2488_v43  ;;  %v2414_v31 = vmax.f32 %v2286_v60, 0.0 }
 0x301   : > { %2861 = vadd.xlane.f32.xlu0 %v2661_v7  ;;  %v2218_v46 = vand.u32 2147483647, %v2090_v63  ;;  %v7239_v63 = vld [vmem:[#allocation90_spill] sm:$0xff] }
 0x302   : > { %2831 = vadd.xlane.f32.xlu1 %v2646_v54  ;;  %v3233_v6 = vrot.slane %v2973_v3, %v5882_v38  ;;  %v3238_v54 = vrot.slane %v2974_v16, %v5886_v25  ;;  %v2752_v52 = vpop.xlane.xlu0 %2751 }
 0x303   : > { %v2750_v27 = vpop.xlane.xlu1 %2749  ;;  %v2990_v16 = vadd.f32 %v2752_v52, %v5331_v20  ;;  %v2316_v20 = vsub.f32 1.0, %v2188_v34  ;;  %v2617_v34 = vmul.f32 %v7110_v55, %v2399_v41 }
 0x304   : > { %v2989_v22 = vadd.f32 %v2750_v27, %v5323_v9  ;;  %v3240_v3 = vsel %vm3239_vm0, %v3238_v54, %v3233_v6  ;;  %v2691_v9 = vmul.f32 %v7164_v28, %v2473_v36  ;;  %v2203_v27 = vand.u32 2147483647, %v2075_v30 }
 0x305   : > { %v3346_v14 = vrot.slane %v2990_v16, %v5886_v25  ;;  %v2429_v6 = vmax.f32 %v2301_v17, 0.0  ;;  %v3248_v30 = vadd.s32 4294967272, %v7082_v51  ;;  %v2233_v16 = vand.u32 2147483647, %v2105_v48 }
 0x306   : > { %2891 = vadd.xlane.f32.xlu1 %v2676_v23  ;;  %v3342_v23 = vrot.slane %v2989_v22, %v5882_v38  ;;  %2921 = vadd.xlane.f32.xlu0 %v2691_v9  ;;  %v2754_v36 = vpop.xlane.xlu0 %2753  ;;  %v2601_v22 = vmul.f32 %v7105_v24, %v5860_v26  ;;  %v2331_v47 = vsub.f32 1.0, %v2203_v27  ;;  %v7240_v26 = vsub.f32 1.0, %v5852_v57  ;;  %v7241_v57 = vld [vmem:[#allocation138_spill] sm:$0xff] }
 0x307   : > { %v2722_v15 = vpop.xlane.xlu1 %2721  ;;  %v2991_v43 = vadd.f32 %v2754_v36, %v5333_v29  ;;  %v2444_v48 = vmax.f32 %v2316_v20, 0.0 }
 0x308   : > { %v2975_v7 = vadd.f32 %v2722_v15, %v7237_v8  ;;  %v3347_v54 = vsel %vm3239_vm0, %v3346_v14, %v3342_v23  ;;  %v7238_v15 = vsub.f32 %v5450_v50, %v7229_v40  ;;  %v2046_v8 = vsub.f32 %v5450_v50, %v7239_v63 }
 0x309   : > { %v3351_v29 = vrot.slane %v2991_v43, %v5904_v33  ;;  %v5936_v27 = vmax.f32 %v7240_v26, 0.0  ;;  %v5939_v40 = vsub.s32 %v3248_v30, %v7230_v44  ;;  %v2459_v36 = vmax.f32 %v2331_v47, 0.0 }
 0x30a   : > { %v3245_v52 = vrot.slane %v2975_v7, %v5904_v33  ;;  %2951 = vadd.xlane.f32.xlu1 %v2706_v1  ;;  %v5928_v9 = vand.u32 2147483647, %v7238_v15  ;;  %2741 = vadd.xlane.f32.xlu0 %v2601_v22  ;;  %v2784_v41 = vpop.xlane.xlu0 %2783  ;;  %v2346_v1 = vsub.f32 1.0, %v2218_v46  ;;  %v2361_v43 = vsub.f32 1.0, %v2233_v16 }
 0x30b   : > { %v2782_v60 = vpop.xlane.xlu1 %2781  ;;  %v3352_v23 = vsel %vm3246_vm1, %v3351_v29, %v3347_v54  ;;  %v3006_v14 = vadd.f32 %v2784_v41, %v5417_v12  ;;  %v2174_v20 = vand.u32 2147483647, %v2046_v8  ;;  %v7242_v46 = vsub.f32 %v5450_v50, %v7232_v21  ;;  %v7243_v54 = vld [vmem:[#allocation107_spill] sm:$0xff] }
 0x30c   : > { %v3247_v17 = vsel %vm3246_vm1, %v3245_v52, %v3240_v3  ;;  %v3005_v7 = vadd.f32 %v2782_v60, %v5409_v13  ;;  %v2159_v3 = vand.u32 2147483647, %v2031_v42  ;;  %v2632_v13 = vmul.f32 %v7119_v59, %v2414_v31 }
 0x30d   : > { %v2647_v42 = vmul.f32 %v7132_v19, %v2429_v6  ;;  %v3425_v30 = vrot.slane %v3006_v14, %v5886_v25  ;;  %v5951_v12 = vand.u32 2147483647, %v7242_v46  ;;  %v2061_v31 = vsub.f32 %v5450_v50, %v7243_v54 }
 0x30e   : > { %2773 = vadd.xlane.f32.xlu1 %v2617_v34  ;;  %v3421_v22 = vrot.slane %v3005_v7, %v5882_v38  ;;  %2803 = vadd.xlane.f32.xlu0 %v2632_v13  ;;  %v2076_v47 = vsub.f32 %v5450_v50, %v4995_v10  ;;  %v2756_v16 = vpop.xlane.xlu0 %2755  ;;  %v2474_v34 = vmax.f32 %v2346_v1, 0.0  ;;  %v2662_v21 = vmul.f32 %v7142_v53, %v2444_v48 }
 0x30f   : > { %v2724_v52 = vpop.xlane.xlu1 %2723  ;;  %v2992_v63 = vadd.f32 %v2756_v16, %v5341_v0  ;;  %v2489_v29 = vmax.f32 %v2361_v43, 0.0  ;;  %v2677_v41 = vmul.f32 %v7153_v2, %v2459_v36  ;;  %v2287_v10 = vsub.f32 1.0, %v2159_v3 }
 0x310   : > { %v2976_v60 = vadd.f32 %v2724_v52, %v7241_v57  ;;  %v3426_v15 = vsel %vm3239_vm0, %v3425_v30, %v3421_v22  ;;  %v2302_v14 = vsub.f32 1.0, %v2174_v20  ;;  %v3255_v1 = vadd.s32 4294967264, %v7082_v51  ;;  %v7244_v22 = vld [vmem:[#allocation51_spill] sm:$0xff] }
 0x311   : > { %v3356_v52 = vrot.slane %v2992_v63, %v5939_v40  ;;  %v2189_v13 = vand.u32 2147483647, %v2061_v31  ;;  %v2204_v57 = vand.u32 2147483647, %v2076_v47  ;;  %v2091_v0 = vsub.f32 %v5450_v50, %v5079_v32 }
 0x312   : > { %v3252_v6 = vrot.slane %v2976_v60, %v5939_v40  ;;  %2833 = vadd.xlane.f32.xlu1 %v2647_v42  ;;  %2863 = vadd.xlane.f32.xlu0 %v2662_v21  ;;  %v2692_v60 = vmul.f32 %v7164_v28, %v2474_v34  ;;  %v2273_v42 = vsub.f32 1.0, %v5928_v9  ;;  %v2707_v30 = vmul.f32 %v7180_v5, %v2489_v29  ;;  %v7245_v34 = vld [vmem:[#allocation20_spill] sm:$0xff] }
 0x313   : > { %v2786_v8 = vpop.xlane.xlu1 %2785  ;;  %v3357_v3 = vsel %vm3253_vm2, %v3356_v52, %v3352_v23  ;;  %v2415_v46 = vmax.f32 %v2287_v10, 0.0  ;;  %v2430_v54 = vmax.f32 %v2302_v14, 0.0  ;;  %v2332_v23 = vsub.f32 1.0, %v2204_v57  ;;  %v7248_v10 = vld [vmem:[#allocation148_spill] sm:$0xff] }
 0x314   : > { %v3254_v7 = vsel %vm3253_vm2, %v3252_v6, %v3247_v17  ;;  %v3007_v26 = vadd.f32 %v2786_v8, %v5419_v58  ;;  %v2814_v17 = vpop.xlane.xlu0 %2813  ;;  %v2106_v58 = vsub.f32 %v5450_v50, %v5184_v56  ;;  %v5980_v56 = vsub.s32 %v3255_v1, %v7230_v44  ;;  %v7247_v8 = vld [vmem:[#allocation139_spill] sm:$0xff]  ;;  %v7249_v57 = vld [vmem:[#allocation76_spill] sm:$0xff] }
 0x315   : > { %v3021_v36 = vadd.f32 %v2814_v17, %v5494_v49  ;;  %v2317_v49 = vsub.f32 1.0, %v2189_v13  ;;  %v2219_v47 = vand.u32 2147483647, %v2091_v0  ;;  %v2618_v52 = vmul.f32 %v7110_v55, %v5936_v27 }
 0x316   : > { %v3430_v48 = vrot.slane %v3007_v26, %v5904_v33  ;;  %2893 = vadd.xlane.f32.xlu1 %v2677_v41  ;;  %2923 = vadd.xlane.f32.xlu0 %v2692_v60  ;;  %v2234_v16 = vand.u32 2147483647, %v2106_v58  ;;  %v2602_v26 = vmul.f32 %v7105_v24, %v5862_v39  ;;  %v5992_v1 = vmax.f32 %v2273_v42, 0.0  ;;  %v7250_v42 = vld [vmem:[#allocation159_spill] sm:$0xff] }
 0x317   : > { %v2816_v43 = vpop.xlane.xlu1 %2815  ;;  %v3500_v31 = vrot.slane %v3021_v36, %v5882_v38  ;;  %v2274_v13 = vsub.f32 1.0, %v5951_v12  ;;  %v2032_v0 = vsub.f32 %v5450_v50, %v7249_v57  ;;  %v2445_v17 = vmax.f32 %v2317_v49, 0.0 }
 0x318   : > { %v3431_v20 = vsel %vm3246_vm1, %v3430_v48, %v3426_v15  ;;  %v3022_v32 = vadd.f32 %v2816_v43, %v7244_v22  ;;  %v2726_v9 = vpop.xlane.xlu0 %2725  ;;  %v7246_v15 = vld [vmem:[#allocation105_spill] sm:$0xff]  ;;  %v2460_v39 = vmax.f32 %v2332_v23, 0.0  ;;  %v2347_v58 = vsub.f32 1.0, %v2219_v47 }
 0x319   : > { %v990_v63 = vsub.f32 %v7246_v15, %v7245_v34  ;;  %v2977_v21 = vadd.f32 %v2726_v9, %v7247_v8  ;;  %v7251_v9 = vld [vmem:[#allocation65_spill] sm:$0xff]  ;;  %v2648_v49 = vmul.f32 %v7132_v19, %v2430_v54  ;;  %v2160_v23 = vand.u32 2147483647, %v2032_v0 }
 0x31a   : > { %v3504_v6 = vrot.slane %v3022_v32, %v5886_v25  ;;  %2953 = vadd.xlane.f32.xlu1 %v2707_v30  ;;  %2743 = vadd.xlane.f32.xlu0 %v2602_v26  ;;  %v2633_v30 = vmul.f32 %v7119_v59, %v2415_v46  ;;  %v7252_v47 = vld [vmem:[#allocation93_spill] sm:$0xff] }
 0x31b   : > { %v2758_v29 = vpop.xlane.xlu1 %2757  ;;  %v3259_v48 = vrot.slane %v2977_v21, %v5980_v56  ;;  %v1118_v60 = vand.u32 2147483647, %v990_v63  ;;  %v2047_v21 = vsub.f32 %v5450_v50, %v7252_v47  ;;  %v7254_v46 = vld [vmem:[#allocation109_spill] sm:$0xff] }
 0x31c   : > { %v3505_v41 = vsel %vm3239_vm0, %v3504_v6, %v3500_v31  ;;  %v2993_v14 = vadd.f32 %v2758_v29, %v7248_v10  ;;  %v2788_v43 = vpop.xlane.xlu0 %2787  ;;  %v2362_v31 = vsub.f32 1.0, %v2234_v16  ;;  %v7253_v29 = vld [vmem:[#allocation79_spill] sm:$0xff]  ;;  %v2062_v16 = vsub.f32 %v5450_v50, %v7254_v46 }
 0x31d   : > { %v3261_v27 = vsel %vm3260_vm3, %v3259_v48, %v3254_v7  ;;  %v3008_v22 = vadd.f32 %v2788_v43, %v7250_v42  ;;  %v3262_v7 = vadd.s32 4294967256, %v7082_v51  ;;  %v2033_v26 = vsub.f32 %v5450_v50, %v7253_v29  ;;  %v7255_v42 = vld [vmem:[#allocation97_spill] sm:$0xff] }
 0x31e   : > { %v3361_v36 = vrot.slane %v2993_v14, %v5980_v56  ;;  %2775 = vadd.xlane.f32.xlu1 %v2618_v52  ;;  %2805 = vadd.xlane.f32.xlu0 %v2633_v30  ;;  %v1246_v14 = vsub.f32 1.0, %v1118_v60  ;;  %v2663_v48 = vmul.f32 %v7142_v53, %v2445_v17  ;;  %v2175_v30 = vand.u32 2147483647, %v2047_v21  ;;  %v7257_v17 = vld [vmem:[#allocation123_spill] sm:$0xff]  ;;  %v7259_v21 = vld [vmem:[#allocation140_spill] sm:$0xff] }
 0x31f   : > { %v2818_v32 = vpop.xlane.xlu1 %2817  ;;  %v3435_v63 = vrot.slane %v3008_v22, %v5939_v40  ;;  %v6022_v60 = vsub.s32 %v3262_v7, %v7230_v44 }
 0x320   : > { %v3362_v6 = vsel %vm3260_vm3, %v3361_v36, %v3357_v3  ;;  %v3023_v8 = vadd.f32 %v2818_v32, %v7251_v9  ;;  %v2475_v3 = vmax.f32 %v2347_v58, 0.0  ;;  %v2846_v54 = vpop.xlane.xlu0 %2845  ;;  %v2490_v36 = vmax.f32 %v2362_v31, 0.0 }
 0x321   : > { %v3436_v52 = vsel %vm3253_vm2, %v3435_v63, %v3431_v20  ;;  %v3037_v57 = vadd.f32 %v2846_v54, %v5574_v11  ;;  %v2678_v32 = vmul.f32 %v7153_v2, %v2460_v39  ;;  %v2288_v58 = vsub.f32 1.0, %v2160_v23  ;;  %v7256_v11 = vld [vmem:[#allocation116_spill] sm:$0xff]  ;;  %v7258_v39 = vld [vmem:[#allocation78_spill] sm:$0xff] }
 0x322   : > { %v3509_v10 = vrot.slane %v3023_v8, %v5904_v33  ;;  %2835 = vadd.xlane.f32.xlu1 %v2648_v49  ;;  %2865 = vadd.xlane.f32.xlu0 %v2663_v48  ;;  %v2190_v20 = vand.u32 2147483647, %v2062_v16  ;;  %v2077_v8 = vsub.f32 %v5450_v50, %v7256_v11  ;;  %v2092_v31 = vsub.f32 %v5450_v50, %v7257_v17  ;;  %v7260_v16 = vld [vmem:[#allocation149_spill] sm:$0xff] }
 0x323   : > { %v2848_v0 = vpop.xlane.xlu1 %2847  ;;  %v3579_v9 = vrot.slane %v3037_v57, %v5882_v38  ;;  %v2034_v23 = vsub.f32 %v5450_v50, %v7258_v39  ;;  %v1374_v47 = vmax.f32 %v1246_v14, 0.0  ;;  %v2693_v7 = vmul.f32 %v7164_v28, %v2475_v3 }
 0x324   : > { %v3510_v43 = vsel %vm3246_vm1, %v3509_v10, %v3505_v41  ;;  %v3038_v22 = vadd.f32 %v2848_v0, %v7255_v42  ;;  %v2728_v49 = vpop.xlane.xlu0 %2727  ;;  %v2708_v54 = vmul.f32 %v7180_v5, %v2490_v36  ;;  %v2416_v57 = vmax.f32 %v2288_v58, 0.0  ;;  %v7261_v36 = vld [vmem:[#allocation160_spill] sm:$0xff] }
 0x325   : > { %v2978_v63 = vadd.f32 %v2728_v49, %v7259_v21  ;;  %v2161_v0 = vand.u32 2147483647, %v2033_v26  ;;  %v2303_v48 = vsub.f32 1.0, %v2175_v30  ;;  %v2205_v14 = vand.u32 2147483647, %v2077_v8  ;;  %v7262_v30 = vld [vmem:[#allocation24_spill] sm:$0xff] }
 0x326   : > { %v3583_v41 = vrot.slane %v3038_v22, %v5886_v25  ;;  %2895 = vadd.xlane.f32.xlu1 %v2678_v32  ;;  %2925 = vadd.xlane.f32.xlu0 %v2693_v7  ;;  %v2318_v22 = vsub.f32 1.0, %v2190_v20  ;;  %v2220_v32 = vand.u32 2147483647, %v2092_v31  ;;  %v7263_v49 = vld [vmem:[#allocation130_spill] sm:$0xff]  ;;  %v2603_v21 = vmul.f32 %v7105_v24, %v5867_v62 }
 0x327   : > { %v2760_v29 = vpop.xlane.xlu1 %2759  ;;  %v3266_v42 = vrot.slane %v2978_v63, %v6022_v60  ;;  %v991_v20 = vsub.f32 %v7246_v15, %v7263_v49  ;;  %v7264_v31 = vld [vmem:[#allocation34_spill] sm:$0xff]  ;;  %v2162_v63 = vand.u32 2147483647, %v2034_v23  ;;  %v2619_v23 = vmul.f32 %v7110_v55, %v5992_v1 }
 0x328   : > { %v3584_v46 = vsel %vm3239_vm0, %v3583_v41, %v3579_v9  ;;  %v2994_v10 = vadd.f32 %v2760_v29, %v7260_v16  ;;  %v2790_v3 = vpop.xlane.xlu0 %2789  ;;  %v2107_v9 = vsub.f32 %v5450_v50, %v7245_v34  ;;  %v1592_v41 = vmul.f32 %v7262_v30, %v1374_v47 }
 0x329   : > { %v6041_v17 = vsel %vm3267_vm4, %v3266_v42, %v3261_v27  ;;  %v3009_v58 = vadd.f32 %v2790_v3, %v7261_v36  ;;  %v2289_v34 = vsub.f32 1.0, %v2161_v0  ;;  %v2431_v27 = vmax.f32 %v2303_v48, 0.0 }
 0x32a   : > { %v3366_v11 = vrot.slane %v2994_v10, %v6022_v60  ;;  %2955 = vadd.xlane.f32.xlu1 %v2708_v54  ;;  %1840 = vadd.xlane.f32.xlu0 %v1592_v41  ;;  %v2446_v7 = vmax.f32 %v2318_v22, 0.0  ;;  %v2333_v16 = vsub.f32 1.0, %v2205_v14  ;;  %v2235_v54 = vand.u32 2147483647, %v2107_v9  ;;  %v7266_v9 = vld [vmem:[#allocation92_spill] sm:$0xff] }
 0x32b   : > { %v2820_v26 = vpop.xlane.xlu1 %2819  ;;  %v3440_v29 = vrot.slane %v3009_v58, %v5980_v56  ;;  %v2348_v48 = vsub.f32 1.0, %v2220_v32  ;;  %v1119_v3 = vand.u32 2147483647, %v991_v20  ;;  %v2634_v14 = vmul.f32 %v7119_v59, %v2416_v57 }
 0x32c   : > { %v6048_v8 = vsel %vm3267_vm4, %v3366_v11, %v3362_v6  ;;  %v3024_v39 = vadd.f32 %v2820_v26, %v7264_v31  ;;  %v2850_v10 = vpop.xlane.xlu0 %2849  ;;  %v3269_v6 = vadd.s32 4294967248, %v7082_v51  ;;  %v7265_v11 = vld [vmem:[#allocation96_spill] sm:$0xff]  ;;  %v6068_v36 = vmax.f32 %v2274_v13, 0.0 }
 0x32d   : > { %v6057_v42 = vsel %vm3260_vm3, %v3440_v29, %v3436_v52  ;;  %v3039_v62 = vadd.f32 %v2850_v10, %v7265_v11  ;;  %v2048_v52 = vsub.f32 %v5450_v50, %v7266_v9  ;;  %v6074_v1 = vmax.f32 %v2289_v34, 0.0  ;;  %v7267_v34 = vld [vmem:[#allocation141_spill] sm:$0xff] }
 0x32e   : > { %v3514_v47 = vrot.slane %v3024_v39, %v5939_v40  ;;  %2745 = vadd.xlane.f32.xlu1 %v2603_v21  ;;  %2777 = vadd.xlane.f32.xlu0 %v2619_v23  ;;  %v2290_v32 = vsub.f32 1.0, %v2162_v63  ;;  %v2461_v41 = vmax.f32 %v2333_v16, 0.0  ;;  %v6077_v57 = vsub.s32 %v3269_v6, %v7230_v44 }
 0x32f   : > { %v2878_v0 = vpop.xlane.xlu1 %2877  ;;  %v3588_v58 = vrot.slane %v3039_v62, %v5904_v33  ;;  %v2363_v12 = vsub.f32 1.0, %v2235_v54  ;;  %v2649_v39 = vmul.f32 %v7132_v19, %v2431_v27  ;;  %v1247_v21 = vsub.f32 1.0, %v1119_v3  ;;  %v7270_v27 = vld [vmem:[#allocation118_spill] sm:$0xff] }
 0x330   : > { %v6063_v22 = vsel %vm3253_vm2, %v3514_v47, %v3510_v43  ;;  %v3053_v26 = vadd.f32 %v2878_v0, %v5654_v37  ;;  %v2880_v43 = vpop.xlane.xlu0 %2879  ;;  %v2476_v37 = vmax.f32 %v2348_v48, 0.0  ;;  %v2664_v63 = vmul.f32 %v7142_v53, %v2446_v7  ;;  %v7271_v48 = vld [vmem:[#allocation150_spill] sm:$0xff] }
 0x331   : > { %v6080_v13 = vsel %vm3246_vm1, %v3588_v58, %v3584_v46  ;;  %v3054_v20 = vadd.f32 %v2880_v43, %v5660_v61  ;;  %v2176_v16 = vand.u32 2147483647, %v2048_v52  ;;  %v7268_v46 = vld [vmem:[#allocation95_spill] sm:$0xff]  ;;  %v7269_v61 = vld [vmem:[#allocation108_spill] sm:$0xff]  ;;  %v2078_v11 = vsub.f32 %v5450_v50, %v7270_v27 }
 0x332   : > { %2807 = vadd.xlane.f32.xlu1 %v2634_v14  ;;  %v3658_v47 = vrot.slane %v3053_v26, %v5882_v38  ;;  %2837 = vadd.xlane.f32.xlu0 %v2649_v39  ;;  %v2049_v6 = vsub.f32 %v5450_v50, %v7268_v46  ;;  %v2063_v54 = vsub.f32 %v5450_v50, %v7269_v61  ;;  %v2491_v0 = vmax.f32 %v2363_v12, 0.0  ;;  %v7272_v26 = vld [vmem:[#allocation161_spill] sm:$0xff]  ;;  %v7273_v12 = vld [vmem:[#allocation94_spill] sm:$0xff] }
 0x333   : > { %v2730_v31 = vpop.xlane.xlu1 %2729  ;;  %v3662_v10 = vrot.slane %v3054_v20, %v5886_v25  ;;  %v2679_v9 = vmul.f32 %v7153_v2, %v2461_v41  ;;  %v1375_v52 = vmax.f32 %v1247_v21, 0.0  ;;  %v2694_v20 = vmul.f32 %v7164_v28, %v2476_v37  ;;  %v7274_v21 = vld [vmem:[#allocation122_spill] sm:$0xff] }
 0x334   : > { %v2979_v29 = vadd.f32 %v2730_v31, %v7267_v34  ;;  %v2762_v7 = vpop.xlane.xlu0 %2761  ;;  %v6104_v31 = vmax.f32 %v2290_v32, 0.0  ;;  %v2304_v39 = vsub.f32 1.0, %v2176_v16  ;;  %v2050_v34 = vsub.f32 %v5450_v50, %v7273_v12  ;;  %v7275_v16 = vld [vmem:[#allocation64_spill] sm:$0xff] }
 0x335   : > { %v3663_v23 = vsel %vm3239_vm0, %v3662_v10, %v3658_v47  ;;  %v2995_v3 = vadd.f32 %v2762_v7, %v7271_v48  ;;  %v2191_v41 = vand.u32 2147483647, %v2063_v54  ;;  %v2206_v37 = vand.u32 2147483647, %v2078_v11 }
 0x336   : > { %v3273_v62 = vrot.slane %v2979_v29, %v6077_v57  ;;  %2867 = vadd.xlane.f32.xlu1 %v2664_v63  ;;  %2897 = vadd.xlane.f32.xlu0 %v2679_v9  ;;  %v6109_v63 = vand.u32 2147483647, %v2049_v6  ;;  %v2709_v27 = vmul.f32 %v7180_v5, %v2491_v0  ;;  %v2108_v6 = vsub.f32 %v5450_v50, %v7263_v49 }
 0x337   : > { %v2792_v14 = vpop.xlane.xlu1 %2791  ;;  %v3371_v29 = vrot.slane %v2995_v3, %v6077_v57  ;;  %v1593_v11 = vmul.f32 %v7262_v30, %v1375_v52  ;;  %v2432_v48 = vmax.f32 %v2304_v39, 0.0  ;;  %v6128_v3 = vand.u32 2147483647, %v2050_v34 }
 0x338   : > { %v6100_v58 = vsel %vm3274_vm5, %v3273_v62, %v6041_v17  ;;  %v3010_v43 = vadd.f32 %v2792_v14, %v7272_v26  ;;  %v2093_v17 = vsub.f32 %v5450_v50, %v7274_v21  ;;  %v2822_v10 = vpop.xlane.xlu0 %2821  ;;  %v7276_v62 = vld [vmem:[#allocation36_spill] sm:$0xff]  ;;  %v2319_v0 = vsub.f32 1.0, %v2191_v41 }
 0x339   : > { %v6116_v32 = vsel %vm3274_vm5, %v3371_v29, %v6048_v8  ;;  %v3025_v46 = vadd.f32 %v2822_v10, %v7275_v16  ;;  %v7277_v8 = vld [vmem:[#allocation111_spill] sm:$0xff]  ;;  %v2604_v29 = vmul.f32 %v7105_v24, %v5869_v35  ;;  %v2334_v41 = vsub.f32 1.0, %v2206_v37  ;;  %v7279_v24 = vld [vmem:[#allocation110_spill] sm:$0xff] }
 0x33a   : > { %v3445_v47 = vrot.slane %v3010_v43, %v6022_v60  ;;  %2927 = vadd.xlane.f32.xlu1 %v2694_v20  ;;  %v2064_v14 = vsub.f32 %v5450_v50, %v7277_v8  ;;  %2957 = vadd.xlane.f32.xlu0 %v2709_v27  ;;  %v2221_v26 = vand.u32 2147483647, %v2093_v17  ;;  %v3276_v43 = vadd.s32 4294967240, %v7082_v51  ;;  %v7278_v20 = vld [vmem:[#allocation129_spill] sm:$0xff] }
 0x33b   : > { %v2852_v61 = vpop.xlane.xlu1 %2851  ;;  %v3519_v9 = vrot.slane %v3025_v46, %v5980_v56  ;;  %v992_v52 = vsub.f32 %v7246_v15, %v7278_v20  ;;  %v2236_v21 = vand.u32 2147483647, %v2108_v6  ;;  %v2305_v10 = vsub.f32 1.0, %v6109_v63 }
 0x33c   : > { %v6124_v54 = vsel %vm3267_vm4, %v3445_v47, %v6057_v42  ;;  %v3040_v7 = vadd.f32 %v2852_v61, %v7276_v62  ;;  %v2882_v42 = vpop.xlane.xlu0 %2881  ;;  %v2620_v47 = vmul.f32 %v7110_v55, %v6068_v36  ;;  %v6151_v16 = vand.u32 2147483647, %v2064_v14  ;;  %v7281_v14 = vld [vmem:[#allocation113_spill] sm:$0xff] }
 0x33d   : > { %v6139_v39 = vsel %vm3260_vm3, %v3519_v9, %v6063_v22  ;;  %v3055_v12 = vadd.f32 %v2882_v42, %v5664_v4  ;;  %v2447_v46 = vmax.f32 %v2319_v0, 0.0  ;;  %v2065_v35 = vsub.f32 %v5450_v50, %v7279_v24 }
 0x33e   : > { %v3593_v49 = vrot.slane %v3040_v7, %v5939_v40  ;;  %1842 = vadd.xlane.f32.xlu1 %v1593_v11  ;;  %2747 = vadd.xlane.f32.xlu0 %v2604_v29  ;;  %v2349_v37 = vsub.f32 1.0, %v2221_v26  ;;  %v6158_v61 = vsub.s32 %v3276_v43, %v7230_v44  ;;  %v1120_v55 = vand.u32 2147483647, %v992_v52  ;;  %v7280_v7 = vld [vmem:[#allocation112_spill] sm:$0xff] }
 0x33f   : > { %v2910_v34 = vpop.xlane.xlu1 %2909  ;;  %v3667_v22 = vrot.slane %v3055_v12, %v5904_v33  ;;  %v2462_v6 = vmax.f32 %v2334_v41, 0.0  ;;  %v2364_v62 = vsub.f32 1.0, %v2236_v21  ;;  %v2650_v8 = vmul.f32 %v7132_v19, %v2432_v48 }
 0x340   : > { %v6146_v17 = vsel %vm3253_vm2, %v3593_v49, %v6080_v13  ;;  %v3069_v4 = vadd.f32 %v2910_v34, %v5734_v18  ;;  %v2912_v13 = vpop.xlane.xlu0 %2911  ;;  %v2635_v18 = vmul.f32 %v7119_v59, %v6074_v1  ;;  %v2066_v9 = vsub.f32 %v5450_v50, %v7281_v14  ;;  %v7283_v1 = vld [vmem:[#allocation125_spill] sm:$0xff]  ;;  %v7284_v34 = vld [vmem:[#allocation151_spill] sm:$0xff] }
 0x341   : > { %v6161_v36 = vsel %vm3246_vm1, %v3667_v22, %v3663_v23  ;;  %v3070_v63 = vadd.f32 %v2912_v13, %v5740_v45  ;;  %v7282_v45 = vld [vmem:[#allocation117_spill] sm:$0xff]  ;;  %v2477_v49 = vmax.f32 %v2349_v37, 0.0  ;;  %v2094_v42 = vsub.f32 %v5450_v50, %v7283_v1 }
 0x342   : > { %2779 = vadd.xlane.f32.xlu1 %v2620_v47  ;;  %v3737_v0 = vrot.slane %v3069_v4, %v5882_v38  ;;  %2809 = vadd.xlane.f32.xlu0 %v2635_v18  ;;  %v2079_v26 = vsub.f32 %v5450_v50, %v7282_v45  ;;  %v1248_v52 = vsub.f32 1.0, %v1120_v55  ;;  %v2665_v21 = vmul.f32 %v7142_v53, %v2447_v46  ;;  %v7285_v4 = vld [vmem:[#allocation17_spill] sm:$0xff] }
 0x343   : > { %v2732_v27 = vpop.xlane.xlu1 %2731  ;;  %v3741_v23 = vrot.slane %v3070_v63, %v5886_v25  ;;  %v2492_v47 = vmax.f32 %v2364_v62, 0.0  ;;  %v2680_v37 = vmul.f32 %v7153_v2, %v2462_v6  ;;  %v2306_v13 = vsub.f32 1.0, %v6128_v3  ;;  %v7286_v62 = vld [vmem:[#allocation132_spill] sm:$0xff] }
 0x344   : > { %v2980_v11 = vadd.f32 %v2732_v27, %v7280_v7  ;;  %v2764_v48 = vpop.xlane.xlu0 %2763  ;;  %v2320_v55 = vsub.f32 1.0, %v6151_v16  ;;  %v6190_v63 = vand.u32 2147483647, %v2065_v35  ;;  %v2207_v18 = vand.u32 2147483647, %v2079_v26  ;;  %v7287_v16 = vld [vmem:[#allocation23_spill] sm:$0xff] }
 0x345   : > { %v6178_v12 = vsel %vm3239_vm0, %v3741_v23, %v3737_v0  ;;  %v2996_v29 = vadd.f32 %v2764_v48, %v7284_v34  ;;  %v2109_v46 = vsub.f32 %v5450_v50, %v7278_v20  ;;  %v2695_v14 = vmul.f32 %v7164_v28, %v2477_v49  ;;  %v7288_v34 = vld [vmem:[#allocation38_spill] sm:$0xff] }
 0x346   : > { %v3280_v43 = vrot.slane %v2980_v11, %v6158_v61  ;;  %2839 = vadd.xlane.f32.xlu1 %v2650_v8  ;;  %2869 = vadd.xlane.f32.xlu0 %v2665_v21  ;;  %v1376_v11 = vmax.f32 %v1248_v52, 0.0  ;;  %v6206_v0 = vand.u32 2147483647, %v2066_v9  ;;  %v2222_v20 = vand.u32 2147483647, %v2094_v42 }
 0x347   : > { %v2794_v41 = vpop.xlane.xlu1 %2793  ;;  %v3376_v27 = vrot.slane %v2996_v29, %v6158_v61  ;;  %v2710_v45 = vmul.f32 %v7180_v5, %v2492_v47  ;;  %v2433_v26 = vmax.f32 %v2305_v10, 0.0  ;;  %v6213_v1 = vmax.f32 %v2306_v13, 0.0  ;;  %v7290_v13 = vld [vmem:[#allocation120_spill] sm:$0xff] }
 0x348   : > { %v6184_v22 = vsel %vm3281_vm6, %v3280_v43, %v6100_v58  ;;  %v3011_v24 = vadd.f32 %v2794_v41, %v7285_v4  ;;  %v993_v58 = vsub.f32 %v7246_v15, %v7286_v62  ;;  %v2824_v6 = vpop.xlane.xlu0 %2823  ;;  %v2448_v43 = vmax.f32 %v2320_v55, 0.0  ;;  %v7289_v4 = vld [vmem:[#allocation56_spill] sm:$0xff] }
 0x349   : > { %v6200_v3 = vsel %vm3281_vm6, %v3376_v27, %v6116_v32  ;;  %v3026_v35 = vadd.f32 %v2824_v6, %v7287_v16  ;;  %v2321_v48 = vsub.f32 1.0, %v6190_v63  ;;  %v2335_v52 = vsub.f32 1.0, %v2207_v18  ;;  %v7291_v63 = vld [vmem:[#allocation119_spill] sm:$0xff] }
 0x34a   : > { %v3450_v7 = vrot.slane %v3011_v24, %v6077_v57  ;;  %2899 = vadd.xlane.f32.xlu1 %v2680_v37  ;;  %2929 = vadd.xlane.f32.xlu0 %v2695_v14  ;;  %v2237_v49 = vand.u32 2147483647, %v2109_v46  ;;  %v1121_v42 = vand.u32 2147483647, %v993_v58  ;;  %v1594_v41 = vmul.f32 %v7262_v30, %v1376_v11  ;;  %v7292_v58 = vld [vmem:[#allocation124_spill] sm:$0xff] }
 0x34b   : > { %v6203_v8 = vpop.xlane.xlu1 %2853  ;;  %v3524_v32 = vrot.slane %v3026_v35, %v6022_v60  ;;  %v2322_v21 = vsub.f32 1.0, %v6206_v0  ;;  %v2350_v47 = vsub.f32 1.0, %v2222_v20  ;;  %v2636_v37 = vmul.f32 %v7119_v59, %v6104_v31  ;;  %v7293_v35 = vld [vmem:[#allocation75_spill] sm:$0xff] }
 0x34c   : > { %v6210_v23 = vsel %vm3274_vm5, %v3450_v7, %v6124_v54  ;;  %v2884_v9 = vpop.xlane.xlu0 %2883  ;;  %v2080_v55 = vsub.f32 %v5450_v50, %v7290_v13  ;;  %v3283_v18 = vadd.s32 4294967232, %v7082_v51  ;;  %v2463_v46 = vmax.f32 %v2335_v52, 0.0  ;;  %v7294_v52 = vld [vmem:[#allocation88_spill] sm:$0xff] }
 0x34d   : > { %v6219_v54 = vsel %vm3267_vm4, %v3524_v32, %v6139_v39  ;;  %v3056_v29 = vadd.f32 %v2884_v9, %v7288_v34  ;;  %v2081_v39 = vsub.f32 %v5450_v50, %v7291_v63  ;;  %v2095_v7 = vsub.f32 %v5450_v50, %v7292_v58 }
 0x34e   : > { %2959 = vadd.xlane.f32.xlu1 %v2710_v45  ;;  %1844 = vadd.xlane.f32.xlu0 %v1594_v41  ;;  %v2365_v6 = vsub.f32 1.0, %v2237_v49  ;;  %v1249_v31 = vsub.f32 1.0, %v1121_v42  ;;  %v2651_v20 = vmul.f32 %v7132_v19, %v2433_v26  ;;  %v2478_v45 = vmax.f32 %v2350_v47, 0.0  ;;  %v7295_v41 = vld [vmem:[#allocation131_spill] sm:$0xff] }
 0x34f   : > { %v2914_v10 = vpop.xlane.xlu1 %2913  ;;  %v3672_v27 = vrot.slane %v3056_v29, %v5939_v40  ;;  %v2666_v9 = vmul.f32 %v7142_v53, %v2448_v43  ;;  %v2208_v34 = vand.u32 2147483647, %v2080_v55  ;;  %v2209_v42 = vand.u32 2147483647, %v2081_v39  ;;  %v7297_v39 = vld [vmem:[#allocation152_spill] sm:$0xff] }
 0x350   : > { %v3071_v24 = vadd.f32 %v2914_v10, %v7289_v4  ;;  %v2942_v59 = vpop.xlane.xlu0 %2941  ;;  %v2223_v10 = vand.u32 2147483647, %v2095_v7  ;;  %v2110_v26 = vsub.f32 %v5450_v50, %v7286_v62  ;;  %v2493_v43 = vmax.f32 %v2365_v6, 0.0 }
 0x351   : > { %v6238_v16 = vsel %vm3253_vm2, %v3672_v27, %v6161_v36  ;;  %v3085_v14 = vadd.f32 %v2942_v59, %v7293_v35  ;;  %v6250_v36 = vsub.s32 %v3283_v18, %v7230_v44  ;;  %v2681_v55 = vmul.f32 %v7153_v2, %v2463_v46  ;;  %v7298_v59 = vld [vmem:[#allocation52_spill] sm:$0xff] }
 0x352   : > { %v3746_v11 = vrot.slane %v3071_v24, %v5904_v33  ;;  %2811 = vadd.xlane.f32.xlu1 %v2636_v37  ;;  %2841 = vadd.xlane.f32.xlu0 %v2651_v20  ;;  %v1377_v24 = vmax.f32 %v1249_v31, 0.0  ;;  %v7296_v37 = vld [vmem:[#allocation142_spill] sm:$0xff]  ;;  %v2696_v27 = vmul.f32 %v7164_v28, %v2478_v45  ;;  %v2449_v18 = vmax.f32 %v2321_v48, 0.0 }
 0x353   : > { %v2944_v0 = vpop.xlane.xlu1 %2943  ;;  %v3816_v29 = vrot.slane %v3085_v14, %v5882_v38  ;;  %v6264_v58 = vmax.f32 %v2322_v21, 0.0  ;;  %v2337_v6 = vsub.f32 1.0, %v2209_v42  ;;  %v3041_v46 = vadd.f32 %v6203_v8, %v7298_v59  ;;  %v7299_v48 = vld [vmem:[#allocation162_spill] sm:$0xff] }
 0x354   : > { %v6244_v32 = vsel %vm3246_vm1, %v3746_v11, %v6178_v12  ;;  %v3086_v49 = vadd.f32 %v2944_v0, %v7294_v52  ;;  %v994_v12 = vsub.f32 %v7246_v15, %v7295_v41  ;;  %v2734_v4 = vpop.xlane.xlu0 %2733  ;;  %v2351_v11 = vsub.f32 1.0, %v2223_v10  ;;  %v7300_v8 = vld [vmem:[#allocation50_spill] sm:$0xff] }
 0x355   : > { %v2981_v13 = vadd.f32 %v2734_v4, %v7296_v37  ;;  %v2238_v14 = vand.u32 2147483647, %v2110_v26  ;;  %v2711_v45 = vmul.f32 %v7180_v5, %v2493_v43  ;;  %v2465_v59 = vmax.f32 %v2337_v6, 0.0  ;;  %v7306_v6 = vld [vmem:[#allocation73_spill] sm:$0xff] }
 0x356   : > { %v3820_v47 = vrot.slane %v3086_v49, %v5886_v25  ;;  %2871 = vadd.xlane.f32.xlu1 %v2666_v9  ;;  %v2336_v25 = vsub.f32 1.0, %v2208_v34  ;;  %2901 = vadd.xlane.f32.xlu0 %v2681_v55  ;;  %v1122_v52 = vand.u32 2147483647, %v994_v12  ;;  %v1595_v34 = vmul.f32 %v7262_v30, %v1377_v24 }
 0x357   : > { %v2766_v38 = vpop.xlane.xlu1 %2765  ;;  %v3287_v7 = vrot.slane %v2981_v13, %v6250_v36  ;;  %v2479_v4 = vmax.f32 %v2351_v11, 0.0  ;;  %v2111_v12 = vsub.f32 %v5450_v50, %v7295_v41  ;;  %v2366_v37 = vsub.f32 1.0, %v2238_v14  ;;  %v7305_v14 = vld [vmem:[#allocation134_spill] sm:$0xff] }
 0x358   : > { %v6260_v63 = vsel %vm3239_vm0, %v3820_v47, %v3816_v29  ;;  %v2997_v62 = vadd.f32 %v2766_v38, %v7297_v39  ;;  %v2796_v35 = vpop.xlane.xlu0 %2795  ;;  %v2464_v42 = vmax.f32 %v2336_v25, 0.0  ;;  %v7301_v29 = vld [vmem:[#allocation121_spill] sm:$0xff]  ;;  %v7303_v38 = vld [vmem:[#allocation28_spill] sm:$0xff]  ;;  %v7304_v25 = vld [vmem:[#allocation54_spill] sm:$0xff]  ;;  %v2667_v11 = vmul.f32 %v7142_v53, %v2449_v18 }
 0x359   : > { %v6272_v0 = vsel %vm3288_vm7, %v3287_v7, %v6184_v22  ;;  %v3012_v21 = vadd.f32 %v2796_v35, %v7299_v48  ;;  %v2082_v10 = vsub.f32 %v5450_v50, %v7301_v29  ;;  %v7302_v22 = vld [vmem:[#allocation127_spill] sm:$0xff]  ;;  %v2239_v35 = vand.u32 2147483647, %v2111_v12 }
 0x35a   : > { %v3381_v31 = vrot.slane %v2997_v62, %v6250_v36  ;;  %2931 = vadd.xlane.f32.xlu1 %v2696_v27  ;;  %v2096_v26 = vsub.f32 %v5450_v50, %v7302_v22  ;;  %2961 = vadd.xlane.f32.xlu0 %v2711_v45  ;;  %v2652_v62 = vmul.f32 %v7132_v19, %v6213_v1  ;;  %v1250_v27 = vsub.f32 1.0, %v1122_v52 }
 0x35b   : > { %v2826_v20 = vpop.xlane.xlu1 %2825  ;;  %v3455_v47 = vrot.slane %v3012_v21, %v6158_v61  ;;  %v995_v19 = vsub.f32 %v7246_v15, %v7305_v14  ;;  %v2494_v21 = vmax.f32 %v2366_v37, 0.0  ;;  %v2682_v52 = vmul.f32 %v7153_v2, %v2464_v42 }
 0x35c   : > { %v6278_v49 = vsel %vm3288_vm7, %v3381_v31, %v6200_v3  ;;  %v3027_v9 = vadd.f32 %v2826_v20, %v7300_v8  ;;  %v3598_v3 = vrot.slane %v3041_v46, %v5980_v56  ;;  %v2856_v24 = vpop.xlane.xlu0 %2855  ;;  %v2224_v46 = vand.u32 2147483647, %v2096_v26  ;;  %v7308_v26 = vld [vmem:[#allocation126_spill] sm:$0xff] }
 0x35d   : > { %v6293_v13 = vsel %vm3281_vm6, %v3455_v47, %v6210_v23  ;;  %v3042_v55 = vadd.f32 %v2856_v24, %v7303_v38  ;;  %v3290_v31 = vadd.s32 4294967224, %v7082_v51  ;;  %v1378_v8 = vmax.f32 %v1250_v27, 0.0  ;;  %v7309_v38 = vld [vmem:[#allocation114_spill] sm:$0xff] }
 0x35e   : > { %v3529_v43 = vrot.slane %v3027_v9, %v6077_v57  ;;  %1846 = vadd.xlane.f32.xlu1 %v1595_v34  ;;  %2843 = vadd.xlane.f32.xlu0 %v2652_v62  ;;  %v3599_v1 = vsel %vm3260_vm3, %v3598_v3, %v6146_v17  ;;  %v7307_v34 = vld [vmem:[#allocation44_spill] sm:$0xff]  ;;  %v2697_v29 = vmul.f32 %v7164_v28, %v2479_v4  ;;  %v2210_v22 = vand.u32 2147483647, %v2082_v10 }
 0x35f   : > { %v2886_v39 = vpop.xlane.xlu1 %2885  ;;  %v3603_v23 = vrot.slane %v3042_v55, %v6022_v60  ;;  %v2097_v47 = vsub.f32 %v5450_v50, %v7308_v26  ;;  %v6326_v3 = vsub.s32 %v3290_v31, %v7230_v44  ;;  %v2352_v42 = vsub.f32 1.0, %v2224_v46 }
 0x360   : > { %v6300_v41 = vsel %vm3274_vm5, %v3529_v43, %v6219_v54  ;;  %v3057_v7 = vadd.f32 %v2886_v39, %v7304_v25  ;;  %v2916_v48 = vpop.xlane.xlu0 %2915  ;;  %v2367_v43 = vsub.f32 1.0, %v2239_v35  ;;  %v1123_v4 = vand.u32 2147483647, %v995_v19  ;;  %v7310_v25 = vld [vmem:[#allocation153_spill] sm:$0xff] }
 0x361   : > { %v6312_v18 = vsel %vm3267_vm4, %v3603_v23, %v3599_v1  ;;  %v3072_v20 = vadd.f32 %v2916_v48, %v7306_v6  ;;  %v2712_v62 = vmul.f32 %v7180_v5, %v2494_v21  ;;  %v2225_v46 = vand.u32 2147483647, %v2097_v47  ;;  %v7311_v23 = vld [vmem:[#allocation128_spill] sm:$0xff]  ;;  %v7312_v19 = vld [vmem:[#allocation133_spill] sm:$0xff]  ;;  %v7313_v6 = vld [vmem:[#allocation163_spill] sm:$0xff] }
 0x362   : > { %v3677_v54 = vrot.slane %v3057_v7, %v5980_v56  ;;  %2873 = vadd.xlane.f32.xlu1 %v2667_v11  ;;  %2903 = vadd.xlane.f32.xlu0 %v2682_v52  ;;  %v2338_v11 = vsub.f32 1.0, %v2210_v22  ;;  %v2480_v35 = vmax.f32 %v2352_v42, 0.0  ;;  %v996_v1 = vsub.f32 %v7246_v15, %v7312_v19 }
 0x363   : > { %v2946_v45 = vpop.xlane.xlu1 %2945  ;;  %v3751_v12 = vrot.slane %v3072_v20, %v5939_v40  ;;  %v1251_v48 = vsub.f32 1.0, %v1123_v4  ;;  %v2668_v52 = vmul.f32 %v7142_v53, %v6264_v58  ;;  %v2683_v22 = vmul.f32 %v7153_v2, %v2465_v59  ;;  %v7315_v53 = vld [vmem:[#allocation136_spill] sm:$0xff] }
 0x364   : > { %v6318_v9 = vsel %vm3260_vm3, %v3677_v54, %v6238_v16  ;;  %v3087_v17 = vadd.f32 %v2946_v45, %v7307_v34  ;;  %v2112_v16 = vsub.f32 %v5450_v50, %v7305_v14  ;;  %v2736_v37 = vpop.xlane.xlu0 %2735  ;;  %v2466_v26 = vmax.f32 %v2338_v11, 0.0 }
 0x365   : > { %v6333_v10 = vsel %vm3253_vm2, %v3751_v12, %v6244_v32  ;;  %v2982_v55 = vadd.f32 %v2736_v37, %v7309_v38  ;;  %v2098_v32 = vsub.f32 %v5450_v50, %v7311_v23  ;;  %v2353_v47 = vsub.f32 1.0, %v2225_v46  ;;  %v7316_v37 = vld [vmem:[#allocation69_spill] sm:$0xff] }
 0x366   : > { %v3825_v24 = vrot.slane %v3087_v17, %v5904_v33  ;;  %2933 = vadd.xlane.f32.xlu1 %v2697_v29  ;;  %v1596_v33 = vmul.f32 %v7262_v30, %v1378_v8  ;;  %2963 = vadd.xlane.f32.xlu0 %v2712_v62  ;;  %v2240_v14 = vand.u32 2147483647, %v2112_v16  ;;  %v2495_v8 = vmax.f32 %v2367_v43, 0.0  ;;  %v7314_v17 = vld [vmem:[#allocation67_spill] sm:$0xff] }
 0x367   : > { %v2768_v39 = vpop.xlane.xlu1 %2767  ;;  %v3294_v31 = vrot.slane %v2982_v55, %v6326_v3  ;;  %v2226_v12 = vand.u32 2147483647, %v2098_v32  ;;  %v1124_v42 = vand.u32 2147483647, %v996_v1  ;;  %v2113_v16 = vsub.f32 %v5450_v50, %v7312_v19  ;;  %v7318_v1 = vld [vmem:[#allocation86_spill] sm:$0xff] }
 0x368   : > { %v6339_v27 = vsel %vm3246_vm1, %v3825_v24, %v6260_v63  ;;  %v2998_v7 = vadd.f32 %v2768_v39, %v7310_v25  ;;  %v2798_v54 = vpop.xlane.xlu0 %2797  ;;  %v997_v58 = vsub.f32 %v7246_v15, %v7315_v53  ;;  %v1379_v24 = vmax.f32 %v1251_v48, 0.0  ;;  %v7317_v15 = vld [vmem:[#allocation71_spill] sm:$0xff] }
 0x369   : > { %v6351_v21 = vsel %vm3295_vm8, %v3294_v31, %v6272_v0  ;;  %v3013_v20 = vadd.f32 %v2798_v54, %v7313_v6  ;;  %v2698_v55 = vmul.f32 %v7164_v28, %v2480_v35  ;;  %v2368_v39 = vsub.f32 1.0, %v2240_v14 }
 0x36a   : > { %v3386_v63 = vrot.slane %v2998_v7, %v6326_v3  ;;  %1848 = vadd.xlane.f32.xlu1 %v1596_v33  ;;  %2875 = vadd.xlane.f32.xlu0 %v2668_v52  ;;  %v2713_v7 = vmul.f32 %v7180_v5, %v2495_v8  ;;  %v2481_v33 = vmax.f32 %v2353_v47, 0.0  ;;  %v2354_v11 = vsub.f32 1.0, %v2226_v12 }
 0x36b   : > { %v2828_v45 = vpop.xlane.xlu1 %2827  ;;  %v3460_v0 = vrot.slane %v3013_v20, %v6250_v36  ;;  %v1252_v23 = vsub.f32 1.0, %v1124_v42  ;;  %v2241_v32 = vand.u32 2147483647, %v2113_v16  ;;  %v2114_v31 = vsub.f32 %v5450_v50, %v7315_v53  ;;  %v7320_v16 = vld [vmem:[#allocation143_spill] sm:$0xff] }
 0x36c   : > { %v6358_v34 = vsel %vm3295_vm8, %v3386_v63, %v6278_v49  ;;  %v3028_v29 = vadd.f32 %v2828_v45, %v7314_v17  ;;  %v2858_v43 = vpop.xlane.xlu0 %2857  ;;  %v1125_v14 = vand.u32 2147483647, %v997_v58  ;;  %v1597_v48 = vmul.f32 %v7262_v30, %v1379_v24  ;;  %v7319_v45 = vld [vmem:[#allocation47_spill] sm:$0xff] }
 0x36d   : > { %v6370_v59 = vsel %vm3288_vm7, %v3460_v0, %v6293_v13  ;;  %v3043_v4 = vadd.f32 %v2858_v43, %v7316_v37  ;;  %v3297_v13 = vadd.s32 4294967216, %v7082_v51  ;;  %v2496_v6 = vmax.f32 %v2368_v39, 0.0  ;;  %v7322_v39 = vld [vmem:[#allocation33_spill] sm:$0xff] }
 0x36e   : > { %v3534_v49 = vrot.slane %v3028_v29, %v6158_v61  ;;  %2905 = vadd.xlane.f32.xlu1 %v2683_v22  ;;  %2935 = vadd.xlane.f32.xlu0 %v2698_v55  ;;  %v2684_v50 = vmul.f32 %v7153_v2, %v2466_v26  ;;  %v2482_v8 = vmax.f32 %v2354_v11, 0.0  ;;  %v2369_v22 = vsub.f32 1.0, %v2241_v32  ;;  %v7323_v11 = vld [vmem:[#allocation25_spill] sm:$0xff] }
 0x36f   : > { %v2888_v38 = vpop.xlane.xlu1 %2887  ;;  %v3608_v46 = vrot.slane %v3043_v4, %v6077_v57  ;;  %v6395_v29 = vsub.s32 %v3297_v13, %v7230_v44  ;;  %v2242_v47 = vand.u32 2147483647, %v2114_v31  ;;  %v1253_v42 = vsub.f32 1.0, %v1125_v14 }
 0x370   : > { %v6376_v62 = vsel %vm3281_vm6, %v3534_v49, %v6300_v41  ;;  %v3058_v25 = vadd.f32 %v2888_v38, %v7317_v15  ;;  %v2918_v41 = vpop.xlane.xlu0 %2917  ;;  %v2699_v53 = vmul.f32 %v7164_v28, %v2481_v33  ;;  %v7321_v49 = vld [vmem:[#allocation154_spill] sm:$0xff]  ;;  %v2714_v24 = vmul.f32 %v7180_v5, %v2496_v6 }
 0x371   : > { %v3609_v19 = vsel %vm3274_vm5, %v3608_v46, %v6312_v18  ;;  %v3073_v63 = vadd.f32 %v2918_v41, %v7318_v1  ;;  %v1380_v18 = vmax.f32 %v1252_v23, 0.0  ;;  %v2497_v37 = vmax.f32 %v2369_v22, 0.0  ;;  %v7324_v41 = vld [vmem:[#allocation82_spill] sm:$0xff] }
 0x372   : > { %v3682_v35 = vrot.slane %v3058_v25, %v6022_v60  ;;  %2965 = vadd.xlane.f32.xlu1 %v2713_v7  ;;  %1850 = vadd.xlane.f32.xlu0 %v1597_v48  ;;  %v2370_v38 = vsub.f32 1.0, %v2242_v47  ;;  %v1381_v7 = vmax.f32 %v1253_v42, 0.0  ;;  %v2700_v13 = vmul.f32 %v7164_v28, %v2482_v8  ;;  %v7325_v28 = vld [vmem:[#allocation84_spill] sm:$0xff]  ;;  %v7326_v8 = vld [vmem:[#allocation102_spill] sm:$0xff] }
 0x373   : > { %v2948_v54 = vpop.xlane.xlu1 %2947  ;;  %v3756_v17 = vrot.slane %v3073_v63, %v5980_v56  ;;  %v1598_v25 = vmul.f32 %v7262_v30, %v1380_v18  ;;  %v7327_v47 = vld [vmem:[#allocation46_spill] sm:$0xff]  ;;  %vm3892_vm0 = vcmask 1041409   ;;  %vm3894_vm1 = vcmask 1042434  }
 0x374   : > { %v3683_v20 = vsel %vm3267_vm4, %v3682_v35, %v6318_v9  ;;  %v3088_v52 = vadd.f32 %v2948_v54, %v7319_v45  ;;  %v2738_v0 = vpop.xlane.xlu0 %2737  ;;  %v2498_v31 = vmax.f32 %v2370_v38, 0.0  ;;  %v1599_v48 = vmul.f32 %v7262_v30, %v1381_v7  ;;  %v7331_v38 = vld [vmem:[#allocation81_spill] sm:$0xff]  ;;  %v7332_v7 = vld [vmem:[#allocation99_spill] sm:$0xff] }
 0x375   : > { %v3757_v9 = vsel %vm3260_vm3, %v3756_v17, %v6333_v10  ;;  %v2983_v2 = vadd.f32 %v2738_v0, %v7320_v16  ;;  %v3304_v45 = vadd.s32 4294967208, %v7082_v51 }
 0x376   : > { %v3830_v12 = vrot.slane %v3088_v52, %v5939_v40  ;;  %2907 = vadd.xlane.f32.xlu1 %v2684_v50  ;;  %2937 = vadd.xlane.f32.xlu0 %v2699_v53 }
 0x377   : > { %v2770_v26 = vpop.xlane.xlu1 %2769  ;;  %v3301_v40 = vrot.slane %v2983_v2, %v6395_v29  ;;  %v6436_v0 = vsub.s32 %v3304_v45, %v7230_v44  ;;  %v7328_v2 = vld [vmem:[#allocation144_spill] sm:$0xff] }
 0x378   : > { %v3831_v58 = vsel %vm3253_vm2, %v3830_v12, %v6339_v27  ;;  %v2999_v43 = vadd.f32 %v2770_v26, %v7321_v49  ;;  %v2800_v10 = vpop.xlane.xlu0 %2799  ;;  %vm3896_vm2 = vcmask 1043459  }
 0x379   : > { %v3303_v55 = vsel %vm3302_vm9, %v3301_v40, %v6351_v21  ;;  %v3014_v15 = vadd.f32 %v2800_v10, %v7322_v39 }
 0x37a   : > { %v3391_v4 = vrot.slane %v2999_v43, %v6395_v29  ;;  %2967 = vadd.xlane.f32.xlu1 %v2714_v24  ;;  %1852 = vadd.xlane.f32.xlu0 %v1598_v25 }
 0x37b   : > { %v2830_v27 = vpop.xlane.xlu1 %2829  ;;  %v3465_v23 = vrot.slane %v3014_v15, %v6326_v3 }
 0x37c   : > { %v3392_v33 = vsel %vm3302_vm9, %v3391_v4, %v6358_v34  ;;  %v3029_v46 = vadd.f32 %v2830_v27, %v7323_v11  ;;  %v2860_v21 = vpop.xlane.xlu0 %2859  ;;  %v2715_v34 = vmul.f32 %v7180_v5, %v2497_v37  ;;  %v7330_v4 = vld [vmem:[#allocation164_spill] sm:$0xff] }
 0x37d   : > { %v3466_v35 = vsel %vm3295_vm8, %v3465_v23, %v6370_v59  ;;  %v3044_v14 = vadd.f32 %v2860_v21, %v7324_v41  ;;  %v4467_v41 = vmov 0.0  }
 0x37e   : > { %v3539_v32 = vrot.slane %v3029_v46, %v6250_v36  ;;  %2939 = vadd.xlane.f32.xlu1 %v2700_v13  ;;  %2969 = vadd.xlane.f32.xlu0 %v2715_v34 }
 0x37f   : > { %v2890_v1 = vpop.xlane.xlu1 %2889  ;;  %v3613_v6 = vrot.slane %v3044_v14, %v6158_v61  ;;  %4162 = vmatprep.subr.mxu0 %v4467_v41  ;;  %4164 = vmatprep.mubr.msk.f32.mxu0 %vm4468_vm11, %v4467_v41 }
 0x380   : > { %v3540_v63 = vsel %vm3288_vm7, %v3539_v32, %v6376_v62  ;;  %v3059_v54 = vadd.f32 %v2890_v1, %v7325_v28  ;;  %v2920_v59 = vpop.xlane.xlu0 %2919  ;;  %v2716_v62 = vmul.f32 %v7180_v5, %v2498_v31  ;;  %v7334_v1 = vld [vmem:[#allocation43_spill] sm:$0xff] }
 0x381   : > { %v3614_v50 = vsel %vm3281_vm6, %v3613_v6, %v3609_v19  ;;  %v3074_v17 = vadd.f32 %v2920_v59, %v7326_v8  ;;  %v3989_v59 = vld [vmem:[%s6733_s4] sm:$0xff] }
 0x382   : > { %v3687_v52 = vrot.slane %v3059_v54, %v6077_v57  ;;  %1854 = vadd.xlane.f32.xlu1 %v1599_v48  ;;  %2971 = vadd.xlane.f32.xlu0 %v2716_v62  ;;  %v7335_v54 = vld [vmem:[#allocation104_spill] sm:$0xff]  ;;  %v7336_v8 = vld [vmem:[#allocation145_spill] sm:$0xff]  ;;  %v4469_v62 = vmov 0  }
 0x383   : > { %v2950_v18 = vpop.xlane.xlu1 %2949  ;;  %v3761_v12 = vrot.slane %v3074_v17, %v6022_v60  ;;  %4278 = vset.pattern.permute.xlu1 %v4469_v62  ;;  %4279 = vset.pattern.permute.xlu0 %v4469_v62 }
 0x384   : > { %v3688_v22 = vsel %vm3274_vm5, %v3687_v52, %v3683_v20  ;;  %v3089_v30 = vadd.f32 %v2950_v18, %v7327_v47  ;;  %v2740_v16 = vpop.xlane.xlu0 %2739  ;;  %v7329_v20 = vld [vmem:[#allocation155_spill] sm:$0xff]  ;;  %v7337_v47 = vld [vmem:[#allocation156_spill] sm:$0xff] }
 0x385   : > { %v3762_v19 = vsel %vm3267_vm4, %v3761_v12, %v3757_v9  ;;  %v2984_v26 = vadd.f32 %v2740_v16, %v7328_v2 }
 0x386   : > { %v3835_v42 = vrot.slane %v3089_v30, %v5980_v56 }
 0x387   : > { %v2772_v53 = vpop.xlane.xlu1 %2771  ;;  %v3308_v43 = vrot.slane %v2984_v26, %v6436_v0 }
 0x388   : > { %v3836_v5 = vsel %vm3260_vm3, %v3835_v42, %v3831_v58  ;;  %v3000_v49 = vadd.f32 %v2772_v53, %v7329_v20  ;;  %v2802_v40 = vpop.xlane.xlu0 %2801  ;;  %v7339_v20 = vld [vmem:[#allocation80_spill] sm:$0xff]  ;;  %vm3898_vm3 = vcmask 1044484  }
 0x389   : > { %v3310_v37 = vsel %vm3309_vm10, %v3308_v43, %v3303_v55  ;;  %v3015_v56 = vadd.f32 %v2802_v40, %v7330_v4  ;;  %v7333_v55 = vld [vmem:[#allocation101_spill] sm:$0xff]  ;;  %v7340_v4 = vld [vmem:[#allocation39_spill] sm:$0xff] }
 0x38a   : > { %v3396_v24 = vrot.slane %v3000_v49, %v6436_v0 }
 0x38b   : > { %v2832_v10 = vpop.xlane.xlu1 %2831  ;;  %v3470_v15 = vrot.slane %v3015_v56, %v6395_v29 }
 0x38c   : > { %v3397_v9 = vsel %vm3309_vm10, %v3396_v24, %v3392_v33  ;;  %v3030_v39 = vadd.f32 %v2832_v10, %v7331_v38  ;;  %v2862_v27 = vpop.xlane.xlu0 %2861  ;;  %v3311_v33 = vadd.s32 4294967200, %v7082_v51 }
 0x38d   : > { %v3471_v25 = vsel %vm3302_vm9, %v3470_v15, %v3466_v35  ;;  %v3045_v11 = vadd.f32 %v2862_v27, %v7332_v7 }
 0x38e   : > { %v3544_v58 = vrot.slane %v3030_v39, %v6326_v3  ;;  %v6464_v6 = vsub.s32 %v3311_v33, %v7230_v44 }
 0x38f   : > { %v2892_v46 = vpop.xlane.xlu1 %2891  ;;  %v3618_v32 = vrot.slane %v3045_v11, %v6250_v36  ;;  %v7342_v11 = vld [vmem:[#allocation59_spill] sm:$0xff] }
 0x390   : > { %v3545_v13 = vsel %vm3295_vm8, %v3544_v58, %v3540_v63  ;;  %v3060_v23 = vadd.f32 %v2892_v46, %v7333_v55  ;;  %v2922_v31 = vpop.xlane.xlu0 %2921 }
 0x391   : > { %v3619_v14 = vsel %vm3288_vm7, %v3618_v32, %v3614_v50  ;;  %v3075_v35 = vadd.f32 %v2922_v31, %v7334_v1  ;;  %v7344_v1 = vld [vmem:[#allocation146_spill] sm:$0xff] }
 0x392   : > { %v3692_v21 = vrot.slane %v3060_v23, %v6158_v61  ;;  %v7343_v23 = vld [vmem:[#allocation61_spill] sm:$0xff] }
 0x393   : > { %v2952_v34 = vpop.xlane.xlu1 %2951  ;;  %v3766_v48 = vrot.slane %v3075_v35, %v6077_v57  ;;  %3992 = vperm.xlu1 %4278, %v3989_v59   ;;  %v7346_v59 = vld [vmem:[#allocation165_spill] sm:$0xff] }
 0x394   : > { %v3693_v28 = vsel %vm3281_vm6, %v3692_v21, %v3688_v22  ;;  %v3090_v63 = vadd.f32 %v2952_v34, %v7335_v54  ;;  %v2742_v52 = vpop.xlane.xlu0 %2741  ;;  %v7345_v54 = vld [vmem:[#allocation22_spill] sm:$0xff] }
 0x395   : > { %v3767_v50 = vsel %vm3274_vm5, %v3766_v48, %v3762_v19  ;;  %v2985_v17 = vadd.f32 %v2742_v52, %v7336_v8  ;;  %v7338_v19 = vld [vmem:[#allocation35_spill] sm:$0xff] }
 0x396   : > { %v3840_v45 = vrot.slane %v3090_v63, %v6022_v60 }
 0x397   : > { %v2774_v18 = vpop.xlane.xlu1 %2773  ;;  %v3315_v30 = vrot.slane %v2985_v17, %v6464_v6  ;;  %v7347_v17 = vld [vmem:[#allocation37_spill] sm:$0xff] }
 0x398   : > { %v3841_v22 = vsel %vm3267_vm4, %v3840_v45, %v3836_v5  ;;  %v3001_v60 = vadd.f32 %v2774_v18, %v7337_v47  ;;  %v2804_v42 = vpop.xlane.xlu0 %2803  ;;  %vm3900_vm4 = vcmask 1045509  }
 0x399   : > { %v3317_v16 = vsel %vm3316_vm12, %v3315_v30, %v3310_v37  ;;  %v3016_v2 = vadd.f32 %v2804_v42, %v7338_v19  ;;  %v7341_v37 = vld [vmem:[#allocation30_spill] sm:$0xff]  ;;  %v7348_v30 = vld [vmem:[#allocation27_spill] sm:$0xff] }
 0x39a   : > { %v3401_v12 = vrot.slane %v3001_v60, %v6464_v6 }
 0x39b   : > { %v2834_v26 = vpop.xlane.xlu1 %2833  ;;  %v3475_v5 = vrot.slane %v3016_v2, %v6436_v0 }
 0x39c   : > { %v3402_v53 = vsel %vm3316_vm12, %v3401_v12, %v3397_v9  ;;  %v3031_v49 = vadd.f32 %v2834_v26, %v7339_v20  ;;  %v2864_v24 = vpop.xlane.xlu0 %2863  ;;  %v3318_v9 = vadd.s32 4294967192, %v7082_v51 }
 0x39d   : > { %v3476_v40 = vsel %vm3309_vm10, %v3475_v5, %v3471_v25  ;;  %v3046_v56 = vadd.f32 %v2864_v24, %v7340_v4 }
 0x39e   : > { %v3549_v43 = vrot.slane %v3031_v49, %v6395_v29  ;;  %v6495_v33 = vsub.s32 %v3318_v9, %v7230_v44  ;;  %v3325_v49 = vadd.s32 4294967184, %v7082_v51 }
 0x39f   : > { %v2894_v10 = vpop.xlane.xlu1 %2893  ;;  %v3623_v15 = vrot.slane %v3046_v56, %v6326_v3  ;;  %v7351_v56 = vld [vmem:[#allocation60_spill] sm:$0xff] }
 0x3a0   : > { %v3550_v38 = vsel %vm3302_vm9, %v3549_v43, %v3545_v13  ;;  %v3061_v39 = vadd.f32 %v2894_v10, %v7341_v37  ;;  %v2924_v27 = vpop.xlane.xlu0 %2923  ;;  %v7350_v43 = vld [vmem:[#allocation72_spill] sm:$0xff] }
 0x3a1   : > { %v3624_v7 = vsel %vm3295_vm8, %v3623_v15, %v3619_v14  ;;  %v3076_v46 = vadd.f32 %v2924_v27, %v7342_v11  ;;  %v6524_v15 = vsub.s32 %v3325_v49, %v7230_v44  ;;  %v7359_v49 = vld [vmem:[#allocation147_spill] sm:$0xff] }
 0x3a2   : > { %v3697_v58 = vrot.slane %v3061_v39, %v6250_v36 }
 0x3a3   : > { %v2954_v55 = vpop.xlane.xlu1 %2953  ;;  %v3771_v13 = vrot.slane %v3076_v46, %v6158_v61 }
 0x3a4   : > { %v3698_v25 = vsel %vm3288_vm7, %v3697_v58, %v3693_v28  ;;  %v3091_v32 = vadd.f32 %v2954_v55, %v7343_v23  ;;  %v2744_v31 = vpop.xlane.xlu0 %2743 }
 0x3a5   : > { %v3772_v41 = vsel %vm3281_vm6, %v3771_v13, %v3767_v50  ;;  %v2986_v35 = vadd.f32 %v2744_v31, %v7344_v1  ;;  %v7354_v13 = vld [vmem:[#allocation49_spill] sm:$0xff] }
 0x3a6   : > { %v3845_v21 = vrot.slane %v3091_v32, %v6077_v57 }
 0x3a7   : > { %v2776_v14 = vpop.xlane.xlu1 %2775  ;;  %v3322_v63 = vrot.slane %v2986_v35, %v6495_v33 }
 0x3a8   : > { %v3846_v34 = vsel %vm3274_vm5, %v3845_v21, %v3841_v22  ;;  %v3002_v28 = vadd.f32 %v2776_v14, %v7345_v54  ;;  %v2806_v45 = vpop.xlane.xlu0 %2805  ;;  %v7355_v14 = vld [vmem:[#allocation53_spill] sm:$0xff]  ;;  %vm3902_vm5 = vcmask 1046534  }
 0x3a9   : > { %v3324_v52 = vsel %vm3323_vm13, %v3322_v63, %v3317_v16  ;;  %v3017_v57 = vadd.f32 %v2806_v45, %v7346_v59  ;;  %v7349_v16 = vld [vmem:[#allocation41_spill] sm:$0xff]  ;;  %v7356_v63 = vld [vmem:[#allocation55_spill] sm:$0xff] }
 0x3aa   : > { %v3406_v48 = vrot.slane %v3002_v28, %v6495_v33 }
 0x3ab   : > { %v2836_v8 = vpop.xlane.xlu1 %2835  ;;  %v3480_v62 = vrot.slane %v3017_v57, %v6464_v6 }
 0x3ac   : > { %v3407_v50 = vsel %vm3323_vm13, %v3406_v48, %v3402_v53  ;;  %v3032_v18 = vadd.f32 %v2836_v8, %v7347_v17  ;;  %v2866_v47 = vpop.xlane.xlu0 %2865  ;;  %v7357_v8 = vld [vmem:[#allocation57_spill] sm:$0xff] }
 0x3ad   : > { %v3481_v60 = vsel %vm3316_vm12, %v3480_v62, %v3476_v40  ;;  %v3047_v12 = vadd.f32 %v2866_v47, %v7348_v30 }
 0x3ae   : > { %v3554_v22 = vrot.slane %v3032_v18, %v6436_v0 }
 0x3af   : > { %v2896_v42 = vpop.xlane.xlu1 %2895  ;;  %v3628_v26 = vrot.slane %v3047_v12, %v6395_v29 }
 0x3b0   : > { %v3555_v19 = vsel %vm3309_vm10, %v3554_v22, %v3550_v38  ;;  %v3062_v2 = vadd.f32 %v2896_v42, %v7349_v16  ;;  %v2926_v20 = vpop.xlane.xlu0 %2925 }
 0x3b1   : > { %v3629_v5 = vsel %vm3302_vm9, %v3628_v26, %v3624_v7  ;;  %v3077_v24 = vadd.f32 %v2926_v20, %v7350_v43  ;;  %v7352_v7 = vld [vmem:[#allocation21_spill] sm:$0xff] }
 0x3b2   : > { %v3702_v53 = vrot.slane %v3062_v2, %v6326_v3 }
 0x3b3   : > { %v2956_v4 = vpop.xlane.xlu1 %2955  ;;  %v3776_v38 = vrot.slane %v3077_v24, %v6250_v36  ;;  %v7360_v24 = vld [vmem:[#allocation158_spill] sm:$0xff] }
 0x3b4   : > { %v3703_v40 = vsel %vm3295_vm8, %v3702_v53, %v3698_v25  ;;  %v3092_v10 = vadd.f32 %v2956_v4, %v7351_v56  ;;  %v1841_v39 = vpop.xlane.xlu0 %1840  ;;  %v7353_v25 = vld [vmem:[#allocation157_spill] sm:$0xff] }
 0x3b5   : > { %v3777_v9 = vsel %vm3288_vm7, %v3776_v38, %v3772_v41 }
 0x3b6   : > { %v3850_v37 = vrot.slane %v3092_v10, %v6158_v61 }
 0x3b7   : > { %v2746_v58 = vpop.xlane.xlu1 %2745 }
 0x3b8   : > { %v3851_v27 = vsel %vm3281_vm6, %v3850_v37, %v3846_v34  ;;  %v2987_v11 = vadd.f32 %v2746_v58, %v7352_v7  ;;  %v2778_v55 = vpop.xlane.xlu0 %2777  ;;  %vm3904_vm6 = vcmask 1047559  }
 0x3b9   : > { %v3003_v23 = vadd.f32 %v2778_v55, %v7353_v25 }
 0x3ba   : > { %v3329_v46 = vrot.slane %v2987_v11, %v6524_v15 }
 0x3bb   : > { %v2808_v32 = vpop.xlane.xlu1 %2807  ;;  %v3411_v31 = vrot.slane %v3003_v23, %v6524_v15  ;;  %v7362_v23 = vld [vmem:[#allocation48_spill] sm:$0xff] }
 0x3bc   : > { %v3331_v61 = vsel %vm3330_vm14, %v3329_v46, %v3324_v52  ;;  %v3018_v21 = vadd.f32 %v2808_v32, %v7354_v13  ;;  %v2838_v1 = vpop.xlane.xlu0 %2837 }
 0x3bd   : > { %v3412_v35 = vsel %vm3330_vm14, %v3411_v31, %v3407_v50  ;;  %v3033_v34 = vadd.f32 %v2838_v1, %v7355_v14  ;;  %v7358_v50 = vld [vmem:[#allocation89_spill] sm:$0xff] }
 0x3be   : > { %v3485_v41 = vrot.slane %v3018_v21, %v6495_v33 }
 0x3bf   : > { %v2868_v54 = vpop.xlane.xlu1 %2867  ;;  %v3559_v45 = vrot.slane %v3033_v34, %v6464_v6  ;;  %v7363_v34 = vld [vmem:[#allocation26_spill] sm:$0xff] }
 0x3c0   : > { %v3486_v28 = vsel %vm3323_vm13, %v3485_v41, %v3481_v60  ;;  %v3048_v48 = vadd.f32 %v2868_v54, %v7356_v63  ;;  %v2898_v59 = vpop.xlane.xlu0 %2897  ;;  %v3332_v60 = vadd.s32 4294967176, %v7082_v51  ;;  %v7364_v63 = vld [vmem:[#allocation66_spill] sm:$0xff] }
 0x3c1   : > { %v3560_v57 = vsel %vm3316_vm12, %v3559_v45, %v3555_v19  ;;  %v3063_v17 = vadd.f32 %v2898_v59, %v7357_v8 }
 0x3c2   : > { %v3633_v52 = vrot.slane %v3048_v48, %v6436_v0  ;;  %v6560_v53 = vsub.s32 %v3332_v60, %v7230_v44 }
 0x3c3   : > { %v2928_v18 = vpop.xlane.xlu1 %2927  ;;  %v3707_v47 = vrot.slane %v3063_v17, %v6395_v29 }
 0x3c4   : > { %v6544_v62 = vsel %vm3309_vm10, %v3633_v52, %v3629_v5  ;;  %v3078_v22 = vadd.f32 %v2928_v18, %v7358_v50  ;;  %v2958_v12 = vpop.xlane.xlu0 %2957 }
 0x3c5   : > { %v6551_v42 = vsel %vm3302_vm9, %v3707_v47, %v3703_v40  ;;  %v3093_v16 = vadd.f32 %v2958_v12, %v1841_v39 }
 0x3c6   : > { %v3781_v30 = vrot.slane %v3078_v22, %v6326_v3 }
 0x3c7   : > { %v6553_v19 = vpop.xlane.xlu1 %1842  ;;  %v3855_v26 = vrot.slane %v3093_v16, %v6250_v36 }
 0x3c8   : > { %v6556_v2 = vsel %vm3295_vm8, %v3781_v30, %v3777_v9  ;;  %v2748_v20 = vpop.xlane.xlu0 %2747 }
 0x3c9   : > { %v6563_v51 = vsel %vm3288_vm7, %v3855_v26, %v3851_v27  ;;  %v2988_v5 = vadd.f32 %v2748_v20, %v7359_v49  ;;  %v7361_v27 = vld [vmem:[#allocation32_spill] sm:$0xff]  ;;  %vm3907_vm7 = vcmask 64512  }
 0x3ca   : > { %v7366_v26 = vld [vmem:[#allocation68_spill] sm:$0xff] }
 0x3cb   : > { %v2780_v43 = vpop.xlane.xlu1 %2779  ;;  %v3336_v40 = vrot.slane %v2988_v5, %v6560_v53  ;;  %v7367_v5 = vld [vmem:[#allocation85_spill] sm:$0xff] }
 0x3cc   : > { %v3004_v4 = vadd.f32 %v2780_v43, %v7360_v24  ;;  %v2810_v10 = vpop.xlane.xlu0 %2809  ;;  %v7368_v24 = vld [vmem:[#allocation98_spill] sm:$0xff] }
 0x3cd   : > { %v3338_v36 = vsel %vm3337_vm15, %v3336_v40, %v3331_v61  ;;  %v3019_v7 = vadd.f32 %v2810_v10, %v7361_v27 }
 0x3ce   : > { %v3416_v56 = vrot.slane %v3004_v4, %v6560_v53 }
 0x3cf   : > { %v2840_v44 = vpop.xlane.xlu1 %2839  ;;  %v3490_v55 = vrot.slane %v3019_v7, %v6524_v15  ;;  %v7370_v7 = vld [vmem:[#allocation70_spill] sm:$0xff] }
 0x3d0   : > { %v3417_v38 = vsel %vm3337_vm15, %v3416_v56, %v3412_v35  ;;  %v2870_v39 = vpop.xlane.xlu0 %2869  ;;  %v3034_v54 = vadd.f32 %v2840_v44, %v7363_v34  ;;  %v7373_v34 = vld [vmem:[#allocation31_spill] sm:$0xff] }
 0x3d1   : > { %v3893_v37 = vsel %vm3892_vm0, %v3417_v38, %v3338_v36  ;;  %v3491_v21 = vsel %vm3330_vm14, %v3490_v55, %v3486_v28  ;;  %v7365_v28 = vld [vmem:[#allocation83_spill] sm:$0xff]  ;;  %v3049_v20 = vadd.f32 %v2870_v39, %v7366_v26  ;;  %v7369_v38 = vld [vmem:[#allocation29_spill] sm:$0xff] }
 0x3d2   : > { %v3564_v59 = vrot.slane %v3034_v54, %v6495_v33  ;;  %v7377_v26 = vld [vmem:[#allocation167_spill] sm:$0xff] }
 0x3d3   : > { %v2900_v9 = vpop.xlane.xlu1 %2899 }
 0x3d4   : > { %v2930_v58 = vpop.xlane.xlu0 %2929  ;;  %v3565_v22 = vsel %vm3323_vm13, %v3564_v59, %v3560_v57  ;;  %v3638_v57 = vrot.slane %v3049_v20, %v6464_v6  ;;  %v3064_v55 = vadd.f32 %v2900_v9, %v7370_v7 }
 0x3d6   : > { %v3639_v39 = vsel %vm3316_vm12, %v3638_v57, %v6544_v62  ;;  %v3712_v62 = vrot.slane %v3064_v55, %v6436_v0  ;;  %v7379_v57 = vld [vmem:[#allocation58_spill] sm:$0xff] }
 0x3d7   : > { %v6572_v11 = vpop.xlane.xlu1 %2959 }
 0x3d8   : > { %v6574_v46 = vpop.xlane.xlu0 %1844 }
 0x3db   : > { %v2812_v25 = vpop.xlane.xlu1 %2811 }
 0x3dc   : > { %v3020_v32 = vadd.f32 %v2812_v25, %v7362_v23  ;;  %v2842_v13 = vpop.xlane.xlu0 %2841  ;;  %v7371_v23 = vld [vmem:[#allocation87_spill] sm:$0xff] }
 0x3dd   : > { %v3035_v48 = vadd.f32 %v2842_v13, %v7364_v63 }
 0x3de   : > { %v3495_v61 = vrot.slane %v3020_v32, %v6560_v53 }
 0x3df   : > { %v2872_v31 = vpop.xlane.xlu1 %2871  ;;  %v3569_v8 = vrot.slane %v3035_v48, %v6524_v15 }
 0x3e0   : > { %v3496_v41 = vsel %vm3337_vm15, %v3495_v61, %v3491_v21  ;;  %v2902_v35 = vpop.xlane.xlu0 %2901  ;;  %v3050_v43 = vadd.f32 %v2872_v31, %v7367_v5  ;;  %v7372_v21 = vld [vmem:[#allocation100_spill] sm:$0xff]  ;;  %v7378_v5 = vld [vmem:[#allocation42_spill] sm:$0xff] }
 0x3e1   : > { %v3895_v1 = vsel %vm3894_vm1, %v3496_v41, %v3893_v37  ;;  %v3570_v60 = vsel %vm3330_vm14, %v3569_v8, %v3565_v22  ;;  %v3065_v32 = vadd.f32 %v2902_v35, %v7371_v23  ;;  %v7374_v8 = vld [vmem:[#allocation103_spill] sm:$0xff]  ;;  %v7375_v22 = vld [vmem:[#allocation166_spill] sm:$0xff] }
 0x3e2   : > { %v3643_v10 = vrot.slane %v3050_v43, %v6495_v33 }
 0x3e3   : > { %v2932_v14 = vpop.xlane.xlu1 %2931  ;;  %v3717_v48 = vrot.slane %v3065_v32, %v6464_v6 }
 0x3e4   : > { %v6583_v45 = vpop.xlane.xlu0 %2961  ;;  %v3644_v25 = vsel %vm3323_vm13, %v3643_v10, %v3639_v39 }
 0x3e7   : > { %v6585_v52 = vpop.xlane.xlu1 %1846 }
 0x3e8   : > { %v2844_v17 = vpop.xlane.xlu0 %2843 }
 0x3e9   : > { %v3036_v18 = vadd.f32 %v2844_v17, %v7365_v28  ;;  %v3079_v17 = vadd.f32 %v2930_v58, %v7374_v8 }
 0x3eb   : > { %v2874_v50 = vpop.xlane.xlu1 %2873  ;;  %v3574_v47 = vrot.slane %v3036_v18, %v6560_v53 }
 0x3ec   : > { %v2904_v30 = vpop.xlane.xlu0 %2903  ;;  %v3051_v4 = vadd.f32 %v2874_v50, %v7368_v24  ;;  %v3713_v50 = vsel %vm3309_vm10, %v3712_v62, %v6551_v42 }
 0x3ed   : > { %v3575_v12 = vsel %vm3337_vm15, %v3574_v47, %v3570_v60  ;;  %v3066_v31 = vadd.f32 %v2904_v30, %v7372_v21  ;;  %v3080_v47 = vadd.f32 %v2932_v14, %v7375_v22  ;;  %v7376_v60 = vld [vmem:[#allocation40_spill] sm:$0xff] }
 0x3ee   : > { %v3897_v49 = vsel %vm3896_vm2, %v3575_v12, %v3895_v1  ;;  %v3648_v36 = vrot.slane %v3051_v4, %v6524_v15  ;;  %v3718_v12 = vsel %vm3316_vm12, %v3717_v48, %v3713_v50  ;;  %v3786_v4 = vrot.slane %v3079_v17, %v6395_v29  ;;  %v3101_v17 = vld [vmem:[%s7382_s10] sm:$0xff] }
 0x3ef   : > { %v2934_v16 = vpop.xlane.xlu1 %2933  ;;  %v3722_v35 = vrot.slane %v3066_v31, %v6495_v33 }
 0x3f0   : > { %v2964_v40 = vpop.xlane.xlu0 %2963  ;;  %v3649_v13 = vsel %vm3330_vm14, %v3648_v36, %v3644_v25  ;;  %v3081_v20 = vadd.f32 %v2934_v16, %v7377_v26  ;;  %v3791_v36 = vrot.slane %v3080_v47, %v6436_v0  ;;  %v3094_v16 = vadd.f32 %v6572_v11, %v6553_v19  ;;  %v7380_v11 = vld [vmem:[#allocation45_spill] sm:$0xff] }
 0x3f1   : > { %v3787_v55 = vsel %vm3302_vm9, %v3786_v4, %v6556_v2  ;;  %v3096_v25 = vadd.f32 %v2964_v40, %v6585_v52 }
 0x3f2   : > { %v3860_v21 = vrot.slane %v3094_v16, %v6326_v3 }
 0x3f3   : > { %v1849_v56 = vpop.xlane.xlu1 %1848  ;;  %v3870_v40 = vrot.slane %v3096_v25, %v6436_v0 }
 0x3f4   : > { %v2876_v44 = vpop.xlane.xlu0 %2875 }
 0x3f5   : > { %v3052_v37 = vadd.f32 %v2876_v44, %v7369_v38  ;;  %v3796_v38 = vrot.slane %v3081_v20, %v6464_v6 }
 0x3f7   : > { %v2906_v27 = vpop.xlane.xlu1 %2905  ;;  %v3653_v61 = vrot.slane %v3052_v37, %v6560_v53 }
 0x3f8   : > { %v2936_v41 = vpop.xlane.xlu0 %2935  ;;  %v3067_v54 = vadd.f32 %v2906_v27, %v7373_v34  ;;  %v3095_v27 = vadd.f32 %v6583_v45, %v6574_v46 }
 0x3f9   : > { %v3654_v1 = vsel %vm3337_vm15, %v3653_v61, %v3649_v13  ;;  %v3082_v43 = vadd.f32 %v2936_v41, %v7378_v5  ;;  %v3792_v61 = vsel %vm3309_vm10, %v3791_v36, %v3787_v55 }
 0x3fa   : > { %v3899_v9 = vsel %vm3898_vm3, %v3654_v1, %v3897_v49  ;;  %v3727_v28 = vrot.slane %v3067_v54, %v6524_v15  ;;  %v3723_v49 = vsel %vm3323_vm13, %v3722_v35, %v3718_v12  ;;  %v3797_v46 = vsel %vm3316_vm12, %v3796_v38, %v3792_v61 }
 0x3fb   : > { %v2966_v63 = vpop.xlane.xlu1 %2965  ;;  %v3801_v39 = vrot.slane %v3082_v43, %v6495_v33  ;;  %v3865_v31 = vrot.slane %v3095_v27, %v6395_v29  ;;  %v3861_v54 = vsel %vm3295_vm8, %v3860_v21, %v6563_v51 }
 0x3fc   : > { %v1851_v59 = vpop.xlane.xlu0 %1850  ;;  %v3728_v42 = vsel %vm3330_vm14, %v3727_v28, %v3723_v49  ;;  %v3097_v19 = vadd.f32 %v2966_v63, %v1849_v56 }
 0x3fd   : > { %v3802_v41 = vsel %vm3323_vm13, %v3801_v39, %v3797_v46  ;;  %v3866_v62 = vsel %vm3302_vm9, %v3865_v31, %v3861_v54 }
 0x3fe   : > { %v3875_v34 = vrot.slane %v3097_v19, %v6464_v6  ;;  %v3871_v35 = vsel %vm3309_vm10, %v3870_v40, %v3866_v62 }
 0x3ff   : > { %v2908_v18 = vpop.xlane.xlu1 %2907 }
 0x400   : > { %v3068_v30 = vadd.f32 %v2908_v18, %v7376_v60  ;;  %v2938_v24 = vpop.xlane.xlu0 %2937 }
 0x401   : > { %v3083_v14 = vadd.f32 %v2938_v24, %v7379_v57 }
 0x402   : > { %v3732_v58 = vrot.slane %v3068_v30, %v6560_v53 }
 0x403   : > { %v2968_v10 = vpop.xlane.xlu1 %2967  ;;  %v3806_v23 = vrot.slane %v3083_v14, %v6524_v15 }
 0x404   : > { %v3733_v44 = vsel %vm3337_vm15, %v3732_v58, %v3728_v42  ;;  %v1853_v7 = vpop.xlane.xlu0 %1852  ;;  %v3098_v45 = vadd.f32 %v2968_v10, %v1851_v59  ;;  %v3876_v59 = vsel %vm3316_vm12, %v3875_v34, %v3871_v35 }
 0x405   : > { %v3901_v37 = vsel %vm3900_vm4, %v3733_v44, %v3899_v9  ;;  %v3807_v1 = vsel %vm3330_vm14, %v3806_v23, %v3802_v41 }
 0x406   : > { %v3880_v29 = vrot.slane %v3098_v45, %v6495_v33 }
 0x407   : > { %v2940_v32 = vpop.xlane.xlu1 %2939 }
 0x408   : > { %v3084_v13 = vadd.f32 %v2940_v32, %v7380_v11  ;;  %v2970_v52 = vpop.xlane.xlu0 %2969  ;;  %v3881_v51 = vsel %vm3323_vm13, %v3880_v29, %v3876_v59 }
 0x409   : > { %v3099_v56 = vadd.f32 %v2970_v52, %v1853_v7 }
 0x40a   : > { %v3811_v2 = vrot.slane %v3084_v13, %v6560_v53 }
 0x40b   : > { %v3885_v9 = vrot.slane %v3099_v56, %v6524_v15  ;;  %v1855_v48 = vpop.xlane.xlu1 %1854 }
 0x40c   : > { %v3812_v3 = vsel %vm3337_vm15, %v3811_v2, %v3807_v1  ;;  %v2972_v0 = vpop.xlane.xlu0 %2971 }
 0x40d   : > { %v3903_v63 = vsel %vm3902_vm5, %v3812_v3, %v3901_v37  ;;  %v3100_v6 = vadd.f32 %v2972_v0, %v1855_v48  ;;  %v3886_v15 = vsel %vm3330_vm14, %v3885_v9, %v3881_v51 }
 0x40f   : > { %v3890_v33 = vrot.slane %v3100_v6, %v6560_v53  ;;  %v4153_v53 = vld [vmem:[%s323_s7] ss:$0 sm:$0xff]  ;;  %v3993_v50 = vpop.permute.xlu1 %3992 }
 0x411   : > { %v3891_v8 = vsel %vm3337_vm15, %v3890_v33, %v3886_v15 }
 0x412   : > { %v3905_v28 = vsel %vm3904_vm6, %v3891_v8, %v3903_v63 }
 0x413   : > { %4163 = vmatpush3.msra.mxu0 %v3905_v28 }
 0x414   : > { %4165 = vmatmul.mubr.msk.f32.vlgmr.msra.gmra.mxu0 %vm3907_vm7, %v3101_v17 }
 0x4d4   : > { %v3977_v18 = vpop.f32.mrf.mxu0 }
 0x4d5   : > { %v3988_v22 = vmul.f32 %v4153_v53, %v3977_v18 }
 0x4d6   : > { %v4166_v47 = vpop.f32.mrf.mxu0 }
 0x4d7   : > { %v3995_v60 = vadd.f32 %v3993_v50, %v3988_v22 }
 0x4d9   : > { %3996 = vst [vmem:[%s316_s8] sm:$0xff] %v3995_v60 }
 0x4da   : > { %4351 = shalt.err (!%p4348_p8)
}
 0x4db   : > { %s4352_s3 = scalar_lea.hbm %s4011_s29, 128  ;;  %s4356_s15 = scalar_lea.hbm %s7385_s17, 512 }
 0x4dc   : > { %p4353_p12 = scmp.ne.s32.totalorder %s4011_s29, %s4352_s3  ;;  %p4357_p10 = scmp.lt.s32.totalorder %s4011_s29, %s7385_s17 }
 0x4dd   : > { %p4358_p5 = scmp.lt.s32.totalorder %s4356_s15, %s4352_s3 }
 0x4de   : > { %p4354_p13 = pnand %p4353_p12, %p7386_p0 }
 0x4df   : > { %p4359_p6 = por %p4358_p5, %p4357_p10 }
 0x4e0   : > { %p4355_p4 = pneg %p4354_p13 }
 0x4e2   : > { %p4360_p9 = pnand %p4359_p6, %p4355_p4 }
 0x4e4   : > { %4363 = shalt.err (!%p4360_p9)
}
 0x4e5   : > { %4171 = dma.vmem_to_hbm [thread:$0]  (%p7386_p0), %s4014_s9, 128, %s4011_s29, %s3998_s5  }
 0x4e6 PF: > { %s7387_s16 = sld [smem:[#allocation11_spill]]  ;;  %p4185_p2 = scmp.ge.s32.totalorder %s4462_s28, 2 }
 0x4e7   : > { %s7388_s14 = sld [smem:[#allocation16_spill]] }
 0x4ec   : > { %s4025_s8 = sand.u32 1, %s7387_s16  }
 0x4ed   : > { %p7389_p3 = scmp.ne.s32.totalorder %s7388_s14, 0  ;;  %s4026_s12 = scalar_lea.sflag [#allocation4], %s4025_s8 }
 0x4ef   : > { %p4181_p1 = pnand %p4185_p2, %p7389_p3 }
 0x4f1   : > { %p4182_p11 = pneg %p4181_p1 }
 0x4f3   : > { %4417 = dma.done.wait (%p4182_p11), %s4026_s12, 128  }
 0x4f4   : > { %4419 = vsyncadd (%p4182_p11), %s4026_s12, 4294967168  ;;  %s24_s28 = sadd.s32 1, %s4462_s28   ;;  %s7390_s6 = sld [smem:[#allocation13_spill]] }
 0x4f5   : > { %p21_p7 = scmp.ge.s32.totalorder %s24_s28, 6   ;;  %s7391_s9 = sld [smem:[#allocation14_spill]] }
 0x4f6   : > { %s7392_s18 = smov %s4426_s19  ;;  %s7393_s19 = smov %s4430_s20 }
 0x4f7   : > { %s7394_s20 = smov %s4644_s0  ;;  %s7395_s21 = smov %s4438_s22 }
 0x4f8   : > { %s7396_s22 = smov %s4442_s23  ;;  %s7397_s23 = smov %s4641_s11 }
 0x4f9   : > { %s7398_s24 = smov %s4454_s26  ;;  %s7399_s25 = smov %s4458_s27 }
 0x4fa   : > { %s7400_s26 = smov %s7390_s6  ;;  %23 = sbr.rel (!%p21_p7) target bundleno = 16 (0x10), region = 101 }
 0x4fb   : > { %s7401_s27 = smov %s7391_s9 }
 0x4ff   :  { %4031 = vsyncpa [#allocation3], 1 }
 0x500   :  { %4033 = vsyncpa [#allocation3 + $0x1], 1 }
 0x501   :  { %4034 = vsyncpa [#allocation6], 1 }
 0x502   :  { %4036 = vsyncpa [#allocation6 + $0x1], 1 }
 0x503   :  { %4037 = vsyncpa [#allocation4], 1 }
 0x504   :  { %4039 = vsyncpa [#allocation4 + $0x1], 1 }

</bundles_post_ra>
